<compile_context>
chip_gen: v6e
topology: v6e:2x2x1
jax: 0.10.0
libtpu: 0.0.40
codegen_flags: <defaults>
</compile_context>

<pallas_src>
import functools

import numpy as np
import jax
import jax.numpy as jnp
from jax.experimental import pallas as pl
from jax.experimental.pallas import tpu as pltpu

# ----------------------- static model config -----------------------
IN_CH = 3
IMAGE_SIZE = 16
BASE = 8
BLOCKS = 2
LATENT = 8
SE_RED = 4
GN_EPS = 1e-5
BATCH = 2

_VMEM = pl.BlockSpec(memory_space=pltpu.MemorySpace.VMEM)


# ----------------------- raw (PyTorch-layout) parameters -----------------------
def init_params(key):
    keys = iter(jax.random.split(key, 64))

    def lin(fan_in, shape):
        return jax.random.normal(next(keys), shape, jnp.float32) / jnp.sqrt(float(fan_in))

    chs = [IN_CH] + [BASE * 2 ** i for i in range(BLOCKS)]            # [3, 8, 16]
    enc = []
    for i in range(BLOCKS):
        cin, cout = chs[i], chs[i + 1]
        cr = max(cout // SE_RED, 1)
        enc.append(dict(
            conv_w=lin(cin * 9, (cout, cin, 3, 3)),                   # PyTorch Conv2d layout
            conv_b=jnp.zeros((cout,), jnp.float32),
            gn_g=jnp.ones((cout,), jnp.float32),
            gn_b=jnp.zeros((cout,), jnp.float32),
            se_w1=lin(cout, (cout, cr)),
            se_b1=jnp.zeros((cr,), jnp.float32),
            se_w2=lin(cr, (cr, cout)),
            se_b2=jnp.zeros((cout,), jnp.float32),
        ))

    s_enc = IMAGE_SIZE // (2 ** BLOCKS)                               # 4
    c_enc = chs[-1]                                                   # 16
    flat = c_enc * s_enc * s_enc                                      # 256

    dec_chs = list(reversed(chs[1:]))                                 # [16, 8]
    dec = []
    for i in range(BLOCKS):
        cin = dec_chs[i]
        cout = dec_chs[i + 1] if i + 1 < len(dec_chs) else dec_chs[-1]
        cr = max(cout // SE_RED, 1)
        dec.append(dict(
            deconv_w=lin(cin * 16, (cin, cout, 4, 4)),                # PyTorch ConvTranspose2d layout
            deconv_b=jnp.zeros((cout,), jnp.float32),
            gn_g=jnp.ones((cout,), jnp.float32),
            gn_b=jnp.zeros((cout,), jnp.float32),
            se_w1=lin(cout, (cout, cr)),
            se_b1=jnp.zeros((cr,), jnp.float32),
            se_w2=lin(cr, (cr, cout)),
            se_b2=jnp.zeros((cout,), jnp.float32),
        ))

    return dict(
        enc=enc, dec=dec,
        fc_mu_w=lin(flat, (flat, LATENT)), fc_mu_b=jnp.zeros((LATENT,), jnp.float32),
        fc_logvar_w=lin(flat, (flat, LATENT)), fc_logvar_b=jnp.zeros((LATENT,), jnp.float32),
        fc_dec_w=lin(LATENT, (LATENT, flat)), fc_dec_b=jnp.zeros((flat,), jnp.float32),
        final_w=lin(dec_chs[-1] * 9, (IN_CH, dec_chs[-1], 3, 3)),
        final_b=jnp.zeros((IN_CH,), jnp.float32),
    )


# ----------------------- init-time layer lowering -----------------------
# Kernel activation layout: 2-D (B*H, W*C), rows = (b, h), lanes = (w, c).
# Every layer becomes:  out = sum_i (A[i] @ X) @ M[i] + bias
#   A[i]: 0/1 row-selection matrix (vertical tap i, stride, zero padding, batch blocks)
#   M[i]: per-tap-row lowering matrix (horizontal taps, stride, padding, channel mix)
def _conv_lowering(w, stride, pad, H, W, B):
    """PyTorch Conv2d weight (Cout, Cin, k, k) -> (A, M) stacks."""
    w = np.asarray(w, np.float32)
    Cout, Cin, k, _ = w.shape
    Ho = (H + 2 * pad - k) // stride + 1
    Wo = (W + 2 * pad - k) // stride + 1
    A = np.zeros((k, B * Ho, B * H), np.float32)
    M = np.zeros((k, W * Cin, Wo * Cout), np.float32)
    for i in range(k):
        for b in range(B):
            for ho in range(Ho):
                hin = stride * ho + i - pad
                if 0 <= hin < H:
                    A[i, b * Ho + ho, b * H + hin] = 1.0
        for wo in range(Wo):
            for j in range(k):
                win = stride * wo + j - pad
                if 0 <= win < W:
                    M[i, win * Cin:(win + 1) * Cin, wo * Cout:(wo + 1) * Cout] = w[:, :, i, j].T
    return A, M, Ho, Wo


def _deconv_lowering(w, stride, pad, H, W, B):
    """PyTorch ConvTranspose2d weight (Cin, Cout, k, k) -> (A, M) stacks.

    out[ho, wo, co] = sum_{hi, wi, ci} x[hi, wi, ci] * w[ci, co, kh, kw]
    with kh = ho + pad - stride*hi, kw = wo + pad - stride*wi  (valid taps only).
    """
    w = np.asarray(w, np.float32)
    Cin, Cout, k, _ = w.shape
    Ho = (H - 1) * stride - 2 * pad + k
    Wo = (W - 1) * stride - 2 * pad + k
    A = np.zeros((k, B * Ho, B * H), np.float32)
    M = np.zeros((k, W * Cin, Wo * Cout), np.float32)
    for i in range(k):                                   # i = kernel row kh
        for b in range(B):
            for ho in range(Ho):
                num = ho + pad - i                       # must equal stride * hi
                if num % stride == 0:
                    hi = num // stride
                    if 0 <= hi < H:
                        A[i, b * Ho + ho, b * H + hi] = 1.0
        for wo in range(Wo):
            for wi in range(W):
                kw = wo + pad - stride * wi
                if 0 <= kw < k:
                    M[i, wi * Cin:(wi + 1) * Cin, wo * Cout:(wo + 1) * Cout] = w[:, :, i, kw]
    return A, M, Ho, Wo


def _geom_mats(B, Ho, Wo, C):
    """Replicate / channel-sum helpers so GN + SE use only matmuls & lane reductions."""
    E = np.zeros((B * Ho, B), np.float32)                # replicate a per-sample scalar to rows
    for r in range(B * Ho):
        E[r, r // Ho] = 1.0
    R = np.tile(np.eye(C, dtype=np.float32), (Wo, 1))    # (Wo*C, C): sum over w per channel
    return E, np.ascontiguousarray(E.T), R, np.ascontiguousarray(R.T)


def _fc_enc_lowering(w_mu, b_mu, w_lv, b_lv, C, H, W, B):
    """fc_mu/fc_logvar (weights (C*H*W, out), rows in PyTorch NCHW-flatten order),
    combined into one bilinear layer producing (B, 2*LATENT)."""
    wc = np.concatenate([np.asarray(w_mu, np.float32), np.asarray(w_lv, np.float32)], axis=1)
    out = wc.shape[1]
    A = np.zeros((H, B, B * H), np.float32)
    M = np.zeros((H, W * C, out), np.float32)
    for h in range(H):
        for b in range(B):
            A[h, b, b * H + h] = 1.0
        for wi in range(W):
            for c in range(C):
                M[h, wi * C + c, :] = wc[c * H * W + h * W + wi, :]
    bias = np.concatenate([np.asarray(b_mu, np.float32), np.asarray(b_lv, np.float32)])[None, :]
    return A, M, bias


def _fc_dec_lowering(w, bvec, C, H, W, B):
    """fc_dec weight (LATENT, C*H*W), cols in PyTorch NCHW-flatten order ->
    bilinear layer producing the decoder input directly in (B*H, W*C) layout."""
    w = np.asarray(w, np.float32)
    bvec = np.asarray(bvec, np.float32)
    L = w.shape[0]
    A = np.zeros((H, B * H, B), np.float32)
    M = np.zeros((H, L, W * C), np.float32)
    brow = np.zeros((H, W * C), np.float32)
    for h in range(H):
        for b in range(B):
            A[h, b * H + h, b] = 1.0
        for wi in range(W):
            for c in range(C):
                M[h, :, wi * C + c] = w[:, c * H * W + h * W + wi]
                brow[h, wi * C + c] = bvec[c * H * W + h * W + wi]
    bias = np.tile(brow, (B, 1))
    return A, M, bias


def derive_params(params, batch):
    """Precompute (once) every matrix the fused kernel needs, for a fixed batch size."""
    B = batch
    chs = [IN_CH] + [BASE * 2 ** i for i in range(BLOCKS)]
    d = {"enc": [], "dec": []}

    def block_entry(A, M, bias_vec, Ho, Wo, blk):
        E, Et, R, Rt = _geom_mats(B, Ho, Wo, np.asarray(blk["gn_g"]).shape[0])
        return dict(
            A=A, M=M,
            b=np.tile(np.asarray(bias_vec, np.float32), Wo)[None, :],
            gn_g=np.tile(np.asarray(blk["gn_g"], np.float32), Wo)[None, :],
            gn_b=np.tile(np.asarray(blk["gn_b"], np.float32), Wo)[None, :],
            E=E, Et=Et, R=R, Rt=Rt,
            se_w1=np.asarray(blk["se_w1"], np.float32),
            se_b1=np.asarray(blk["se_b1"], np.float32)[None, :],
            se_w2=np.asarray(blk["se_w2"], np.float32),
            se_b2=np.asarray(blk["se_b2"], np.float32)[None, :],
        )

    # encoder blocks: Conv2d(3x3, stride 2, pad 1)
    H = IMAGE_SIZE
    for blk in params["enc"]:
        A, M, Ho, Wo = _conv_lowering(blk["conv_w"], 2, 1, H, H, B)
        d["enc"].append(block_entry(A, M, blk["conv_b"], Ho, Wo, blk))
        H = Ho

    s_enc, c_enc = H, chs[-1]                                         # 4, 16
    A, M, bias = _fc_enc_lowering(params["fc_mu_w"], params["fc_mu_b"],
                                  params["fc_logvar_w"], params["fc_logvar_b"],
                                  c_enc, s_enc, s_enc, B)
    d["fc_enc"] = dict(A=A, M=M, b=bias)
    A, M, bias = _fc_dec_lowering(params["fc_dec_w"], params["fc_dec_b"],
                                  c_enc, s_enc, s_enc, B)
    d["fc_dec"] = dict(A=A, M=M, b=bias)

    # decoder blocks: ConvTranspose2d(4x4, stride 2, pad 1)
    H = s_enc
    for blk in params["dec"]:
        A, M, Ho, Wo = _deconv_lowering(blk["deconv_w"], 2, 1, H, H, B)
        d["dec"].append(block_entry(A, M, blk["deconv_b"], Ho, Wo, blk))
        H = Ho

    # final 3x3 conv (stride 1, pad 1)
    A, M, Ho, Wo = _conv_lowering(params["final_w"], 1, 1, H, H, B)
    d["final"] = dict(A=A, M=M,
                      b=np.tile(np.asarray(params["final_b"], np.float32), Wo)[None, :])

    return jax.tree_util.tree_map(lambda a: jnp.asarray(a, jnp.float32), d)


# ----------------------- fused Pallas kernel -----------------------
def _bilinear(x, a_ref, m_ref, b_ref):
    acc = None
    for i in range(a_ref.shape[0]):
        t = jnp.dot(jnp.dot(a_ref[i], x, preferred_element_type=jnp.float32),
                    m_ref[i], preferred_element_type=jnp.float32)
        acc = t if acc is None else acc + t
    return acc + b_ref[...]


def _conv_gn_se_block(h, blk):
    # conv / transposed conv
    h = _bilinear(h, blk["A"], blk["M"], blk["b"])
    E = blk["E"][...]
    Et = blk["Et"][...]
    Ho = blk["E"].shape[0] // blk["E"].shape[1]

    # GroupNorm(1, C) over (C, H, W) per sample (biased variance), then ReLU
    n = float(Ho * blk["gn_g"].shape[1])
    ps = jnp.dot(Et, h, preferred_element_type=jnp.float32)           # per-sample row sums
    ps2 = jnp.dot(Et, h * h, preferred_element_type=jnp.float32)
    mean = jnp.sum(ps, axis=1, keepdims=True) * (1.0 / n)             # (B, 1)
    ex2 = jnp.sum(ps2, axis=1, keepdims=True) * (1.0 / n)
    inv = jax.lax.rsqrt(ex2 - mean * mean + GN_EPS)
    mean_r = jnp.dot(E, mean, preferred_element_type=jnp.float32)     # replicate per row
    inv_r = jnp.dot(E, inv, preferred_element_type=jnp.float32)
    h = (h - mean_r) * inv_r * blk["gn_g"][...] + blk["gn_b"][...]
    h = jnp.maximum(h, 0.0)

    # Squeeze-Excitation: GAP -> fc(C -> C/r) -> ReLU -> fc(C/r -> C) -> sigmoid -> scale
    C = blk["R"].shape[1]
    hw = float(Ho * (blk["R"].shape[0] // C))
    ch = jnp.dot(h, blk["R"][...], preferred_element_type=jnp.float32)         # (B*Ho, C)
    s = jnp.dot(Et, ch, preferred_element_type=jnp.float32) * (1.0 / hw)       # (B, C)
    a1 = jnp.maximum(
        jnp.dot(s, blk["se_w1"][...], preferred_element_type=jnp.float32) + blk["se_b1"][...],
        0.0)
    g = jax.nn.sigmoid(
        jnp.dot(a1, blk["se_w2"][...], preferred_element_type=jnp.float32) + blk["se_b2"][...])
    gate = jnp.dot(jnp.dot(E, g, preferred_element_type=jnp.float32), blk["Rt"][...],
                   preferred_element_type=jnp.float32)                         # (B*Ho, Wo*C)
    return h * gate


def _make_kernel(treedef, n_in, deterministic):
    def kernel(*refs):
        p = jax.tree_util.tree_unflatten(treedef, refs[:n_in])
        recon_ref, mu_ref, logvar_ref, z_ref = refs[n_in:]

        # ---------------- encoder ----------------
        h = p["x"][...]
        for blk in p["enc"]:
            h = _conv_gn_se_block(h, blk)

        # fc_mu / fc_logvar (single combined matmul) + clamp + reparameterize
        muvar = _bilinear(h, p["fc_enc"]["A"], p["fc_enc"]["M"], p["fc_enc"]["b"])
        mu = muvar[:, :LATENT]
        logvar = jnp.clip(muvar[:, LATENT:], -10.0, 10.0)      # logvar_clamp None -> [-10, 10]
        if deterministic:
            z = mu
        else:
            z = mu + p["eps"][...] * jnp.exp(0.5 * logvar)
        mu_ref[...] = mu
        logvar_ref[...] = logvar
        z_ref[...] = z

        # ---------------- decoder ----------------  (latent_clamp None -> no clamp on z)
        h = _bilinear(z, p["fc_dec"]["A"], p["fc_dec"]["M"], p["fc_dec"]["b"])
        for blk in p["dec"]:
            h = _conv_gn_se_block(h, blk)
        out = _bilinear(h, p["final"]["A"], p["final"]["M"], p["final"]["b"])
        recon_ref[...] = jax.nn.sigmoid(out)

    return kernel


# ----------------------- forward (one pallas_call) -----------------------
def beta_vae_forward(derived, x, eps, *, deterministic=False):
    B, C, H, W = x.shape
    # only boundary layout change in XLA: NCHW -> (B*H, W*C) and back
    x2d = jnp.transpose(x, (0, 2, 3, 1)).reshape(B * H, W * C)
    tree = dict(derived)
    tree["x"] = x2d
    tree["eps"] = eps
    flat, treedef = jax.tree_util.tree_flatten(tree)
    n_in = len(flat)

    out_shape = (
        jax.ShapeDtypeStruct((B * H, W * C), jnp.float32),   # recon, (b,h) x (w,c) layout
        jax.ShapeDtypeStruct((B, LATENT), jnp.float32),      # mu
        jax.ShapeDtypeStruct((B, LATENT), jnp.float32),      # logvar
        jax.ShapeDtypeStruct((B, LATENT), jnp.float32),      # z
    )
    recon2d, mu, logvar, z = pl.pallas_call(
        _make_kernel(treedef, n_in, deterministic),
        out_shape=out_shape,
        in_specs=[_VMEM] * n_in,
        out_specs=(_VMEM, _VMEM, _VMEM, _VMEM),
        cost_estimate=pl.CostEstimate(flops=8_000_000, transcendentals=4_000,
                                      bytes_accessed=700_000),
    )(*flat)
    recon = recon2d.reshape(B, H, W, C).transpose(0, 3, 1, 2)
    return recon, mu, logvar, z
    # TODO(synk): for large batches on v7x, add a batch grid axis with
    # dimension_semantics=("parallel",) to use both TensorCores; at B=2 it is not worth it.


if __name__ == "__main__":
    params = init_params(jax.random.PRNGKey(0))
    derived = derive_params(params, BATCH)

    kx, keps = jax.random.split(jax.random.PRNGKey(0), 2)
    x = jax.random.uniform(kx, (BATCH, IN_CH, IMAGE_SIZE, IMAGE_SIZE), jnp.float32)
    # eps ~ N(0,1) replaces torch.randn_like in reparameterize (sampling path)
    eps = jax.random.normal(keps, (BATCH, LATENT), jnp.float32)

    fwd = jax.jit(functools.partial(beta_vae_forward, deterministic=False))
    recon, mu, logvar, z = fwd(derived, x, eps)
    jax.block_until_ready((recon, mu, logvar, z))

    assert recon.shape == (BATCH, IN_CH, IMAGE_SIZE, IMAGE_SIZE)
    assert mu.shape == (BATCH, LATENT) and logvar.shape == (BATCH, LATENT) and z.shape == (BATCH, LATENT)
    assert bool(jnp.all(jnp.isfinite(recon)))
    print("KERNEL_OK")
</pallas_src>

<mosaic_0001>
module attributes {stable_mosaic.version = 11 : i64} {
  func.func @kernel(%arg0: memref<4x16x8xf32, #tpu.memory_space<vmem>>, %arg1: memref<16x2xf32, #tpu.memory_space<vmem>>, %arg2: memref<2x16xf32, #tpu.memory_space<vmem>>, %arg3: memref<4x64x64xf32, #tpu.memory_space<vmem>>, %arg4: memref<64x8xf32, #tpu.memory_space<vmem>>, %arg5: memref<8x64xf32, #tpu.memory_space<vmem>>, %arg6: memref<1x64xf32, #tpu.memory_space<vmem>>, %arg7: memref<1x64xf32, #tpu.memory_space<vmem>>, %arg8: memref<1x64xf32, #tpu.memory_space<vmem>>, %arg9: memref<1x2xf32, #tpu.memory_space<vmem>>, %arg10: memref<1x8xf32, #tpu.memory_space<vmem>>, %arg11: memref<8x2xf32, #tpu.memory_space<vmem>>, %arg12: memref<2x8xf32, #tpu.memory_space<vmem>>, %arg13: memref<4x32x16xf32, #tpu.memory_space<vmem>>, %arg14: memref<32x2xf32, #tpu.memory_space<vmem>>, %arg15: memref<2x32xf32, #tpu.memory_space<vmem>>, %arg16: memref<4x64x128xf32, #tpu.memory_space<vmem>>, %arg17: memref<128x8xf32, #tpu.memory_space<vmem>>, %arg18: memref<8x128xf32, #tpu.memory_space<vmem>>, %arg19: memref<1x128xf32, #tpu.memory_space<vmem>>, %arg20: memref<1x128xf32, #tpu.memory_space<vmem>>, %arg21: memref<1x128xf32, #tpu.memory_space<vmem>>, %arg22: memref<1x2xf32, #tpu.memory_space<vmem>>, %arg23: memref<1x8xf32, #tpu.memory_space<vmem>>, %arg24: memref<8x2xf32, #tpu.memory_space<vmem>>, %arg25: memref<2x8xf32, #tpu.memory_space<vmem>>, %arg26: memref<3x16x32xf32, #tpu.memory_space<vmem>>, %arg27: memref<16x2xf32, #tpu.memory_space<vmem>>, %arg28: memref<2x16xf32, #tpu.memory_space<vmem>>, %arg29: memref<3x48x64xf32, #tpu.memory_space<vmem>>, %arg30: memref<64x8xf32, #tpu.memory_space<vmem>>, %arg31: memref<8x64xf32, #tpu.memory_space<vmem>>, %arg32: memref<1x64xf32, #tpu.memory_space<vmem>>, %arg33: memref<1x64xf32, #tpu.memory_space<vmem>>, %arg34: memref<1x64xf32, #tpu.memory_space<vmem>>, %arg35: memref<1x2xf32, #tpu.memory_space<vmem>>, %arg36: memref<1x8xf32, #tpu.memory_space<vmem>>, %arg37: memref<8x2xf32, #tpu.memory_space<vmem>>, %arg38: memref<2x8xf32, #tpu.memory_space<vmem>>, %arg39: memref<3x8x16xf32, #tpu.memory_space<vmem>>, %arg40: memref<8x2xf32, #tpu.memory_space<vmem>>, %arg41: memref<2x8xf32, #tpu.memory_space<vmem>>, %arg42: memref<3x64x64xf32, #tpu.memory_space<vmem>>, %arg43: memref<64x16xf32, #tpu.memory_space<vmem>>, %arg44: memref<16x64xf32, #tpu.memory_space<vmem>>, %arg45: memref<1x64xf32, #tpu.memory_space<vmem>>, %arg46: memref<1x64xf32, #tpu.memory_space<vmem>>, %arg47: memref<1x64xf32, #tpu.memory_space<vmem>>, %arg48: memref<1x4xf32, #tpu.memory_space<vmem>>, %arg49: memref<1x16xf32, #tpu.memory_space<vmem>>, %arg50: memref<16x4xf32, #tpu.memory_space<vmem>>, %arg51: memref<4x16xf32, #tpu.memory_space<vmem>>, %arg52: memref<2x8xf32, #tpu.memory_space<vmem>>, %arg53: memref<4x8x2xf32, #tpu.memory_space<vmem>>, %arg54: memref<4x8x64xf32, #tpu.memory_space<vmem>>, %arg55: memref<8x64xf32, #tpu.memory_space<vmem>>, %arg56: memref<4x2x8xf32, #tpu.memory_space<vmem>>, %arg57: memref<4x64x16xf32, #tpu.memory_space<vmem>>, %arg58: memref<1x16xf32, #tpu.memory_space<vmem>>, %arg59: memref<3x32x32xf32, #tpu.memory_space<vmem>>, %arg60: memref<3x128x48xf32, #tpu.memory_space<vmem>>, %arg61: memref<1x48xf32, #tpu.memory_space<vmem>>, %arg62: memref<32x48xf32, #tpu.memory_space<vmem>>, %arg63: memref<32x48xf32, #tpu.memory_space<vmem>>, %arg64: memref<2x8xf32, #tpu.memory_space<vmem>>, %arg65: memref<2x8xf32, #tpu.memory_space<vmem>>, %arg66: memref<2x8xf32, #tpu.memory_space<vmem>>) attributes {dimension_semantics = [], scalar_prefetch = 0 : i64, scratch_operands = 0 : i64, tpu.core_type = #tpu.core_type<tc>} {
    %c0 = arith.constant 0 : index
    %c0_0 = arith.constant 0 : index
    %0 = vector.load %arg62[%c0, %c0_0] : memref<32x48xf32, #tpu.memory_space<vmem>>, vector<32x48xf32>
    %c0_1 = arith.constant 0 : index
    %c0_2 = arith.constant 0 : index
    %c0_3 = arith.constant 0 : index
    %1 = vector.load %arg26[%c0_1, %c0_2, %c0_3] : memref<3x16x32xf32, #tpu.memory_space<vmem>>, vector<1x16x32xf32>
    %2 = vector.shape_cast %1 : vector<1x16x32xf32> to vector<16x32xf32>
    %cst = arith.constant dense<0.000000e+00> : vector<16x48xf32>
    %3 = tpu.matmul %2, %0, %cst {dimension_numbers = #tpu.dot_dimension_numbers<[1], [0], [0], [1], [0, 0, 1, 1], [], []>} : vector<16x32xf32>, vector<32x48xf32>, vector<16x48xf32> -> vector<16x48xf32>
    %c0_4 = arith.constant 0 : index
    %c0_5 = arith.constant 0 : index
    %c0_6 = arith.constant 0 : index
    %4 = vector.load %arg29[%c0_4, %c0_5, %c0_6] : memref<3x48x64xf32, #tpu.memory_space<vmem>>, vector<1x48x64xf32>
    %5 = vector.shape_cast %4 : vector<1x48x64xf32> to vector<48x64xf32>
    %cst_7 = arith.constant dense<0.000000e+00> : vector<16x64xf32>
    %6 = tpu.matmul %3, %5, %cst_7 {dimension_numbers = #tpu.dot_dimension_numbers<[1], [0], [0], [1], [0, 0, 1, 1], [], []>} : vector<16x48xf32>, vector<48x64xf32>, vector<16x64xf32> -> vector<16x64xf32>
    %c1 = arith.constant 1 : index
    %c0_8 = arith.constant 0 : index
    %c0_9 = arith.constant 0 : index
    %7 = vector.load %arg26[%c1, %c0_8, %c0_9] : memref<3x16x32xf32, #tpu.memory_space<vmem>>, vector<1x16x32xf32>
    %8 = vector.shape_cast %7 : vector<1x16x32xf32> to vector<16x32xf32>
    %cst_10 = arith.constant dense<0.000000e+00> : vector<16x48xf32>
    %9 = tpu.matmul %8, %0, %cst_10 {dimension_numbers = #tpu.dot_dimension_numbers<[1], [0], [0], [1], [0, 0, 1, 1], [], []>} : vector<16x32xf32>, vector<32x48xf32>, vector<16x48xf32> -> vector<16x48xf32>
    %c1_11 = arith.constant 1 : index
    %c0_12 = arith.constant 0 : index
    %c0_13 = arith.constant 0 : index
    %10 = vector.load %arg29[%c1_11, %c0_12, %c0_13] : memref<3x48x64xf32, #tpu.memory_space<vmem>>, vector<1x48x64xf32>
    %11 = vector.shape_cast %10 : vector<1x48x64xf32> to vector<48x64xf32>
    %cst_14 = arith.constant dense<0.000000e+00> : vector<16x64xf32>
    %12 = tpu.matmul %9, %11, %cst_14 {dimension_numbers = #tpu.dot_dimension_numbers<[1], [0], [0], [1], [0, 0, 1, 1], [], []>} : vector<16x48xf32>, vector<48x64xf32>, vector<16x64xf32> -> vector<16x64xf32>
    %13 = arith.addf %6, %12 : vector<16x64xf32>
    %c2 = arith.constant 2 : index
    %c0_15 = arith.constant 0 : index
    %c0_16 = arith.constant 0 : index
    %14 = vector.load %arg26[%c2, %c0_15, %c0_16] : memref<3x16x32xf32, #tpu.memory_space<vmem>>, vector<1x16x32xf32>
    %15 = vector.shape_cast %14 : vector<1x16x32xf32> to vector<16x32xf32>
    %cst_17 = arith.constant dense<0.000000e+00> : vector<16x48xf32>
    %16 = tpu.matmul %15, %0, %cst_17 {dimension_numbers = #tpu.dot_dimension_numbers<[1], [0], [0], [1], [0, 0, 1, 1], [], []>} : vector<16x32xf32>, vector<32x48xf32>, vector<16x48xf32> -> vector<16x48xf32>
    %c2_18 = arith.constant 2 : index
    %c0_19 = arith.constant 0 : index
    %c0_20 = arith.constant 0 : index
    %17 = vector.load %arg29[%c2_18, %c0_19, %c0_20] : memref<3x48x64xf32, #tpu.memory_space<vmem>>, vector<1x48x64xf32>
    %18 = vector.shape_cast %17 : vector<1x48x64xf32> to vector<48x64xf32>
    %cst_21 = arith.constant dense<0.000000e+00> : vector<16x64xf32>
    %19 = tpu.matmul %16, %18, %cst_21 {dimension_numbers = #tpu.dot_dimension_numbers<[1], [0], [0], [1], [0, 0, 1, 1], [], []>} : vector<16x48xf32>, vector<48x64xf32>, vector<16x64xf32> -> vector<16x64xf32>
    %20 = arith.addf %13, %19 : vector<16x64xf32>
    %c0_22 = arith.constant 0 : index
    %c0_23 = arith.constant 0 : index
    %21 = vector.load %arg32[%c0_22, %c0_23] : memref<1x64xf32, #tpu.memory_space<vmem>>, vector<1x64xf32>
    %22 = vector.broadcast %21 : vector<1x64xf32> to vector<16x64xf32>
    %23 = arith.addf %20, %22 : vector<16x64xf32>
    %c0_24 = arith.constant 0 : index
    %c0_25 = arith.constant 0 : index
    %24 = vector.load %arg27[%c0_24, %c0_25] : memref<16x2xf32, #tpu.memory_space<vmem>>, vector<16x2xf32>
    %c0_26 = arith.constant 0 : index
    %c0_27 = arith.constant 0 : index
    %25 = vector.load %arg28[%c0_26, %c0_27] : memref<2x16xf32, #tpu.memory_space<vmem>>, vector<2x16xf32>
    %cst_28 = arith.constant dense<0.000000e+00> : vector<2x64xf32>
    %26 = tpu.matmul %25, %23, %cst_28 {dimension_numbers = #tpu.dot_dimension_numbers<[1], [0], [0], [1], [0, 0, 1, 1], [], []>} : vector<2x16xf32>, vector<16x64xf32>, vector<2x64xf32> -> vector<2x64xf32>
    %27 = arith.mulf %23, %23 : vector<16x64xf32>
    %cst_29 = arith.constant dense<0.000000e+00> : vector<2x64xf32>
    %28 = tpu.matmul %25, %27, %cst_29 {dimension_numbers = #tpu.dot_dimension_numbers<[1], [0], [0], [1], [0, 0, 1, 1], [], []>} : vector<2x16xf32>, vector<16x64xf32>, vector<2x64xf32> -> vector<2x64xf32>
    %cst_30 = arith.constant dense<0.000000e+00> : vector<2xf32>
    %29 = vector.multi_reduction <add>, %26, %cst_30 [1] : vector<2x64xf32> to vector<2xf32>
    %30 = vector.shape_cast %29 : vector<2xf32> to vector<2x1xf32>
    %cst_31 = arith.constant 0.001953125 : f32
    %31 = vector.broadcast %cst_31 : f32 to vector<2x1xf32>
    %32 = arith.mulf %30, %31 : vector<2x1xf32>
    %cst_32 = arith.constant dense<0.000000e+00> : vector<2xf32>
    %33 = vector.multi_reduction <add>, %28, %cst_32 [1] : vector<2x64xf32> to vector<2xf32>
    %34 = vector.shape_cast %33 : vector<2xf32> to vector<2x1xf32>
    %cst_33 = arith.constant 0.001953125 : f32
    %35 = vector.broadcast %cst_33 : f32 to vector<2x1xf32>
    %36 = arith.mulf %34, %35 : vector<2x1xf32>
    %37 = arith.mulf %32, %32 : vector<2x1xf32>
    %38 = arith.subf %36, %37 : vector<2x1xf32>
    %cst_34 = arith.constant 9.99999974E-6 : f32
    %39 = vector.broadcast %cst_34 : f32 to vector<2x1xf32>
    %40 = arith.addf %38, %39 : vector<2x1xf32>
    %41 = math.rsqrt %40 : vector<2x1xf32>
    %cst_35 = arith.constant dense<0.000000e+00> : vector<16x1xf32>
    %42 = tpu.matmul %24, %32, %cst_35 {dimension_numbers = #tpu.dot_dimension_numbers<[1], [0], [0], [1], [0, 0, 1, 1], [], []>} : vector<16x2xf32>, vector<2x1xf32>, vector<16x1xf32> -> vector<16x1xf32>
    %cst_36 = arith.constant dense<0.000000e+00> : vector<16x1xf32>
    %43 = tpu.matmul %24, %41, %cst_36 {dimension_numbers = #tpu.dot_dimension_numbers<[1], [0], [0], [1], [0, 0, 1, 1], [], []>} : vector<16x2xf32>, vector<2x1xf32>, vector<16x1xf32> -> vector<16x1xf32>
    %44 = vector.broadcast %42 : vector<16x1xf32> to vector<16x64xf32>
    %45 = arith.subf %23, %44 : vector<16x64xf32>
    %46 = vector.broadcast %43 : vector<16x1xf32> to vector<16x64xf32>
    %47 = arith.mulf %45, %46 : vector<16x64xf32>
    %c0_37 = arith.constant 0 : index
    %c0_38 = arith.constant 0 : index
    %48 = vector.load %arg34[%c0_37, %c0_38] : memref<1x64xf32, #tpu.memory_space<vmem>>, vector<1x64xf32>
    %49 = vector.broadcast %48 : vector<1x64xf32> to vector<16x64xf32>
    %50 = arith.mulf %47, %49 : vector<16x64xf32>
    %c0_39 = arith.constant 0 : index
    %c0_40 = arith.constant 0 : index
    %51 = vector.load %arg33[%c0_39, %c0_40] : memref<1x64xf32, #tpu.memory_space<vmem>>, vector<1x64xf32>
    %52 = vector.broadcast %51 : vector<1x64xf32> to vector<16x64xf32>
    %53 = arith.addf %50, %52 : vector<16x64xf32>
    %cst_41 = arith.constant 0.000000e+00 : f32
    %54 = vector.broadcast %cst_41 : f32 to vector<16x64xf32>
    %55 = arith.maximumf %53, %54 : vector<16x64xf32>
    %c0_42 = arith.constant 0 : index
    %c0_43 = arith.constant 0 : index
    %56 = vector.load %arg30[%c0_42, %c0_43] : memref<64x8xf32, #tpu.memory_space<vmem>>, vector<64x8xf32>
    %cst_44 = arith.constant dense<0.000000e+00> : vector<16x8xf32>
    %57 = tpu.matmul %55, %56, %cst_44 {dimension_numbers = #tpu.dot_dimension_numbers<[1], [0], [0], [1], [0, 0, 1, 1], [], []>} : vector<16x64xf32>, vector<64x8xf32>, vector<16x8xf32> -> vector<16x8xf32>
    %cst_45 = arith.constant dense<0.000000e+00> : vector<2x8xf32>
    %58 = tpu.matmul %25, %57, %cst_45 {dimension_numbers = #tpu.dot_dimension_numbers<[1], [0], [0], [1], [0, 0, 1, 1], [], []>} : vector<2x16xf32>, vector<16x8xf32>, vector<2x8xf32> -> vector<2x8xf32>
    %cst_46 = arith.constant 1.562500e-02 : f32
    %59 = vector.broadcast %cst_46 : f32 to vector<2x8xf32>
    %60 = arith.mulf %58, %59 : vector<2x8xf32>
    %c0_47 = arith.constant 0 : index
    %c0_48 = arith.constant 0 : index
    %61 = vector.load %arg37[%c0_47, %c0_48] : memref<8x2xf32, #tpu.memory_space<vmem>>, vector<8x2xf32>
    %cst_49 = arith.constant dense<0.000000e+00> : vector<2x2xf32>
    %62 = tpu.matmul %60, %61, %cst_49 {dimension_numbers = #tpu.dot_dimension_numbers<[1], [0], [0], [1], [0, 0, 1, 1], [], []>} : vector<2x8xf32>, vector<8x2xf32>, vector<2x2xf32> -> vector<2x2xf32>
    %c0_50 = arith.constant 0 : index
    %c0_51 = arith.constant 0 : index
    %63 = vector.load %arg35[%c0_50, %c0_51] : memref<1x2xf32, #tpu.memory_space<vmem>>, vector<1x2xf32>
    %64 = vector.broadcast %63 : vector<1x2xf32> to vector<2x2xf32>
    %65 = arith.addf %62, %64 : vector<2x2xf32>
    %cst_52 = arith.constant 0.000000e+00 : f32
    %66 = vector.broadcast %cst_52 : f32 to vector<2x2xf32>
    %67 = arith.maximumf %65, %66 : vector<2x2xf32>
    %c0_53 = arith.constant 0 : index
    %c0_54 = arith.constant 0 : index
    %68 = vector.load %arg38[%c0_53, %c0_54] : memref<2x8xf32, #tpu.memory_space<vmem>>, vector<2x8xf32>
    %cst_55 = arith.constant dense<0.000000e+00> : vector<2x8xf32>
    %69 = tpu.matmul %67, %68, %cst_55 {dimension_numbers = #tpu.dot_dimension_numbers<[1], [0], [0], [1], [0, 0, 1, 1], [], []>} : vector<2x2xf32>, vector<2x8xf32>, vector<2x8xf32> -> vector<2x8xf32>
    %c0_56 = arith.constant 0 : index
    %c0_57 = arith.constant 0 : index
    %70 = vector.load %arg36[%c0_56, %c0_57] : memref<1x8xf32, #tpu.memory_space<vmem>>, vector<1x8xf32>
    %71 = vector.broadcast %70 : vector<1x8xf32> to vector<2x8xf32>
    %72 = arith.addf %69, %71 : vector<2x8xf32>
    %73 = arith.negf %72 : vector<2x8xf32>
    %74 = math.exp %73 : vector<2x8xf32>
    %cst_58 = arith.constant 1.000000e+00 : f32
    %75 = vector.broadcast %cst_58 : f32 to vector<2x8xf32>
    %76 = arith.addf %75, %74 : vector<2x8xf32>
    %77 = arith.divf %75, %76 : vector<2x8xf32>
    %cst_59 = arith.constant dense<0.000000e+00> : vector<16x8xf32>
    %78 = tpu.matmul %24, %77, %cst_59 {dimension_numbers = #tpu.dot_dimension_numbers<[1], [0], [0], [1], [0, 0, 1, 1], [], []>} : vector<16x2xf32>, vector<2x8xf32>, vector<16x8xf32> -> vector<16x8xf32>
    %c0_60 = arith.constant 0 : index
    %c0_61 = arith.constant 0 : index
    %79 = vector.load %arg31[%c0_60, %c0_61] : memref<8x64xf32, #tpu.memory_space<vmem>>, vector<8x64xf32>
    %cst_62 = arith.constant dense<0.000000e+00> : vector<16x64xf32>
    %80 = tpu.matmul %78, %79, %cst_62 {dimension_numbers = #tpu.dot_dimension_numbers<[1], [0], [0], [1], [0, 0, 1, 1], [], []>} : vector<16x8xf32>, vector<8x64xf32>, vector<16x64xf32> -> vector<16x64xf32>
    %81 = arith.mulf %55, %80 : vector<16x64xf32>
    %c0_63 = arith.constant 0 : index
    %c0_64 = arith.constant 0 : index
    %c0_65 = arith.constant 0 : index
    %82 = vector.load %arg39[%c0_63, %c0_64, %c0_65] : memref<3x8x16xf32, #tpu.memory_space<vmem>>, vector<1x8x16xf32>
    %83 = vector.shape_cast %82 : vector<1x8x16xf32> to vector<8x16xf32>
    %cst_66 = arith.constant dense<0.000000e+00> : vector<8x64xf32>
    %84 = tpu.matmul %83, %81, %cst_66 {dimension_numbers = #tpu.dot_dimension_numbers<[1], [0], [0], [1], [0, 0, 1, 1], [], []>} : vector<8x16xf32>, vector<16x64xf32>, vector<8x64xf32> -> vector<8x64xf32>
    %c0_67 = arith.constant 0 : index
    %c0_68 = arith.constant 0 : index
    %c0_69 = arith.constant 0 : index
    %85 = vector.load %arg42[%c0_67, %c0_68, %c0_69] : memref<3x64x64xf32, #tpu.memory_space<vmem>>, vector<1x64x64xf32>
    %86 = vector.shape_cast %85 : vector<1x64x64xf32> to vector<64x64xf32>
    %cst_70 = arith.constant dense<0.000000e+00> : vector<8x64xf32>
    %87 = tpu.matmul %84, %86, %cst_70 {dimension_numbers = #tpu.dot_dimension_numbers<[1], [0], [0], [1], [0, 0, 1, 1], [], []>} : vector<8x64xf32>, vector<64x64xf32>, vector<8x64xf32> -> vector<8x64xf32>
    %c1_71 = arith.constant 1 : index
    %c0_72 = arith.constant 0 : index
    %c0_73 = arith.constant 0 : index
    %88 = vector.load %arg39[%c1_71, %c0_72, %c0_73] : memref<3x8x16xf32, #tpu.memory_space<vmem>>, vector<1x8x16xf32>
    %89 = vector.shape_cast %88 : vector<1x8x16xf32> to vector<8x16xf32>
    %cst_74 = arith.constant dense<0.000000e+00> : vector<8x64xf32>
    %90 = tpu.matmul %89, %81, %cst_74 {dimension_numbers = #tpu.dot_dimension_numbers<[1], [0], [0], [1], [0, 0, 1, 1], [], []>} : vector<8x16xf32>, vector<16x64xf32>, vector<8x64xf32> -> vector<8x64xf32>
    %c1_75 = arith.constant 1 : index
    %c0_76 = arith.constant 0 : index
    %c0_77 = arith.constant 0 : index
    %91 = vector.load %arg42[%c1_75, %c0_76, %c0_77] : memref<3x64x64xf32, #tpu.memory_space<vmem>>, vector<1x64x64xf32>
    %92 = vector.shape_cast %91 : vector<1x64x64xf32> to vector<64x64xf32>
    %cst_78 = arith.constant dense<0.000000e+00> : vector<8x64xf32>
    %93 = tpu.matmul %90, %92, %cst_78 {dimension_numbers = #tpu.dot_dimension_numbers<[1], [0], [0], [1], [0, 0, 1, 1], [], []>} : vector<8x64xf32>, vector<64x64xf32>, vector<8x64xf32> -> vector<8x64xf32>
    %94 = arith.addf %87, %93 : vector<8x64xf32>
    %c2_79 = arith.constant 2 : index
    %c0_80 = arith.constant 0 : index
    %c0_81 = arith.constant 0 : index
    %95 = vector.load %arg39[%c2_79, %c0_80, %c0_81] : memref<3x8x16xf32, #tpu.memory_space<vmem>>, vector<1x8x16xf32>
    %96 = vector.shape_cast %95 : vector<1x8x16xf32> to vector<8x16xf32>
    %cst_82 = arith.constant dense<0.000000e+00> : vector<8x64xf32>
    %97 = tpu.matmul %96, %81, %cst_82 {dimension_numbers = #tpu.dot_dimension_numbers<[1], [0], [0], [1], [0, 0, 1, 1], [], []>} : vector<8x16xf32>, vector<16x64xf32>, vector<8x64xf32> -> vector<8x64xf32>
    %c2_83 = arith.constant 2 : index
    %c0_84 = arith.constant 0 : index
    %c0_85 = arith.constant 0 : index
    %98 = vector.load %arg42[%c2_83, %c0_84, %c0_85] : memref<3x64x64xf32, #tpu.memory_space<vmem>>, vector<1x64x64xf32>
    %99 = vector.shape_cast %98 : vector<1x64x64xf32> to vector<64x64xf32>
    %cst_86 = arith.constant dense<0.000000e+00> : vector<8x64xf32>
    %100 = tpu.matmul %97, %99, %cst_86 {dimension_numbers = #tpu.dot_dimension_numbers<[1], [0], [0], [1], [0, 0, 1, 1], [], []>} : vector<8x64xf32>, vector<64x64xf32>, vector<8x64xf32> -> vector<8x64xf32>
    %101 = arith.addf %94, %100 : vector<8x64xf32>
    %c0_87 = arith.constant 0 : index
    %c0_88 = arith.constant 0 : index
    %102 = vector.load %arg45[%c0_87, %c0_88] : memref<1x64xf32, #tpu.memory_space<vmem>>, vector<1x64xf32>
    %103 = vector.broadcast %102 : vector<1x64xf32> to vector<8x64xf32>
    %104 = arith.addf %101, %103 : vector<8x64xf32>
    %c0_89 = arith.constant 0 : index
    %c0_90 = arith.constant 0 : index
    %105 = vector.load %arg40[%c0_89, %c0_90] : memref<8x2xf32, #tpu.memory_space<vmem>>, vector<8x2xf32>
    %c0_91 = arith.constant 0 : index
    %c0_92 = arith.constant 0 : index
    %106 = vector.load %arg41[%c0_91, %c0_92] : memref<2x8xf32, #tpu.memory_space<vmem>>, vector<2x8xf32>
    %cst_93 = arith.constant dense<0.000000e+00> : vector<2x64xf32>
    %107 = tpu.matmul %106, %104, %cst_93 {dimension_numbers = #tpu.dot_dimension_numbers<[1], [0], [0], [1], [0, 0, 1, 1], [], []>} : vector<2x8xf32>, vector<8x64xf32>, vector<2x64xf32> -> vector<2x64xf32>
    %108 = arith.mulf %104, %104 : vector<8x64xf32>
    %cst_94 = arith.constant dense<0.000000e+00> : vector<2x64xf32>
    %109 = tpu.matmul %106, %108, %cst_94 {dimension_numbers = #tpu.dot_dimension_numbers<[1], [0], [0], [1], [0, 0, 1, 1], [], []>} : vector<2x8xf32>, vector<8x64xf32>, vector<2x64xf32> -> vector<2x64xf32>
    %cst_95 = arith.constant dense<0.000000e+00> : vector<2xf32>
    %110 = vector.multi_reduction <add>, %107, %cst_95 [1] : vector<2x64xf32> to vector<2xf32>
    %111 = vector.shape_cast %110 : vector<2xf32> to vector<2x1xf32>
    %cst_96 = arith.constant 3.906250e-03 : f32
    %112 = vector.broadcast %cst_96 : f32 to vector<2x1xf32>
    %113 = arith.mulf %111, %112 : vector<2x1xf32>
    %cst_97 = arith.constant dense<0.000000e+00> : vector<2xf32>
    %114 = vector.multi_reduction <add>, %109, %cst_97 [1] : vector<2x64xf32> to vector<2xf32>
    %115 = vector.shape_cast %114 : vector<2xf32> to vector<2x1xf32>
    %cst_98 = arith.constant 3.906250e-03 : f32
    %116 = vector.broadcast %cst_98 : f32 to vector<2x1xf32>
    %117 = arith.mulf %115, %116 : vector<2x1xf32>
    %118 = arith.mulf %113, %113 : vector<2x1xf32>
    %119 = arith.subf %117, %118 : vector<2x1xf32>
    %cst_99 = arith.constant 9.99999974E-6 : f32
    %120 = vector.broadcast %cst_99 : f32 to vector<2x1xf32>
    %121 = arith.addf %119, %120 : vector<2x1xf32>
    %122 = math.rsqrt %121 : vector<2x1xf32>
    %cst_100 = arith.constant dense<0.000000e+00> : vector<8x1xf32>
    %123 = tpu.matmul %105, %113, %cst_100 {dimension_numbers = #tpu.dot_dimension_numbers<[1], [0], [0], [1], [0, 0, 1, 1], [], []>} : vector<8x2xf32>, vector<2x1xf32>, vector<8x1xf32> -> vector<8x1xf32>
    %cst_101 = arith.constant dense<0.000000e+00> : vector<8x1xf32>
    %124 = tpu.matmul %105, %122, %cst_101 {dimension_numbers = #tpu.dot_dimension_numbers<[1], [0], [0], [1], [0, 0, 1, 1], [], []>} : vector<8x2xf32>, vector<2x1xf32>, vector<8x1xf32> -> vector<8x1xf32>
    %125 = vector.broadcast %123 : vector<8x1xf32> to vector<8x64xf32>
    %126 = arith.subf %104, %125 : vector<8x64xf32>
    %127 = vector.broadcast %124 : vector<8x1xf32> to vector<8x64xf32>
    %128 = arith.mulf %126, %127 : vector<8x64xf32>
    %c0_102 = arith.constant 0 : index
    %c0_103 = arith.constant 0 : index
    %129 = vector.load %arg47[%c0_102, %c0_103] : memref<1x64xf32, #tpu.memory_space<vmem>>, vector<1x64xf32>
    %130 = vector.broadcast %129 : vector<1x64xf32> to vector<8x64xf32>
    %131 = arith.mulf %128, %130 : vector<8x64xf32>
    %c0_104 = arith.constant 0 : index
    %c0_105 = arith.constant 0 : index
    %132 = vector.load %arg46[%c0_104, %c0_105] : memref<1x64xf32, #tpu.memory_space<vmem>>, vector<1x64xf32>
    %133 = vector.broadcast %132 : vector<1x64xf32> to vector<8x64xf32>
    %134 = arith.addf %131, %133 : vector<8x64xf32>
    %cst_106 = arith.constant 0.000000e+00 : f32
    %135 = vector.broadcast %cst_106 : f32 to vector<8x64xf32>
    %136 = arith.maximumf %134, %135 : vector<8x64xf32>
    %c0_107 = arith.constant 0 : index
    %c0_108 = arith.constant 0 : index
    %137 = vector.load %arg43[%c0_107, %c0_108] : memref<64x16xf32, #tpu.memory_space<vmem>>, vector<64x16xf32>
    %cst_109 = arith.constant dense<0.000000e+00> : vector<8x16xf32>
    %138 = tpu.matmul %136, %137, %cst_109 {dimension_numbers = #tpu.dot_dimension_numbers<[1], [0], [0], [1], [0, 0, 1, 1], [], []>} : vector<8x64xf32>, vector<64x16xf32>, vector<8x16xf32> -> vector<8x16xf32>
    %cst_110 = arith.constant dense<0.000000e+00> : vector<2x16xf32>
    %139 = tpu.matmul %106, %138, %cst_110 {dimension_numbers = #tpu.dot_dimension_numbers<[1], [0], [0], [1], [0, 0, 1, 1], [], []>} : vector<2x8xf32>, vector<8x16xf32>, vector<2x16xf32> -> vector<2x16xf32>
    %cst_111 = arith.constant 6.250000e-02 : f32
    %140 = vector.broadcast %cst_111 : f32 to vector<2x16xf32>
    %141 = arith.mulf %139, %140 : vector<2x16xf32>
    %c0_112 = arith.constant 0 : index
    %c0_113 = arith.constant 0 : index
    %142 = vector.load %arg50[%c0_112, %c0_113] : memref<16x4xf32, #tpu.memory_space<vmem>>, vector<16x4xf32>
    %cst_114 = arith.constant dense<0.000000e+00> : vector<2x4xf32>
    %143 = tpu.matmul %141, %142, %cst_114 {dimension_numbers = #tpu.dot_dimension_numbers<[1], [0], [0], [1], [0, 0, 1, 1], [], []>} : vector<2x16xf32>, vector<16x4xf32>, vector<2x4xf32> -> vector<2x4xf32>
    %c0_115 = arith.constant 0 : index
    %c0_116 = arith.constant 0 : index
    %144 = vector.load %arg48[%c0_115, %c0_116] : memref<1x4xf32, #tpu.memory_space<vmem>>, vector<1x4xf32>
    %145 = vector.broadcast %144 : vector<1x4xf32> to vector<2x4xf32>
    %146 = arith.addf %143, %145 : vector<2x4xf32>
    %cst_117 = arith.constant 0.000000e+00 : f32
    %147 = vector.broadcast %cst_117 : f32 to vector<2x4xf32>
    %148 = arith.maximumf %146, %147 : vector<2x4xf32>
    %c0_118 = arith.constant 0 : index
    %c0_119 = arith.constant 0 : index
    %149 = vector.load %arg51[%c0_118, %c0_119] : memref<4x16xf32, #tpu.memory_space<vmem>>, vector<4x16xf32>
    %cst_120 = arith.constant dense<0.000000e+00> : vector<2x16xf32>
    %150 = tpu.matmul %148, %149, %cst_120 {dimension_numbers = #tpu.dot_dimension_numbers<[1], [0], [0], [1], [0, 0, 1, 1], [], []>} : vector<2x4xf32>, vector<4x16xf32>, vector<2x16xf32> -> vector<2x16xf32>
    %c0_121 = arith.constant 0 : index
    %c0_122 = arith.constant 0 : index
    %151 = vector.load %arg49[%c0_121, %c0_122] : memref<1x16xf32, #tpu.memory_space<vmem>>, vector<1x16xf32>
    %152 = vector.broadcast %151 : vector<1x16xf32> to vector<2x16xf32>
    %153 = arith.addf %150, %152 : vector<2x16xf32>
    %154 = arith.negf %153 : vector<2x16xf32>
    %155 = math.exp %154 : vector<2x16xf32>
    %cst_123 = arith.constant 1.000000e+00 : f32
    %156 = vector.broadcast %cst_123 : f32 to vector<2x16xf32>
    %157 = arith.addf %156, %155 : vector<2x16xf32>
    %158 = arith.divf %156, %157 : vector<2x16xf32>
    %cst_124 = arith.constant dense<0.000000e+00> : vector<8x16xf32>
    %159 = tpu.matmul %105, %158, %cst_124 {dimension_numbers = #tpu.dot_dimension_numbers<[1], [0], [0], [1], [0, 0, 1, 1], [], []>} : vector<8x2xf32>, vector<2x16xf32>, vector<8x16xf32> -> vector<8x16xf32>
    %c0_125 = arith.constant 0 : index
    %c0_126 = arith.constant 0 : index
    %160 = vector.load %arg44[%c0_125, %c0_126] : memref<16x64xf32, #tpu.memory_space<vmem>>, vector<16x64xf32>
    %cst_127 = arith.constant dense<0.000000e+00> : vector<8x64xf32>
    %161 = tpu.matmul %159, %160, %cst_127 {dimension_numbers = #tpu.dot_dimension_numbers<[1], [0], [0], [1], [0, 0, 1, 1], [], []>} : vector<8x16xf32>, vector<16x64xf32>, vector<8x64xf32> -> vector<8x64xf32>
    %162 = arith.mulf %136, %161 : vector<8x64xf32>
    %c0_128 = arith.constant 0 : index
    %c0_129 = arith.constant 0 : index
    %c0_130 = arith.constant 0 : index
    %163 = vector.load %arg56[%c0_128, %c0_129, %c0_130] : memref<4x2x8xf32, #tpu.memory_space<vmem>>, vector<1x2x8xf32>
    %164 = vector.shape_cast %163 : vector<1x2x8xf32> to vector<2x8xf32>
    %cst_131 = arith.constant dense<0.000000e+00> : vector<2x64xf32>
    %165 = tpu.matmul %164, %162, %cst_131 {dimension_numbers = #tpu.dot_dimension_numbers<[1], [0], [0], [1], [0, 0, 1, 1], [], []>} : vector<2x8xf32>, vector<8x64xf32>, vector<2x64xf32> -> vector<2x64xf32>
    %c0_132 = arith.constant 0 : index
    %c0_133 = arith.constant 0 : index
    %c0_134 = arith.constant 0 : index
    %166 = vector.load %arg57[%c0_132, %c0_133, %c0_134] : memref<4x64x16xf32, #tpu.memory_space<vmem>>, vector<1x64x16xf32>
    %167 = vector.shape_cast %166 : vector<1x64x16xf32> to vector<64x16xf32>
    %cst_135 = arith.constant dense<0.000000e+00> : vector<2x16xf32>
    %168 = tpu.matmul %165, %167, %cst_135 {dimension_numbers = #tpu.dot_dimension_numbers<[1], [0], [0], [1], [0, 0, 1, 1], [], []>} : vector<2x64xf32>, vector<64x16xf32>, vector<2x16xf32> -> vector<2x16xf32>
    %c1_136 = arith.constant 1 : index
    %c0_137 = arith.constant 0 : index
    %c0_138 = arith.constant 0 : index
    %169 = vector.load %arg56[%c1_136, %c0_137, %c0_138] : memref<4x2x8xf32, #tpu.memory_space<vmem>>, vector<1x2x8xf32>
    %170 = vector.shape_cast %169 : vector<1x2x8xf32> to vector<2x8xf32>
    %cst_139 = arith.constant dense<0.000000e+00> : vector<2x64xf32>
    %171 = tpu.matmul %170, %162, %cst_139 {dimension_numbers = #tpu.dot_dimension_numbers<[1], [0], [0], [1], [0, 0, 1, 1], [], []>} : vector<2x8xf32>, vector<8x64xf32>, vector<2x64xf32> -> vector<2x64xf32>
    %c1_140 = arith.constant 1 : index
    %c0_141 = arith.constant 0 : index
    %c0_142 = arith.constant 0 : index
    %172 = vector.load %arg57[%c1_140, %c0_141, %c0_142] : memref<4x64x16xf32, #tpu.memory_space<vmem>>, vector<1x64x16xf32>
    %173 = vector.shape_cast %172 : vector<1x64x16xf32> to vector<64x16xf32>
    %cst_143 = arith.constant dense<0.000000e+00> : vector<2x16xf32>
    %174 = tpu.matmul %171, %173, %cst_143 {dimension_numbers = #tpu.dot_dimension_numbers<[1], [0], [0], [1], [0, 0, 1, 1], [], []>} : vector<2x64xf32>, vector<64x16xf32>, vector<2x16xf32> -> vector<2x16xf32>
    %175 = arith.addf %168, %174 : vector<2x16xf32>
    %c2_144 = arith.constant 2 : index
    %c0_145 = arith.constant 0 : index
    %c0_146 = arith.constant 0 : index
    %176 = vector.load %arg56[%c2_144, %c0_145, %c0_146] : memref<4x2x8xf32, #tpu.memory_space<vmem>>, vector<1x2x8xf32>
    %177 = vector.shape_cast %176 : vector<1x2x8xf32> to vector<2x8xf32>
    %cst_147 = arith.constant dense<0.000000e+00> : vector<2x64xf32>
    %178 = tpu.matmul %177, %162, %cst_147 {dimension_numbers = #tpu.dot_dimension_numbers<[1], [0], [0], [1], [0, 0, 1, 1], [], []>} : vector<2x8xf32>, vector<8x64xf32>, vector<2x64xf32> -> vector<2x64xf32>
    %c2_148 = arith.constant 2 : index
    %c0_149 = arith.constant 0 : index
    %c0_150 = arith.constant 0 : index
    %179 = vector.load %arg57[%c2_148, %c0_149, %c0_150] : memref<4x64x16xf32, #tpu.memory_space<vmem>>, vector<1x64x16xf32>
    %180 = vector.shape_cast %179 : vector<1x64x16xf32> to vector<64x16xf32>
    %cst_151 = arith.constant dense<0.000000e+00> : vector<2x16xf32>
    %181 = tpu.matmul %178, %180, %cst_151 {dimension_numbers = #tpu.dot_dimension_numbers<[1], [0], [0], [1], [0, 0, 1, 1], [], []>} : vector<2x64xf32>, vector<64x16xf32>, vector<2x16xf32> -> vector<2x16xf32>
    %182 = arith.addf %175, %181 : vector<2x16xf32>
    %c3 = arith.constant 3 : index
    %c0_152 = arith.constant 0 : index
    %c0_153 = arith.constant 0 : index
    %183 = vector.load %arg56[%c3, %c0_152, %c0_153] : memref<4x2x8xf32, #tpu.memory_space<vmem>>, vector<1x2x8xf32>
    %184 = vector.shape_cast %183 : vector<1x2x8xf32> to vector<2x8xf32>
    %cst_154 = arith.constant dense<0.000000e+00> : vector<2x64xf32>
    %185 = tpu.matmul %184, %162, %cst_154 {dimension_numbers = #tpu.dot_dimension_numbers<[1], [0], [0], [1], [0, 0, 1, 1], [], []>} : vector<2x8xf32>, vector<8x64xf32>, vector<2x64xf32> -> vector<2x64xf32>
    %c3_155 = arith.constant 3 : index
    %c0_156 = arith.constant 0 : index
    %c0_157 = arith.constant 0 : index
    %186 = vector.load %arg57[%c3_155, %c0_156, %c0_157] : memref<4x64x16xf32, #tpu.memory_space<vmem>>, vector<1x64x16xf32>
    %187 = vector.shape_cast %186 : vector<1x64x16xf32> to vector<64x16xf32>
    %cst_158 = arith.constant dense<0.000000e+00> : vector<2x16xf32>
    %188 = tpu.matmul %185, %187, %cst_158 {dimension_numbers = #tpu.dot_dimension_numbers<[1], [0], [0], [1], [0, 0, 1, 1], [], []>} : vector<2x64xf32>, vector<64x16xf32>, vector<2x16xf32> -> vector<2x16xf32>
    %189 = arith.addf %182, %188 : vector<2x16xf32>
    %c0_159 = arith.constant 0 : index
    %c0_160 = arith.constant 0 : index
    %190 = vector.load %arg58[%c0_159, %c0_160] : memref<1x16xf32, #tpu.memory_space<vmem>>, vector<1x16xf32>
    %191 = vector.broadcast %190 : vector<1x16xf32> to vector<2x16xf32>
    %192 = arith.addf %189, %191 : vector<2x16xf32>
    %193 = vector.extract_strided_slice %192 {offsets = [0, 0], sizes = [2, 8], strides = [1, 1]} : vector<2x16xf32> to vector<2x8xf32>
    %194 = vector.extract_strided_slice %192 {offsets = [0, 8], sizes = [2, 8], strides = [1, 1]} : vector<2x16xf32> to vector<2x8xf32>
    %cst_161 = arith.constant -1.000000e+01 : f32
    %cst_162 = arith.constant 1.000000e+01 : f32
    %195 = vector.broadcast %cst_161 : f32 to vector<2x8xf32>
    %196 = arith.maximumf %195, %194 : vector<2x8xf32>
    %197 = vector.broadcast %cst_162 : f32 to vector<2x8xf32>
    %198 = arith.minimumf %197, %196 : vector<2x8xf32>
    %c0_163 = arith.constant 0 : index
    %c0_164 = arith.constant 0 : index
    %199 = vector.load %arg52[%c0_163, %c0_164] : memref<2x8xf32, #tpu.memory_space<vmem>>, vector<2x8xf32>
    %cst_165 = arith.constant 5.000000e-01 : f32
    %200 = vector.broadcast %cst_165 : f32 to vector<2x8xf32>
    %201 = arith.mulf %200, %198 : vector<2x8xf32>
    %202 = math.exp %201 : vector<2x8xf32>
    %203 = arith.mulf %199, %202 : vector<2x8xf32>
    %204 = arith.addf %193, %203 : vector<2x8xf32>
    %c0_166 = arith.constant 0 : index
    %c0_167 = arith.constant 0 : index
    %205 = vector.load %arg64[%c0_166, %c0_167] : memref<2x8xf32, #tpu.memory_space<vmem>>, vector<2x8xf32>
    tpu.vector_store %arg64[%c0_166, %c0_167], %193 {strides = array<i32>} : memref<2x8xf32, #tpu.memory_space<vmem>>, vector<2x8xf32>,
    %c0_168 = arith.constant 0 : index
    %c0_169 = arith.constant 0 : index
    %206 = vector.load %arg65[%c0_168, %c0_169] : memref<2x8xf32, #tpu.memory_space<vmem>>, vector<2x8xf32>
    tpu.vector_store %arg65[%c0_168, %c0_169], %198 {strides = array<i32>} : memref<2x8xf32, #tpu.memory_space<vmem>>, vector<2x8xf32>,
    %c0_170 = arith.constant 0 : index
    %c0_171 = arith.constant 0 : index
    %207 = vector.load %arg66[%c0_170, %c0_171] : memref<2x8xf32, #tpu.memory_space<vmem>>, vector<2x8xf32>
    tpu.vector_store %arg66[%c0_170, %c0_171], %204 {strides = array<i32>} : memref<2x8xf32, #tpu.memory_space<vmem>>, vector<2x8xf32>,
    %c0_172 = arith.constant 0 : index
    %c0_173 = arith.constant 0 : index
    %c0_174 = arith.constant 0 : index
    %208 = vector.load %arg53[%c0_172, %c0_173, %c0_174] : memref<4x8x2xf32, #tpu.memory_space<vmem>>, vector<1x8x2xf32>
    %209 = vector.shape_cast %208 : vector<1x8x2xf32> to vector<8x2xf32>
    %cst_175 = arith.constant dense<0.000000e+00> : vector<8x8xf32>
    %210 = tpu.matmul %209, %204, %cst_175 {dimension_numbers = #tpu.dot_dimension_numbers<[1], [0], [0], [1], [0, 0, 1, 1], [], []>} : vector<8x2xf32>, vector<2x8xf32>, vector<8x8xf32> -> vector<8x8xf32>
    %c0_176 = arith.constant 0 : index
    %c0_177 = arith.constant 0 : index
    %c0_178 = arith.constant 0 : index
    %211 = vector.load %arg54[%c0_176, %c0_177, %c0_178] : memref<4x8x64xf32, #tpu.memory_space<vmem>>, vector<1x8x64xf32>
    %212 = vector.shape_cast %211 : vector<1x8x64xf32> to vector<8x64xf32>
    %cst_179 = arith.constant dense<0.000000e+00> : vector<8x64xf32>
    %213 = tpu.matmul %210, %212, %cst_179 {dimension_numbers = #tpu.dot_dimension_numbers<[1], [0], [0], [1], [0, 0, 1, 1], [], []>} : vector<8x8xf32>, vector<8x64xf32>, vector<8x64xf32> -> vector<8x64xf32>
    %c1_180 = arith.constant 1 : index
    %c0_181 = arith.constant 0 : index
    %c0_182 = arith.constant 0 : index
    %214 = vector.load %arg53[%c1_180, %c0_181, %c0_182] : memref<4x8x2xf32, #tpu.memory_space<vmem>>, vector<1x8x2xf32>
    %215 = vector.shape_cast %214 : vector<1x8x2xf32> to vector<8x2xf32>
    %cst_183 = arith.constant dense<0.000000e+00> : vector<8x8xf32>
    %216 = tpu.matmul %215, %204, %cst_183 {dimension_numbers = #tpu.dot_dimension_numbers<[1], [0], [0], [1], [0, 0, 1, 1], [], []>} : vector<8x2xf32>, vector<2x8xf32>, vector<8x8xf32> -> vector<8x8xf32>
    %c1_184 = arith.constant 1 : index
    %c0_185 = arith.constant 0 : index
    %c0_186 = arith.constant 0 : index
    %217 = vector.load %arg54[%c1_184, %c0_185, %c0_186] : memref<4x8x64xf32, #tpu.memory_space<vmem>>, vector<1x8x64xf32>
    %218 = vector.shape_cast %217 : vector<1x8x64xf32> to vector<8x64xf32>
    %cst_187 = arith.constant dense<0.000000e+00> : vector<8x64xf32>
    %219 = tpu.matmul %216, %218, %cst_187 {dimension_numbers = #tpu.dot_dimension_numbers<[1], [0], [0], [1], [0, 0, 1, 1], [], []>} : vector<8x8xf32>, vector<8x64xf32>, vector<8x64xf32> -> vector<8x64xf32>
    %220 = arith.addf %213, %219 : vector<8x64xf32>
    %c2_188 = arith.constant 2 : index
    %c0_189 = arith.constant 0 : index
    %c0_190 = arith.constant 0 : index
    %221 = vector.load %arg53[%c2_188, %c0_189, %c0_190] : memref<4x8x2xf32, #tpu.memory_space<vmem>>, vector<1x8x2xf32>
    %222 = vector.shape_cast %221 : vector<1x8x2xf32> to vector<8x2xf32>
    %cst_191 = arith.constant dense<0.000000e+00> : vector<8x8xf32>
    %223 = tpu.matmul %222, %204, %cst_191 {dimension_numbers = #tpu.dot_dimension_numbers<[1], [0], [0], [1], [0, 0, 1, 1], [], []>} : vector<8x2xf32>, vector<2x8xf32>, vector<8x8xf32> -> vector<8x8xf32>
    %c2_192 = arith.constant 2 : index
    %c0_193 = arith.constant 0 : index
    %c0_194 = arith.constant 0 : index
    %224 = vector.load %arg54[%c2_192, %c0_193, %c0_194] : memref<4x8x64xf32, #tpu.memory_space<vmem>>, vector<1x8x64xf32>
    %225 = vector.shape_cast %224 : vector<1x8x64xf32> to vector<8x64xf32>
    %cst_195 = arith.constant dense<0.000000e+00> : vector<8x64xf32>
    %226 = tpu.matmul %223, %225, %cst_195 {dimension_numbers = #tpu.dot_dimension_numbers<[1], [0], [0], [1], [0, 0, 1, 1], [], []>} : vector<8x8xf32>, vector<8x64xf32>, vector<8x64xf32> -> vector<8x64xf32>
    %227 = arith.addf %220, %226 : vector<8x64xf32>
    %c3_196 = arith.constant 3 : index
    %c0_197 = arith.constant 0 : index
    %c0_198 = arith.constant 0 : index
    %228 = vector.load %arg53[%c3_196, %c0_197, %c0_198] : memref<4x8x2xf32, #tpu.memory_space<vmem>>, vector<1x8x2xf32>
    %229 = vector.shape_cast %228 : vector<1x8x2xf32> to vector<8x2xf32>
    %cst_199 = arith.constant dense<0.000000e+00> : vector<8x8xf32>
    %230 = tpu.matmul %229, %204, %cst_199 {dimension_numbers = #tpu.dot_dimension_numbers<[1], [0], [0], [1], [0, 0, 1, 1], [], []>} : vector<8x2xf32>, vector<2x8xf32>, vector<8x8xf32> -> vector<8x8xf32>
    %c3_200 = arith.constant 3 : index
    %c0_201 = arith.constant 0 : index
    %c0_202 = arith.constant 0 : index
    %231 = vector.load %arg54[%c3_200, %c0_201, %c0_202] : memref<4x8x64xf32, #tpu.memory_space<vmem>>, vector<1x8x64xf32>
    %232 = vector.shape_cast %231 : vector<1x8x64xf32> to vector<8x64xf32>
    %cst_203 = arith.constant dense<0.000000e+00> : vector<8x64xf32>
    %233 = tpu.matmul %230, %232, %cst_203 {dimension_numbers = #tpu.dot_dimension_numbers<[1], [0], [0], [1], [0, 0, 1, 1], [], []>} : vector<8x8xf32>, vector<8x64xf32>, vector<8x64xf32> -> vector<8x64xf32>
    %234 = arith.addf %227, %233 : vector<8x64xf32>
    %c0_204 = arith.constant 0 : index
    %c0_205 = arith.constant 0 : index
    %235 = vector.load %arg55[%c0_204, %c0_205] : memref<8x64xf32, #tpu.memory_space<vmem>>, vector<8x64xf32>
    %236 = arith.addf %234, %235 : vector<8x64xf32>
    %c0_206 = arith.constant 0 : index
    %c0_207 = arith.constant 0 : index
    %c0_208 = arith.constant 0 : index
    %237 = vector.load %arg0[%c0_206, %c0_207, %c0_208] : memref<4x16x8xf32, #tpu.memory_space<vmem>>, vector<1x16x8xf32>
    %238 = vector.shape_cast %237 : vector<1x16x8xf32> to vector<16x8xf32>
    %cst_209 = arith.constant dense<0.000000e+00> : vector<16x64xf32>
    %239 = tpu.matmul %238, %236, %cst_209 {dimension_numbers = #tpu.dot_dimension_numbers<[1], [0], [0], [1], [0, 0, 1, 1], [], []>} : vector<16x8xf32>, vector<8x64xf32>, vector<16x64xf32> -> vector<16x64xf32>
    %c0_210 = arith.constant 0 : index
    %c0_211 = arith.constant 0 : index
    %c0_212 = arith.constant 0 : index
    %240 = vector.load %arg3[%c0_210, %c0_211, %c0_212] : memref<4x64x64xf32, #tpu.memory_space<vmem>>, vector<1x64x64xf32>
    %241 = vector.shape_cast %240 : vector<1x64x64xf32> to vector<64x64xf32>
    %cst_213 = arith.constant dense<0.000000e+00> : vector<16x64xf32>
    %242 = tpu.matmul %239, %241, %cst_213 {dimension_numbers = #tpu.dot_dimension_numbers<[1], [0], [0], [1], [0, 0, 1, 1], [], []>} : vector<16x64xf32>, vector<64x64xf32>, vector<16x64xf32> -> vector<16x64xf32>
    %c1_214 = arith.constant 1 : index
    %c0_215 = arith.constant 0 : index
    %c0_216 = arith.constant 0 : index
    %243 = vector.load %arg0[%c1_214, %c0_215, %c0_216] : memref<4x16x8xf32, #tpu.memory_space<vmem>>, vector<1x16x8xf32>
    %244 = vector.shape_cast %243 : vector<1x16x8xf32> to vector<16x8xf32>
    %cst_217 = arith.constant dense<0.000000e+00> : vector<16x64xf32>
    %245 = tpu.matmul %244, %236, %cst_217 {dimension_numbers = #tpu.dot_dimension_numbers<[1], [0], [0], [1], [0, 0, 1, 1], [], []>} : vector<16x8xf32>, vector<8x64xf32>, vector<16x64xf32> -> vector<16x64xf32>
    %c1_218 = arith.constant 1 : index
    %c0_219 = arith.constant 0 : index
    %c0_220 = arith.constant 0 : index
    %246 = vector.load %arg3[%c1_218, %c0_219, %c0_220] : memref<4x64x64xf32, #tpu.memory_space<vmem>>, vector<1x64x64xf32>
    %247 = vector.shape_cast %246 : vector<1x64x64xf32> to vector<64x64xf32>
    %cst_221 = arith.constant dense<0.000000e+00> : vector<16x64xf32>
    %248 = tpu.matmul %245, %247, %cst_221 {dimension_numbers = #tpu.dot_dimension_numbers<[1], [0], [0], [1], [0, 0, 1, 1], [], []>} : vector<16x64xf32>, vector<64x64xf32>, vector<16x64xf32> -> vector<16x64xf32>
    %249 = arith.addf %242, %248 : vector<16x64xf32>
    %c2_222 = arith.constant 2 : index
    %c0_223 = arith.constant 0 : index
    %c0_224 = arith.constant 0 : index
    %250 = vector.load %arg0[%c2_222, %c0_223, %c0_224] : memref<4x16x8xf32, #tpu.memory_space<vmem>>, vector<1x16x8xf32>
    %251 = vector.shape_cast %250 : vector<1x16x8xf32> to vector<16x8xf32>
    %cst_225 = arith.constant dense<0.000000e+00> : vector<16x64xf32>
    %252 = tpu.matmul %251, %236, %cst_225 {dimension_numbers = #tpu.dot_dimension_numbers<[1], [0], [0], [1], [0, 0, 1, 1], [], []>} : vector<16x8xf32>, vector<8x64xf32>, vector<16x64xf32> -> vector<16x64xf32>
    %c2_226 = arith.constant 2 : index
    %c0_227 = arith.constant 0 : index
    %c0_228 = arith.constant 0 : index
    %253 = vector.load %arg3[%c2_226, %c0_227, %c0_228] : memref<4x64x64xf32, #tpu.memory_space<vmem>>, vector<1x64x64xf32>
    %254 = vector.shape_cast %253 : vector<1x64x64xf32> to vector<64x64xf32>
    %cst_229 = arith.constant dense<0.000000e+00> : vector<16x64xf32>
    %255 = tpu.matmul %252, %254, %cst_229 {dimension_numbers = #tpu.dot_dimension_numbers<[1], [0], [0], [1], [0, 0, 1, 1], [], []>} : vector<16x64xf32>, vector<64x64xf32>, vector<16x64xf32> -> vector<16x64xf32>
    %256 = arith.addf %249, %255 : vector<16x64xf32>
    %c3_230 = arith.constant 3 : index
    %c0_231 = arith.constant 0 : index
    %c0_232 = arith.constant 0 : index
    %257 = vector.load %arg0[%c3_230, %c0_231, %c0_232] : memref<4x16x8xf32, #tpu.memory_space<vmem>>, vector<1x16x8xf32>
    %258 = vector.shape_cast %257 : vector<1x16x8xf32> to vector<16x8xf32>
    %cst_233 = arith.constant dense<0.000000e+00> : vector<16x64xf32>
    %259 = tpu.matmul %258, %236, %cst_233 {dimension_numbers = #tpu.dot_dimension_numbers<[1], [0], [0], [1], [0, 0, 1, 1], [], []>} : vector<16x8xf32>, vector<8x64xf32>, vector<16x64xf32> -> vector<16x64xf32>
    %c3_234 = arith.constant 3 : index
    %c0_235 = arith.constant 0 : index
    %c0_236 = arith.constant 0 : index
    %260 = vector.load %arg3[%c3_234, %c0_235, %c0_236] : memref<4x64x64xf32, #tpu.memory_space<vmem>>, vector<1x64x64xf32>
    %261 = vector.shape_cast %260 : vector<1x64x64xf32> to vector<64x64xf32>
    %cst_237 = arith.constant dense<0.000000e+00> : vector<16x64xf32>
    %262 = tpu.matmul %259, %261, %cst_237 {dimension_numbers = #tpu.dot_dimension_numbers<[1], [0], [0], [1], [0, 0, 1, 1], [], []>} : vector<16x64xf32>, vector<64x64xf32>, vector<16x64xf32> -> vector<16x64xf32>
    %263 = arith.addf %256, %262 : vector<16x64xf32>
    %c0_238 = arith.constant 0 : index
    %c0_239 = arith.constant 0 : index
    %264 = vector.load %arg6[%c0_238, %c0_239] : memref<1x64xf32, #tpu.memory_space<vmem>>, vector<1x64xf32>
    %265 = vector.broadcast %264 : vector<1x64xf32> to vector<16x64xf32>
    %266 = arith.addf %263, %265 : vector<16x64xf32>
    %c0_240 = arith.constant 0 : index
    %c0_241 = arith.constant 0 : index
    %267 = vector.load %arg1[%c0_240, %c0_241] : memref<16x2xf32, #tpu.memory_space<vmem>>, vector<16x2xf32>
    %c0_242 = arith.constant 0 : index
    %c0_243 = arith.constant 0 : index
    %268 = vector.load %arg2[%c0_242, %c0_243] : memref<2x16xf32, #tpu.memory_space<vmem>>, vector<2x16xf32>
    %cst_244 = arith.constant dense<0.000000e+00> : vector<2x64xf32>
    %269 = tpu.matmul %268, %266, %cst_244 {dimension_numbers = #tpu.dot_dimension_numbers<[1], [0], [0], [1], [0, 0, 1, 1], [], []>} : vector<2x16xf32>, vector<16x64xf32>, vector<2x64xf32> -> vector<2x64xf32>
    %270 = arith.mulf %266, %266 : vector<16x64xf32>
    %cst_245 = arith.constant dense<0.000000e+00> : vector<2x64xf32>
    %271 = tpu.matmul %268, %270, %cst_245 {dimension_numbers = #tpu.dot_dimension_numbers<[1], [0], [0], [1], [0, 0, 1, 1], [], []>} : vector<2x16xf32>, vector<16x64xf32>, vector<2x64xf32> -> vector<2x64xf32>
    %cst_246 = arith.constant dense<0.000000e+00> : vector<2xf32>
    %272 = vector.multi_reduction <add>, %269, %cst_246 [1] : vector<2x64xf32> to vector<2xf32>
    %273 = vector.shape_cast %272 : vector<2xf32> to vector<2x1xf32>
    %cst_247 = arith.constant 0.001953125 : f32
    %274 = vector.broadcast %cst_247 : f32 to vector<2x1xf32>
    %275 = arith.mulf %273, %274 : vector<2x1xf32>
    %cst_248 = arith.constant dense<0.000000e+00> : vector<2xf32>
    %276 = vector.multi_reduction <add>, %271, %cst_248 [1] : vector<2x64xf32> to vector<2xf32>
    %277 = vector.shape_cast %276 : vector<2xf32> to vector<2x1xf32>
    %cst_249 = arith.constant 0.001953125 : f32
    %278 = vector.broadcast %cst_249 : f32 to vector<2x1xf32>
    %279 = arith.mulf %277, %278 : vector<2x1xf32>
    %280 = arith.mulf %275, %275 : vector<2x1xf32>
    %281 = arith.subf %279, %280 : vector<2x1xf32>
    %cst_250 = arith.constant 9.99999974E-6 : f32
    %282 = vector.broadcast %cst_250 : f32 to vector<2x1xf32>
    %283 = arith.addf %281, %282 : vector<2x1xf32>
    %284 = math.rsqrt %283 : vector<2x1xf32>
    %cst_251 = arith.constant dense<0.000000e+00> : vector<16x1xf32>
    %285 = tpu.matmul %267, %275, %cst_251 {dimension_numbers = #tpu.dot_dimension_numbers<[1], [0], [0], [1], [0, 0, 1, 1], [], []>} : vector<16x2xf32>, vector<2x1xf32>, vector<16x1xf32> -> vector<16x1xf32>
    %cst_252 = arith.constant dense<0.000000e+00> : vector<16x1xf32>
    %286 = tpu.matmul %267, %284, %cst_252 {dimension_numbers = #tpu.dot_dimension_numbers<[1], [0], [0], [1], [0, 0, 1, 1], [], []>} : vector<16x2xf32>, vector<2x1xf32>, vector<16x1xf32> -> vector<16x1xf32>
    %287 = vector.broadcast %285 : vector<16x1xf32> to vector<16x64xf32>
    %288 = arith.subf %266, %287 : vector<16x64xf32>
    %289 = vector.broadcast %286 : vector<16x1xf32> to vector<16x64xf32>
    %290 = arith.mulf %288, %289 : vector<16x64xf32>
    %c0_253 = arith.constant 0 : index
    %c0_254 = arith.constant 0 : index
    %291 = vector.load %arg8[%c0_253, %c0_254] : memref<1x64xf32, #tpu.memory_space<vmem>>, vector<1x64xf32>
    %292 = vector.broadcast %291 : vector<1x64xf32> to vector<16x64xf32>
    %293 = arith.mulf %290, %292 : vector<16x64xf32>
    %c0_255 = arith.constant 0 : index
    %c0_256 = arith.constant 0 : index
    %294 = vector.load %arg7[%c0_255, %c0_256] : memref<1x64xf32, #tpu.memory_space<vmem>>, vector<1x64xf32>
    %295 = vector.broadcast %294 : vector<1x64xf32> to vector<16x64xf32>
    %296 = arith.addf %293, %295 : vector<16x64xf32>
    %cst_257 = arith.constant 0.000000e+00 : f32
    %297 = vector.broadcast %cst_257 : f32 to vector<16x64xf32>
    %298 = arith.maximumf %296, %297 : vector<16x64xf32>
    %c0_258 = arith.constant 0 : index
    %c0_259 = arith.constant 0 : index
    %299 = vector.load %arg4[%c0_258, %c0_259] : memref<64x8xf32, #tpu.memory_space<vmem>>, vector<64x8xf32>
    %cst_260 = arith.constant dense<0.000000e+00> : vector<16x8xf32>
    %300 = tpu.matmul %298, %299, %cst_260 {dimension_numbers = #tpu.dot_dimension_numbers<[1], [0], [0], [1], [0, 0, 1, 1], [], []>} : vector<16x64xf32>, vector<64x8xf32>, vector<16x8xf32> -> vector<16x8xf32>
    %cst_261 = arith.constant dense<0.000000e+00> : vector<2x8xf32>
    %301 = tpu.matmul %268, %300, %cst_261 {dimension_numbers = #tpu.dot_dimension_numbers<[1], [0], [0], [1], [0, 0, 1, 1], [], []>} : vector<2x16xf32>, vector<16x8xf32>, vector<2x8xf32> -> vector<2x8xf32>
    %cst_262 = arith.constant 1.562500e-02 : f32
    %302 = vector.broadcast %cst_262 : f32 to vector<2x8xf32>
    %303 = arith.mulf %301, %302 : vector<2x8xf32>
    %c0_263 = arith.constant 0 : index
    %c0_264 = arith.constant 0 : index
    %304 = vector.load %arg11[%c0_263, %c0_264] : memref<8x2xf32, #tpu.memory_space<vmem>>, vector<8x2xf32>
    %cst_265 = arith.constant dense<0.000000e+00> : vector<2x2xf32>
    %305 = tpu.matmul %303, %304, %cst_265 {dimension_numbers = #tpu.dot_dimension_numbers<[1], [0], [0], [1], [0, 0, 1, 1], [], []>} : vector<2x8xf32>, vector<8x2xf32>, vector<2x2xf32> -> vector<2x2xf32>
    %c0_266 = arith.constant 0 : index
    %c0_267 = arith.constant 0 : index
    %306 = vector.load %arg9[%c0_266, %c0_267] : memref<1x2xf32, #tpu.memory_space<vmem>>, vector<1x2xf32>
    %307 = vector.broadcast %306 : vector<1x2xf32> to vector<2x2xf32>
    %308 = arith.addf %305, %307 : vector<2x2xf32>
    %cst_268 = arith.constant 0.000000e+00 : f32
    %309 = vector.broadcast %cst_268 : f32 to vector<2x2xf32>
    %310 = arith.maximumf %308, %309 : vector<2x2xf32>
    %c0_269 = arith.constant 0 : index
    %c0_270 = arith.constant 0 : index
    %311 = vector.load %arg12[%c0_269, %c0_270] : memref<2x8xf32, #tpu.memory_space<vmem>>, vector<2x8xf32>
    %cst_271 = arith.constant dense<0.000000e+00> : vector<2x8xf32>
    %312 = tpu.matmul %310, %311, %cst_271 {dimension_numbers = #tpu.dot_dimension_numbers<[1], [0], [0], [1], [0, 0, 1, 1], [], []>} : vector<2x2xf32>, vector<2x8xf32>, vector<2x8xf32> -> vector<2x8xf32>
    %c0_272 = arith.constant 0 : index
    %c0_273 = arith.constant 0 : index
    %313 = vector.load %arg10[%c0_272, %c0_273] : memref<1x8xf32, #tpu.memory_space<vmem>>, vector<1x8xf32>
    %314 = vector.broadcast %313 : vector<1x8xf32> to vector<2x8xf32>
    %315 = arith.addf %312, %314 : vector<2x8xf32>
    %316 = arith.negf %315 : vector<2x8xf32>
    %317 = math.exp %316 : vector<2x8xf32>
    %cst_274 = arith.constant 1.000000e+00 : f32
    %318 = vector.broadcast %cst_274 : f32 to vector<2x8xf32>
    %319 = arith.addf %318, %317 : vector<2x8xf32>
    %320 = arith.divf %318, %319 : vector<2x8xf32>
    %cst_275 = arith.constant dense<0.000000e+00> : vector<16x8xf32>
    %321 = tpu.matmul %267, %320, %cst_275 {dimension_numbers = #tpu.dot_dimension_numbers<[1], [0], [0], [1], [0, 0, 1, 1], [], []>} : vector<16x2xf32>, vector<2x8xf32>, vector<16x8xf32> -> vector<16x8xf32>
    %c0_276 = arith.constant 0 : index
    %c0_277 = arith.constant 0 : index
    %322 = vector.load %arg5[%c0_276, %c0_277] : memref<8x64xf32, #tpu.memory_space<vmem>>, vector<8x64xf32>
    %cst_278 = arith.constant dense<0.000000e+00> : vector<16x64xf32>
    %323 = tpu.matmul %321, %322, %cst_278 {dimension_numbers = #tpu.dot_dimension_numbers<[1], [0], [0], [1], [0, 0, 1, 1], [], []>} : vector<16x8xf32>, vector<8x64xf32>, vector<16x64xf32> -> vector<16x64xf32>
    %324 = arith.mulf %298, %323 : vector<16x64xf32>
    %c0_279 = arith.constant 0 : index
    %c0_280 = arith.constant 0 : index
    %c0_281 = arith.constant 0 : index
    %325 = vector.load %arg13[%c0_279, %c0_280, %c0_281] : memref<4x32x16xf32, #tpu.memory_space<vmem>>, vector<1x32x16xf32>
    %326 = vector.shape_cast %325 : vector<1x32x16xf32> to vector<32x16xf32>
    %cst_282 = arith.constant dense<0.000000e+00> : vector<32x64xf32>
    %327 = tpu.matmul %326, %324, %cst_282 {dimension_numbers = #tpu.dot_dimension_numbers<[1], [0], [0], [1], [0, 0, 1, 1], [], []>} : vector<32x16xf32>, vector<16x64xf32>, vector<32x64xf32> -> vector<32x64xf32>
    %c0_283 = arith.constant 0 : index
    %c0_284 = arith.constant 0 : index
    %c0_285 = arith.constant 0 : index
    %328 = vector.load %arg16[%c0_283, %c0_284, %c0_285] : memref<4x64x128xf32, #tpu.memory_space<vmem>>, vector<1x64x128xf32>
    %329 = vector.shape_cast %328 : vector<1x64x128xf32> to vector<64x128xf32>
    %cst_286 = arith.constant dense<0.000000e+00> : vector<32x128xf32>
    %330 = tpu.matmul %327, %329, %cst_286 {dimension_numbers = #tpu.dot_dimension_numbers<[1], [0], [0], [1], [0, 0, 1, 1], [], []>} : vector<32x64xf32>, vector<64x128xf32>, vector<32x128xf32> -> vector<32x128xf32>
    %c1_287 = arith.constant 1 : index
    %c0_288 = arith.constant 0 : index
    %c0_289 = arith.constant 0 : index
    %331 = vector.load %arg13[%c1_287, %c0_288, %c0_289] : memref<4x32x16xf32, #tpu.memory_space<vmem>>, vector<1x32x16xf32>
    %332 = vector.shape_cast %331 : vector<1x32x16xf32> to vector<32x16xf32>
    %cst_290 = arith.constant dense<0.000000e+00> : vector<32x64xf32>
    %333 = tpu.matmul %332, %324, %cst_290 {dimension_numbers = #tpu.dot_dimension_numbers<[1], [0], [0], [1], [0, 0, 1, 1], [], []>} : vector<32x16xf32>, vector<16x64xf32>, vector<32x64xf32> -> vector<32x64xf32>
    %c1_291 = arith.constant 1 : index
    %c0_292 = arith.constant 0 : index
    %c0_293 = arith.constant 0 : index
    %334 = vector.load %arg16[%c1_291, %c0_292, %c0_293] : memref<4x64x128xf32, #tpu.memory_space<vmem>>, vector<1x64x128xf32>
    %335 = vector.shape_cast %334 : vector<1x64x128xf32> to vector<64x128xf32>
    %cst_294 = arith.constant dense<0.000000e+00> : vector<32x128xf32>
    %336 = tpu.matmul %333, %335, %cst_294 {dimension_numbers = #tpu.dot_dimension_numbers<[1], [0], [0], [1], [0, 0, 1, 1], [], []>} : vector<32x64xf32>, vector<64x128xf32>, vector<32x128xf32> -> vector<32x128xf32>
    %337 = arith.addf %330, %336 : vector<32x128xf32>
    %c2_295 = arith.constant 2 : index
    %c0_296 = arith.constant 0 : index
    %c0_297 = arith.constant 0 : index
    %338 = vector.load %arg13[%c2_295, %c0_296, %c0_297] : memref<4x32x16xf32, #tpu.memory_space<vmem>>, vector<1x32x16xf32>
    %339 = vector.shape_cast %338 : vector<1x32x16xf32> to vector<32x16xf32>
    %cst_298 = arith.constant dense<0.000000e+00> : vector<32x64xf32>
    %340 = tpu.matmul %339, %324, %cst_298 {dimension_numbers = #tpu.dot_dimension_numbers<[1], [0], [0], [1], [0, 0, 1, 1], [], []>} : vector<32x16xf32>, vector<16x64xf32>, vector<32x64xf32> -> vector<32x64xf32>
    %c2_299 = arith.constant 2 : index
    %c0_300 = arith.constant 0 : index
    %c0_301 = arith.constant 0 : index
    %341 = vector.load %arg16[%c2_299, %c0_300, %c0_301] : memref<4x64x128xf32, #tpu.memory_space<vmem>>, vector<1x64x128xf32>
    %342 = vector.shape_cast %341 : vector<1x64x128xf32> to vector<64x128xf32>
    %cst_302 = arith.constant dense<0.000000e+00> : vector<32x128xf32>
    %343 = tpu.matmul %340, %342, %cst_302 {dimension_numbers = #tpu.dot_dimension_numbers<[1], [0], [0], [1], [0, 0, 1, 1], [], []>} : vector<32x64xf32>, vector<64x128xf32>, vector<32x128xf32> -> vector<32x128xf32>
    %344 = arith.addf %337, %343 : vector<32x128xf32>
    %c3_303 = arith.constant 3 : index
    %c0_304 = arith.constant 0 : index
    %c0_305 = arith.constant 0 : index
    %345 = vector.load %arg13[%c3_303, %c0_304, %c0_305] : memref<4x32x16xf32, #tpu.memory_space<vmem>>, vector<1x32x16xf32>
    %346 = vector.shape_cast %345 : vector<1x32x16xf32> to vector<32x16xf32>
    %cst_306 = arith.constant dense<0.000000e+00> : vector<32x64xf32>
    %347 = tpu.matmul %346, %324, %cst_306 {dimension_numbers = #tpu.dot_dimension_numbers<[1], [0], [0], [1], [0, 0, 1, 1], [], []>} : vector<32x16xf32>, vector<16x64xf32>, vector<32x64xf32> -> vector<32x64xf32>
    %c3_307 = arith.constant 3 : index
    %c0_308 = arith.constant 0 : index
    %c0_309 = arith.constant 0 : index
    %348 = vector.load %arg16[%c3_307, %c0_308, %c0_309] : memref<4x64x128xf32, #tpu.memory_space<vmem>>, vector<1x64x128xf32>
    %349 = vector.shape_cast %348 : vector<1x64x128xf32> to vector<64x128xf32>
    %cst_310 = arith.constant dense<0.000000e+00> : vector<32x128xf32>
    %350 = tpu.matmul %347, %349, %cst_310 {dimension_numbers = #tpu.dot_dimension_numbers<[1], [0], [0], [1], [0, 0, 1, 1], [], []>} : vector<32x64xf32>, vector<64x128xf32>, vector<32x128xf32> -> vector<32x128xf32>
    %351 = arith.addf %344, %350 : vector<32x128xf32>
    %c0_311 = arith.constant 0 : index
    %c0_312 = arith.constant 0 : index
    %352 = vector.load %arg19[%c0_311, %c0_312] : memref<1x128xf32, #tpu.memory_space<vmem>>, vector<1x128xf32>
    %353 = vector.broadcast %352 : vector<1x128xf32> to vector<32x128xf32>
    %354 = arith.addf %351, %353 : vector<32x128xf32>
    %c0_313 = arith.constant 0 : index
    %c0_314 = arith.constant 0 : index
    %355 = vector.load %arg14[%c0_313, %c0_314] : memref<32x2xf32, #tpu.memory_space<vmem>>, vector<32x2xf32>
    %c0_315 = arith.constant 0 : index
    %c0_316 = arith.constant 0 : index
    %356 = vector.load %arg15[%c0_315, %c0_316] : memref<2x32xf32, #tpu.memory_space<vmem>>, vector<2x32xf32>
    %cst_317 = arith.constant dense<0.000000e+00> : vector<2x128xf32>
    %357 = tpu.matmul %356, %354, %cst_317 {dimension_numbers = #tpu.dot_dimension_numbers<[1], [0], [0], [1], [0, 0, 1, 1], [], []>} : vector<2x32xf32>, vector<32x128xf32>, vector<2x128xf32> -> vector<2x128xf32>
    %358 = arith.mulf %354, %354 : vector<32x128xf32>
    %cst_318 = arith.constant dense<0.000000e+00> : vector<2x128xf32>
    %359 = tpu.matmul %356, %358, %cst_318 {dimension_numbers = #tpu.dot_dimension_numbers<[1], [0], [0], [1], [0, 0, 1, 1], [], []>} : vector<2x32xf32>, vector<32x128xf32>, vector<2x128xf32> -> vector<2x128xf32>
    %cst_319 = arith.constant dense<0.000000e+00> : vector<2xf32>
    %360 = vector.multi_reduction <add>, %357, %cst_319 [1] : vector<2x128xf32> to vector<2xf32>
    %361 = vector.shape_cast %360 : vector<2xf32> to vector<2x1xf32>
    %cst_320 = arith.constant 4.8828125E-4 : f32
    %362 = vector.broadcast %cst_320 : f32 to vector<2x1xf32>
    %363 = arith.mulf %361, %362 : vector<2x1xf32>
    %cst_321 = arith.constant dense<0.000000e+00> : vector<2xf32>
    %364 = vector.multi_reduction <add>, %359, %cst_321 [1] : vector<2x128xf32> to vector<2xf32>
    %365 = vector.shape_cast %364 : vector<2xf32> to vector<2x1xf32>
    %cst_322 = arith.constant 4.8828125E-4 : f32
    %366 = vector.broadcast %cst_322 : f32 to vector<2x1xf32>
    %367 = arith.mulf %365, %366 : vector<2x1xf32>
    %368 = arith.mulf %363, %363 : vector<2x1xf32>
    %369 = arith.subf %367, %368 : vector<2x1xf32>
    %cst_323 = arith.constant 9.99999974E-6 : f32
    %370 = vector.broadcast %cst_323 : f32 to vector<2x1xf32>
    %371 = arith.addf %369, %370 : vector<2x1xf32>
    %372 = math.rsqrt %371 : vector<2x1xf32>
    %cst_324 = arith.constant dense<0.000000e+00> : vector<32x1xf32>
    %373 = tpu.matmul %355, %363, %cst_324 {dimension_numbers = #tpu.dot_dimension_numbers<[1], [0], [0], [1], [0, 0, 1, 1], [], []>} : vector<32x2xf32>, vector<2x1xf32>, vector<32x1xf32> -> vector<32x1xf32>
    %cst_325 = arith.constant dense<0.000000e+00> : vector<32x1xf32>
    %374 = tpu.matmul %355, %372, %cst_325 {dimension_numbers = #tpu.dot_dimension_numbers<[1], [0], [0], [1], [0, 0, 1, 1], [], []>} : vector<32x2xf32>, vector<2x1xf32>, vector<32x1xf32> -> vector<32x1xf32>
    %375 = vector.broadcast %373 : vector<32x1xf32> to vector<32x128xf32>
    %376 = arith.subf %354, %375 : vector<32x128xf32>
    %377 = vector.broadcast %374 : vector<32x1xf32> to vector<32x128xf32>
    %378 = arith.mulf %376, %377 : vector<32x128xf32>
    %c0_326 = arith.constant 0 : index
    %c0_327 = arith.constant 0 : index
    %379 = vector.load %arg21[%c0_326, %c0_327] : memref<1x128xf32, #tpu.memory_space<vmem>>, vector<1x128xf32>
    %380 = vector.broadcast %379 : vector<1x128xf32> to vector<32x128xf32>
    %381 = arith.mulf %378, %380 : vector<32x128xf32>
    %c0_328 = arith.constant 0 : index
    %c0_329 = arith.constant 0 : index
    %382 = vector.load %arg20[%c0_328, %c0_329] : memref<1x128xf32, #tpu.memory_space<vmem>>, vector<1x128xf32>
    %383 = vector.broadcast %382 : vector<1x128xf32> to vector<32x128xf32>
    %384 = arith.addf %381, %383 : vector<32x128xf32>
    %cst_330 = arith.constant 0.000000e+00 : f32
    %385 = vector.broadcast %cst_330 : f32 to vector<32x128xf32>
    %386 = arith.maximumf %384, %385 : vector<32x128xf32>
    %c0_331 = arith.constant 0 : index
    %c0_332 = arith.constant 0 : index
    %387 = vector.load %arg17[%c0_331, %c0_332] : memref<128x8xf32, #tpu.memory_space<vmem>>, vector<128x8xf32>
    %cst_333 = arith.constant dense<0.000000e+00> : vector<32x8xf32>
    %388 = tpu.matmul %386, %387, %cst_333 {dimension_numbers = #tpu.dot_dimension_numbers<[1], [0], [0], [1], [0, 0, 1, 1], [], []>} : vector<32x128xf32>, vector<128x8xf32>, vector<32x8xf32> -> vector<32x8xf32>
    %cst_334 = arith.constant dense<0.000000e+00> : vector<2x8xf32>
    %389 = tpu.matmul %356, %388, %cst_334 {dimension_numbers = #tpu.dot_dimension_numbers<[1], [0], [0], [1], [0, 0, 1, 1], [], []>} : vector<2x32xf32>, vector<32x8xf32>, vector<2x8xf32> -> vector<2x8xf32>
    %cst_335 = arith.constant 3.906250e-03 : f32
    %390 = vector.broadcast %cst_335 : f32 to vector<2x8xf32>
    %391 = arith.mulf %389, %390 : vector<2x8xf32>
    %c0_336 = arith.constant 0 : index
    %c0_337 = arith.constant 0 : index
    %392 = vector.load %arg24[%c0_336, %c0_337] : memref<8x2xf32, #tpu.memory_space<vmem>>, vector<8x2xf32>
    %cst_338 = arith.constant dense<0.000000e+00> : vector<2x2xf32>
    %393 = tpu.matmul %391, %392, %cst_338 {dimension_numbers = #tpu.dot_dimension_numbers<[1], [0], [0], [1], [0, 0, 1, 1], [], []>} : vector<2x8xf32>, vector<8x2xf32>, vector<2x2xf32> -> vector<2x2xf32>
    %c0_339 = arith.constant 0 : index
    %c0_340 = arith.constant 0 : index
    %394 = vector.load %arg22[%c0_339, %c0_340] : memref<1x2xf32, #tpu.memory_space<vmem>>, vector<1x2xf32>
    %395 = vector.broadcast %394 : vector<1x2xf32> to vector<2x2xf32>
    %396 = arith.addf %393, %395 : vector<2x2xf32>
    %cst_341 = arith.constant 0.000000e+00 : f32
    %397 = vector.broadcast %cst_341 : f32 to vector<2x2xf32>
    %398 = arith.maximumf %396, %397 : vector<2x2xf32>
    %c0_342 = arith.constant 0 : index
    %c0_343 = arith.constant 0 : index
    %399 = vector.load %arg25[%c0_342, %c0_343] : memref<2x8xf32, #tpu.memory_space<vmem>>, vector<2x8xf32>
    %cst_344 = arith.constant dense<0.000000e+00> : vector<2x8xf32>
    %400 = tpu.matmul %398, %399, %cst_344 {dimension_numbers = #tpu.dot_dimension_numbers<[1], [0], [0], [1], [0, 0, 1, 1], [], []>} : vector<2x2xf32>, vector<2x8xf32>, vector<2x8xf32> -> vector<2x8xf32>
    %c0_345 = arith.constant 0 : index
    %c0_346 = arith.constant 0 : index
    %401 = vector.load %arg23[%c0_345, %c0_346] : memref<1x8xf32, #tpu.memory_space<vmem>>, vector<1x8xf32>
    %402 = vector.broadcast %401 : vector<1x8xf32> to vector<2x8xf32>
    %403 = arith.addf %400, %402 : vector<2x8xf32>
    %404 = arith.negf %403 : vector<2x8xf32>
    %405 = math.exp %404 : vector<2x8xf32>
    %cst_347 = arith.constant 1.000000e+00 : f32
    %406 = vector.broadcast %cst_347 : f32 to vector<2x8xf32>
    %407 = arith.addf %406, %405 : vector<2x8xf32>
    %408 = arith.divf %406, %407 : vector<2x8xf32>
    %cst_348 = arith.constant dense<0.000000e+00> : vector<32x8xf32>
    %409 = tpu.matmul %355, %408, %cst_348 {dimension_numbers = #tpu.dot_dimension_numbers<[1], [0], [0], [1], [0, 0, 1, 1], [], []>} : vector<32x2xf32>, vector<2x8xf32>, vector<32x8xf32> -> vector<32x8xf32>
    %c0_349 = arith.constant 0 : index
    %c0_350 = arith.constant 0 : index
    %410 = vector.load %arg18[%c0_349, %c0_350] : memref<8x128xf32, #tpu.memory_space<vmem>>, vector<8x128xf32>
    %cst_351 = arith.constant dense<0.000000e+00> : vector<32x128xf32>
    %411 = tpu.matmul %409, %410, %cst_351 {dimension_numbers = #tpu.dot_dimension_numbers<[1], [0], [0], [1], [0, 0, 1, 1], [], []>} : vector<32x8xf32>, vector<8x128xf32>, vector<32x128xf32> -> vector<32x128xf32>
    %412 = arith.mulf %386, %411 : vector<32x128xf32>
    %c0_352 = arith.constant 0 : index
    %c0_353 = arith.constant 0 : index
    %c0_354 = arith.constant 0 : index
    %413 = vector.load %arg59[%c0_352, %c0_353, %c0_354] : memref<3x32x32xf32, #tpu.memory_space<vmem>>, vector<1x32x32xf32>
    %414 = vector.shape_cast %413 : vector<1x32x32xf32> to vector<32x32xf32>
    %cst_355 = arith.constant dense<0.000000e+00> : vector<32x128xf32>
    %415 = tpu.matmul %414, %412, %cst_355 {dimension_numbers = #tpu.dot_dimension_numbers<[1], [0], [0], [1], [0, 0, 1, 1], [], []>} : vector<32x32xf32>, vector<32x128xf32>, vector<32x128xf32> -> vector<32x128xf32>
    %c0_356 = arith.constant 0 : index
    %c0_357 = arith.constant 0 : index
    %c0_358 = arith.constant 0 : index
    %416 = vector.load %arg60[%c0_356, %c0_357, %c0_358] : memref<3x128x48xf32, #tpu.memory_space<vmem>>, vector<1x128x48xf32>
    %417 = vector.shape_cast %416 : vector<1x128x48xf32> to vector<128x48xf32>
    %cst_359 = arith.constant dense<0.000000e+00> : vector<32x48xf32>
    %418 = tpu.matmul %415, %417, %cst_359 {dimension_numbers = #tpu.dot_dimension_numbers<[1], [0], [0], [1], [0, 0, 1, 1], [], []>} : vector<32x128xf32>, vector<128x48xf32>, vector<32x48xf32> -> vector<32x48xf32>
    %c1_360 = arith.constant 1 : index
    %c0_361 = arith.constant 0 : index
    %c0_362 = arith.constant 0 : index
    %419 = vector.load %arg59[%c1_360, %c0_361, %c0_362] : memref<3x32x32xf32, #tpu.memory_space<vmem>>, vector<1x32x32xf32>
    %420 = vector.shape_cast %419 : vector<1x32x32xf32> to vector<32x32xf32>
    %cst_363 = arith.constant dense<0.000000e+00> : vector<32x128xf32>
    %421 = tpu.matmul %420, %412, %cst_363 {dimension_numbers = #tpu.dot_dimension_numbers<[1], [0], [0], [1], [0, 0, 1, 1], [], []>} : vector<32x32xf32>, vector<32x128xf32>, vector<32x128xf32> -> vector<32x128xf32>
    %c1_364 = arith.constant 1 : index
    %c0_365 = arith.constant 0 : index
    %c0_366 = arith.constant 0 : index
    %422 = vector.load %arg60[%c1_364, %c0_365, %c0_366] : memref<3x128x48xf32, #tpu.memory_space<vmem>>, vector<1x128x48xf32>
    %423 = vector.shape_cast %422 : vector<1x128x48xf32> to vector<128x48xf32>
    %cst_367 = arith.constant dense<0.000000e+00> : vector<32x48xf32>
    %424 = tpu.matmul %421, %423, %cst_367 {dimension_numbers = #tpu.dot_dimension_numbers<[1], [0], [0], [1], [0, 0, 1, 1], [], []>} : vector<32x128xf32>, vector<128x48xf32>, vector<32x48xf32> -> vector<32x48xf32>
    %425 = arith.addf %418, %424 : vector<32x48xf32>
    %c2_368 = arith.constant 2 : index
    %c0_369 = arith.constant 0 : index
    %c0_370 = arith.constant 0 : index
    %426 = vector.load %arg59[%c2_368, %c0_369, %c0_370] : memref<3x32x32xf32, #tpu.memory_space<vmem>>, vector<1x32x32xf32>
    %427 = vector.shape_cast %426 : vector<1x32x32xf32> to vector<32x32xf32>
    %cst_371 = arith.constant dense<0.000000e+00> : vector<32x128xf32>
    %428 = tpu.matmul %427, %412, %cst_371 {dimension_numbers = #tpu.dot_dimension_numbers<[1], [0], [0], [1], [0, 0, 1, 1], [], []>} : vector<32x32xf32>, vector<32x128xf32>, vector<32x128xf32> -> vector<32x128xf32>
    %c2_372 = arith.constant 2 : index
    %c0_373 = arith.constant 0 : index
    %c0_374 = arith.constant 0 : index
    %429 = vector.load %arg60[%c2_372, %c0_373, %c0_374] : memref<3x128x48xf32, #tpu.memory_space<vmem>>, vector<1x128x48xf32>
    %430 = vector.shape_cast %429 : vector<1x128x48xf32> to vector<128x48xf32>
    %cst_375 = arith.constant dense<0.000000e+00> : vector<32x48xf32>
    %431 = tpu.matmul %428, %430, %cst_375 {dimension_numbers = #tpu.dot_dimension_numbers<[1], [0], [0], [1], [0, 0, 1, 1], [], []>} : vector<32x128xf32>, vector<128x48xf32>, vector<32x48xf32> -> vector<32x48xf32>
    %432 = arith.addf %425, %431 : vector<32x48xf32>
    %c0_376 = arith.constant 0 : index
    %c0_377 = arith.constant 0 : index
    %433 = vector.load %arg61[%c0_376, %c0_377] : memref<1x48xf32, #tpu.memory_space<vmem>>, vector<1x48xf32>
    %434 = vector.broadcast %433 : vector<1x48xf32> to vector<32x48xf32>
    %435 = arith.addf %432, %434 : vector<32x48xf32>
    %436 = arith.negf %435 : vector<32x48xf32>
    %437 = math.exp %436 : vector<32x48xf32>
    %cst_378 = arith.constant 1.000000e+00 : f32
    %438 = vector.broadcast %cst_378 : f32 to vector<32x48xf32>
    %439 = arith.addf %438, %437 : vector<32x48xf32>
    %440 = arith.divf %438, %439 : vector<32x48xf32>
    %c0_379 = arith.constant 0 : index
    %c0_380 = arith.constant 0 : index
    %441 = vector.load %arg63[%c0_379, %c0_380] : memref<32x48xf32, #tpu.memory_space<vmem>>, vector<32x48xf32>
    tpu.vector_store %arg63[%c0_379, %c0_380], %440 {strides = array<i32>} : memref<32x48xf32, #tpu.memory_space<vmem>>, vector<32x48xf32>,
    return
  }
}

</mosaic_0001>

<bundles_post_ra>
// kernel: beta_vae_forward.1
= control target key start
LH: loop header
LB: loop body
LE: loop exit
PB: predicated region body
PF: predicated region fallthrough
CT: control target
= control target key end

     0   :  { %s10788_s6 = smov 1   ;;  %s10789_s10 = smov 2   ;;  %s12207_s0 = inlined_call_operand.smem [shape: u32[67], index: -1, kind: input, shape index: {}] }
   0x1   :  { %s10880_s5 = sld [smem:[%s12207_s0]]   ;;  %s10790_s14 = smov 3  }
   0x2   :  { %s10885_s9 = sld [smem:[%s12207_s0 + %s10788_s6]]   ;;  %s10791_s18 = smov 4  }
   0x3   :  { %s10890_s13 = sld [smem:[%s12207_s0 + %s10789_s10]]   ;;  %s10792_s22 = smov 5  }
   0x4   :  { %s10895_s17 = sld [smem:[%s12207_s0 + %s10790_s14]]   ;;  %s10793_s26 = smov 6  }
   0x5   :  { %s10900_s21 = sld [smem:[%s12207_s0 + %s10791_s18]]   ;;  %s10794_s30 = smov 7  }
   0x6   :  { %s10905_s25 = sld [smem:[%s12207_s0 + %s10792_s22]]   ;;  %s10795_s4 = smov 8  }
   0x7   :  { %12229 = sst [smem:[#allocation32_spill]] %s10880_s5  ;;  %s10796_s10 = smov 9  }
   0x8   :  { %12230 = sst [smem:[#allocation33_spill]] %s10885_s9  ;;  %s10797_s15 = smov 10  }
   0x9   :  { %12231 = sst [smem:[#allocation34_spill]] %s10890_s13  ;;  %s10798_s20 = smov 11  }
   0xa   :  { %12232 = sst [smem:[#allocation35_spill]] %s10895_s17  ;;  %s10800_s1 = smov 13  }
   0xb   :  { %12233 = sst [smem:[#allocation36_spill]] %s10900_s21  ;;  %s10801_s7 = smov 14  }
   0xc   :  { %12234 = sst [smem:[#allocation37_spill]] %s10905_s25  ;;  %s10803_s22 = smov 16  }
   0xd   :  { %s10910_s29 = sld [smem:[%s12207_s0 + %s10793_s26]]   ;;  %s10799_s26 = smov 12  }
   0xe   :  { %s10915_s3 = sld [smem:[%s12207_s0 + %s10794_s30]]   ;;  %s10804_s28 = smov 17  }
   0xf   :  { %s10920_s8 = sld [smem:[%s12207_s0 + %s10795_s4]]  }
  0x10   :  { %s10925_s14 = sld [smem:[%s12207_s0 + %s10796_s10]]  }
  0x11   :  { %s10930_s19 = sld [smem:[%s12207_s0 + %s10797_s15]]   ;;  %s10802_s15 = smov 15  }
  0x12   :  { %s10935_s24 = sld [smem:[%s12207_s0 + %s10798_s20]]  }
  0x13   :  { %12235 = sst [smem:[#allocation38_spill]] %s10910_s29 }
  0x14   :  { %12236 = sst [smem:[#allocation39_spill]] %s10915_s3 }
  0x15   :  { %12237 = sst [smem:[#allocation40_spill]] %s10920_s8 }
  0x16   :  { %12238 = sst [smem:[#allocation41_spill]] %s10925_s14 }
  0x17   :  { %12239 = sst [smem:[#allocation42_spill]] %s10930_s19 }
  0x18   :  { %12240 = sst [smem:[#allocation43_spill]] %s10935_s24 }
  0x19   :  { %s10940_s30 = sld [smem:[%s12207_s0 + %s10799_s26]]  }
  0x1a   :  { %s10945_s6 = sld [smem:[%s12207_s0 + %s10800_s1]]  }
  0x1b   :  { %s10950_s12 = sld [smem:[%s12207_s0 + %s10801_s7]]   ;;  %s10805_s7 = smov 18  }
  0x1c   :  { %s10955_s20 = sld [smem:[%s12207_s0 + %s10802_s15]]   ;;  %s10806_s15 = smov 19  }
  0x1d   :  { %s10960_s27 = sld [smem:[%s12207_s0 + %s10803_s22]]   ;;  %s10807_s22 = smov 20  }
  0x1e   :  { %s10965_s4 = sld [smem:[%s12207_s0 + %s10804_s28]]   ;;  %s10808_s28 = smov 21  }
  0x1f   :  { %12241 = sst [smem:[#allocation44_spill]] %s10940_s30 }
  0x20   :  { %12242 = sst [smem:[#allocation45_spill]] %s10945_s6 }
  0x21   :  { %12243 = sst [smem:[#allocation46_spill]] %s10950_s12 }
  0x22   :  { %12244 = sst [smem:[#allocation47_spill]] %s10955_s20 }
  0x23   :  { %12245 = sst [smem:[#allocation48_spill]] %s10960_s27 }
  0x24   :  { %12246 = sst [smem:[#allocation49_spill]] %s10965_s4 }
  0x25   :  { %s10970_s12 = sld [smem:[%s12207_s0 + %s10805_s7]]   ;;  %s10809_s7 = smov 22  }
  0x26   :  { %s10975_s20 = sld [smem:[%s12207_s0 + %s10806_s15]]   ;;  %s10810_s15 = smov 23  }
  0x27   :  { %s10980_s27 = sld [smem:[%s12207_s0 + %s10807_s22]]   ;;  %s10811_s22 = smov 24  }
  0x28   :  { %s10985_s4 = sld [smem:[%s12207_s0 + %s10808_s28]]   ;;  %s10812_s28 = smov 25  }
  0x2b   :  { %12247 = sst [smem:[#allocation50_spill]] %s10970_s12 }
  0x2c   :  { %12248 = sst [smem:[#allocation51_spill]] %s10975_s20 }
  0x2d   :  { %12249 = sst [smem:[#allocation52_spill]] %s10980_s27 }
  0x2e   :  { %12250 = sst [smem:[#allocation53_spill]] %s10985_s4 }
  0x2f   :  { %s10990_s12 = sld [smem:[%s12207_s0 + %s10809_s7]]   ;;  %s10813_s7 = smov 26  }
  0x30   :  { %s10995_s20 = sld [smem:[%s12207_s0 + %s10810_s15]]   ;;  %s10814_s15 = smov 27  }
  0x31   :  { %s11000_s27 = sld [smem:[%s12207_s0 + %s10811_s22]]   ;;  %s10815_s22 = smov 28  }
  0x32   :  { %s11005_s4 = sld [smem:[%s12207_s0 + %s10812_s28]]   ;;  %s10816_s28 = smov 29  }
  0x35   :  { %12251 = sst [smem:[#allocation54_spill]] %s10990_s12 }
  0x36   :  { %12252 = sst [smem:[#allocation55_spill]] %s10995_s20 }
  0x37   :  { %12253 = sst [smem:[#allocation56_spill]] %s11000_s27 }
  0x38   :  { %12254 = sst [smem:[#allocation57_spill]] %s11005_s4 }
  0x39   :  { %s11010_s12 = sld [smem:[%s12207_s0 + %s10813_s7]]   ;;  %s10817_s7 = smov 30  }
  0x3a   :  { %s11015_s20 = sld [smem:[%s12207_s0 + %s10814_s15]]   ;;  %s10818_s15 = smov 31  }
  0x3b   :  { %s11020_s27 = sld [smem:[%s12207_s0 + %s10815_s22]]   ;;  %s10819_s22 = smov 32  }
  0x3c   :  { %s11025_s4 = sld [smem:[%s12207_s0 + %s10816_s28]]   ;;  %s10820_s28 = smov 33  }
  0x3d   :  { %s11030_s6 = sld [smem:[%s12207_s0 + %s10817_s7]]   ;;  %s10821_s7 = smov 34  }
  0x3e   :  { %s11035_s25 = sld [smem:[%s12207_s0 + %s10818_s15]]   ;;  %s10822_s15 = smov 35  }
  0x3f   :  { %s11040_s19 = sld [smem:[%s12207_s0 + %s10819_s22]]   ;;  %s10823_s22 = smov 36  }
  0x40   :  { %12255 = sst [smem:[#allocation58_spill]] %s11015_s20 }
  0x41   :  { %12256 = sst [smem:[#allocation59_spill]] %s11020_s27 }
  0x42   :  { %s11045_s14 = sld [smem:[%s12207_s0 + %s10820_s28]]   ;;  %s10824_s28 = smov 37  }
  0x43   :  { %12257 = sst [smem:[#allocation60_spill]] %s11030_s6 }
  0x44   :  { %12258 = sst [smem:[#allocation61_spill]] %s11035_s25 }
  0x45   :  { %12259 = sst [smem:[#allocation62_spill]] %s11040_s19 }
  0x46   :  { %s11050_s30 = sld [smem:[%s12207_s0 + %s10821_s7]]   ;;  %s10825_s7 = smov 38  }
  0x47   :  { %s11055_s24 = sld [smem:[%s12207_s0 + %s10822_s15]]   ;;  %s10826_s15 = smov 39  }
  0x48   :  { %s11060_s3 = sld [smem:[%s12207_s0 + %s10823_s22]]   ;;  %s10827_s22 = smov 40  }
  0x49   :  { %s11065_s8 = sld [smem:[%s12207_s0 + %s10824_s28]]   ;;  %s10828_s28 = smov 41  }
  0x4a   :  { %s11070_s21 = sld [smem:[%s12207_s0 + %s10825_s7]]   ;;  %s10829_s7 = smov 42  }
  0x4b   :  { %s11075_s9 = sld [smem:[%s12207_s0 + %s10826_s15]]   ;;  %s10830_s15 = smov 43  }
  0x4c   :  { %s11080_s13 = sld [smem:[%s12207_s0 + %s10827_s22]]   ;;  %s10831_s22 = smov 44  }
  0x4d   :  { %s11085_s29 = sld [smem:[%s12207_s0 + %s10828_s28]]   ;;  %s10832_s28 = smov 45  }
  0x4e   :  { %s11090_s17 = sld [smem:[%s12207_s0 + %s10829_s7]]   ;;  %s10833_s7 = smov 46  }
  0x4f   :  { %12260 = sst [smem:[#allocation63_spill]] %s11065_s8 }
  0x50   :  { %12261 = sst [smem:[#allocation64_spill]] %s11070_s21 }
  0x51   :  { %12262 = sst [smem:[#allocation65_spill]] %s11075_s9 }
  0x52   :  { %12263 = sst [smem:[#allocation66_spill]] %s11080_s13 }
  0x53   :  { %12264 = sst [smem:[#allocation67_spill]] %s11085_s29 }
  0x54   :  { %12265 = sst [smem:[#allocation68_spill]] %s11090_s17 }
  0x55   :  { %s11095_s5 = sld [smem:[%s12207_s0 + %s10830_s15]]   ;;  %s10834_s15 = smov 47  }
  0x56   :  { %s11100_s13 = sld [smem:[%s12207_s0 + %s10831_s22]]   ;;  %s10835_s22 = smov 48  }
  0x57   :  { %s11105_s29 = sld [smem:[%s12207_s0 + %s10832_s28]]   ;;  %s10836_s28 = smov 49  }
  0x58   :  { %s11110_s17 = sld [smem:[%s12207_s0 + %s10833_s7]]   ;;  %s10837_s7 = smov 50  }
  0x59   :  { %s11125_s9 = sld [smem:[%s12207_s0 + %s10836_s28]]   ;;  %s10840_s28 = smov 53  }
  0x5a   :  { %s11130_s25 = sld [smem:[%s12207_s0 + %s10837_s7]]   ;;  %s10841_s7 = smov 54  }
  0x5b   :  { %12266 = sst [smem:[#allocation69_spill]] %s11095_s5 }
  0x5c   :  { %12267 = sst [smem:[#allocation70_spill]] %s11100_s13 }
  0x5d   :  { %s11115_s5 = sld [smem:[%s12207_s0 + %s10834_s15]]   ;;  %s10838_s15 = smov 51  }
  0x5e   :  { %s11120_s13 = sld [smem:[%s12207_s0 + %s10835_s22]]   ;;  %s10839_s22 = smov 52  }
  0x5f   :  { %s11135_s21 = sld [smem:[%s12207_s0 + %s10838_s15]]   ;;  %s10842_s15 = smov 55  }
  0x60   :  { %12268 = sst [smem:[#allocation71_spill]] %s11130_s25 }
  0x61   :  { %s11140_s8 = sld [smem:[%s12207_s0 + %s10839_s22]]   ;;  %s10843_s22 = smov 56  }
  0x62   :  { %s11145_s6 = sld [smem:[%s12207_s0 + %s10840_s28]]   ;;  %s10844_s28 = smov 57  }
  0x63   :  { %s11150_s25 = sld [smem:[%s12207_s0 + %s10841_s7]]   ;;  %s10845_s7 = smov 58  }
  0x65   :  { %12269 = sst [smem:[#allocation72_spill]] %s11135_s21 }
  0x66   :  { %s11155_s21 = sld [smem:[%s12207_s0 + %s10842_s15]]   ;;  %s10846_s15 = smov 59  }
  0x67   :  { %12270 = sst [smem:[#allocation73_spill]] %s11140_s8 }
  0x68   :  { %12271 = sst [smem:[#allocation74_spill]] %s11145_s6 }
  0x69   :  { %12272 = sst [smem:[#allocation75_spill]] %s11150_s25 }
  0x6a   :  { %s11160_s8 = sld [smem:[%s12207_s0 + %s10843_s22]]   ;;  %s10847_s22 = smov 60  }
  0x6b   :  { %s11165_s6 = sld [smem:[%s12207_s0 + %s10844_s28]]   ;;  %s10848_s28 = smov 61  }
  0x6c   :  { %12273 = sst [smem:[#allocation76_spill]] %s11155_s21 }
  0x6d   :  { %s11170_s25 = sld [smem:[%s12207_s0 + %s10845_s7]]   ;;  %s10849_s7 = smov 62  }
  0x6e   :  { %s11175_s21 = sld [smem:[%s12207_s0 + %s10846_s15]]   ;;  %s10850_s15 = smov 63  }
  0x6f   :  { %s11190_s20 = sld [smem:[%s12207_s0 + %s10849_s7]]   ;;  %s10853_s7 = smov 66  }
  0x70   :  { %12274 = sst [smem:[#allocation77_spill]] %s11160_s8 }
  0x71   :  { %12275 = sst [smem:[#allocation78_spill]] %s11165_s6 }
  0x72   :  { %s11180_s8 = sld [smem:[%s12207_s0 + %s10847_s22]]   ;;  %s10851_s22 = smov 64  }
  0x73   :  { %s11185_s6 = sld [smem:[%s12207_s0 + %s10848_s28]]   ;;  %s10852_s28 = smov 65  }
  0x74   :  { %12276 = sst [smem:[#allocation79_spill]] %s11175_s21 }
  0x75   :  { %s11195_s21 = sld [smem:[%s12207_s0 + %s10850_s15]]  }
  0x76   :  { %s11205_s27 = sld [smem:[%s12207_s0 + %s10852_s28]]  }
  0x77   :  { %s11210_s19 = sld [smem:[%s12207_s0 + %s10853_s7]]  }
  0x78   :  { %12277 = sst [smem:[#allocation80_spill]] %s11180_s8 }
  0x79   :  { %s11200_s8 = sld [smem:[%s12207_s0 + %s10851_s22]]  }
  0x7a   :  { %139 = vsyncpa [#allocation3], 0 }
  0x7b   :  { %140 = vsyncpa [#allocation6], 0 }
  0x7c   :  { %141 = vsyncpa [#allocation9], 0 }
  0x7d   :  { %142 = vsyncpa [#allocation12], 0 }
  0x7e   :  { %143 = vsyncpa [#allocation15], 0 }
  0x7f   :  { %144 = vsyncpa [#allocation18], 0 }
  0x80   :  { %145 = vsyncpa [#allocation4], 0 }
  0x81   :  { %146 = vsyncpa [#allocation22], 0  ;;  %s10854_s15 = smov [#allocation5]   ;;  %s10855_s18 = smov [#allocation8]  }
  0x82   :  { %s229_s16 = sshll.u32 %s10854_s15, 4  ;;  %s249_s22 = sshll.u32 %s10855_s18, 4  ;;  %s230_s16 = int_to_ptr.vmem [resolvable:$true] %s229_s16  ;;  %s250_s22 = int_to_ptr.vmem [resolvable:$true] %s249_s22 }
  0x83   :  { %s10500_s23 = scalar_lea.vmem %s230_s16, 16  ;;  %s10504_s26 = scalar_lea.vmem %s230_s16, 32 }
  0x84   :  { %p10501_p0 = scmp.ne.s32.totalorder %s230_s16, %s10500_s23  ;;  %p10505_p1 = scmp.lt.s32.totalorder %s230_s16, %s230_s16 }
  0x85   :  { %p10506_p2 = scmp.lt.s32.totalorder %s10504_s26, %s10500_s23 }
  0x87   :  { %p10507_p3 = por %p10506_p2, %p10505_p1 }
  0x89   :  { %p10508_p4 = pnand %p10507_p3, %p10501_p0 }
  0x8b   :  { %10511 = shalt.err (!%p10508_p4)
}
  0x8c   :  { %232 = dma.hbm_to_vmem [thread:$0]  %s11050_s30, 16, %s230_s16, [#allocation6]  }
  0x8d   :  { %s10520_s0 = scalar_lea.vmem %s250_s22, 16  ;;  %s10524_s28 = scalar_lea.vmem %s250_s22, 32 }
  0x8e   :  { %p10521_p5 = scmp.ne.s32.totalorder %s250_s22, %s10520_s0  ;;  %p10525_p6 = scmp.lt.s32.totalorder %s250_s22, %s250_s22 }
  0x8f   :  { %p10526_p7 = scmp.lt.s32.totalorder %s10524_s28, %s10520_s0 }
  0x91   :  { %p10527_p8 = por %p10526_p7, %p10525_p6 }
  0x93   :  { %p10528_p9 = pnand %p10527_p8, %p10521_p5 }
  0x95   :  { %10531 = shalt.err (!%p10528_p9)
}
  0x96   :  { %252 = dma.hbm_to_vmem [thread:$0]  %s11060_s3, 16, %s250_s22, [#allocation9]  }
  0x97   :  { %s10856_s1 = smov [#allocation11]   ;;  %s10857_s7 = smov [#allocation14]  }
  0x98   :  { %s285_s2 = sshll.u32 %s10856_s1, 4  ;;  %s305_s10 = sshll.u32 %s10857_s7, 4  ;;  %s286_s2 = int_to_ptr.vmem [resolvable:$true] %s285_s2  ;;  %s306_s10 = int_to_ptr.vmem [resolvable:$true] %s305_s10 }
  0x99   :  { %s10540_s11 = scalar_lea.vmem %s286_s2, 16  ;;  %s10544_s15 = scalar_lea.vmem %s286_s2, 32 }
  0x9a   :  { %p10541_p10 = scmp.ne.s32.totalorder %s286_s2, %s10540_s11  ;;  %p10545_p11 = scmp.lt.s32.totalorder %s286_s2, %s286_s2 }
  0x9b   :  { %p10546_p12 = scmp.lt.s32.totalorder %s10544_s15, %s10540_s11 }
  0x9d   :  { %p10547_p13 = por %p10546_p12, %p10545_p11 }
  0x9f   :  { %p10548_p0 = pnand %p10547_p13, %p10541_p10 }
  0xa1   :  { %10551 = shalt.err (!%p10548_p0)
}
  0xa2   :  { %288 = dma.hbm_to_vmem [thread:$0]  %s11110_s17, 16, %s286_s2, [#allocation12]  }
  0xa3   :  { %s10560_s30 = scalar_lea.vmem %s306_s10, 16  ;;  %s10564_s16 = scalar_lea.vmem %s306_s10, 32 }
  0xa4   :  { %p10561_p1 = scmp.ne.s32.totalorder %s306_s10, %s10560_s30  ;;  %p10565_p2 = scmp.lt.s32.totalorder %s306_s10, %s306_s10 }
  0xa5   :  { %p10566_p3 = scmp.lt.s32.totalorder %s10564_s16, %s10560_s30 }
  0xa7   :  { %p10567_p4 = por %p10566_p3, %p10565_p2 }
  0xa9   :  { %p10568_p5 = pnand %p10567_p4, %p10561_p1 }
  0xab   :  { %10571 = shalt.err (!%p10568_p5)
}
  0xac   :  { %308 = dma.hbm_to_vmem [thread:$0]  %s11120_s13, 16, %s306_s10, [#allocation15]  }
  0xad   :  { %s10858_s3 = smov [#allocation17]   ;;  %s10859_s22 = smov [#allocation2]  }
  0xae   :  { %s341_s18 = sshll.u32 %s10858_s3, 4  ;;  %s219_s23 = sshll.u32 %s10859_s22, 4  ;;  %s342_s18 = int_to_ptr.vmem [resolvable:$true] %s341_s18  ;;  %s220_s23 = int_to_ptr.vmem [resolvable:$true] %s219_s23 }
  0xaf   :  { %s10580_s26 = scalar_lea.vmem %s342_s18, 16  ;;  %s10584_s0 = scalar_lea.vmem %s342_s18, 32 }
  0xb0   :  { %p10581_p6 = scmp.ne.s32.totalorder %s342_s18, %s10580_s26  ;;  %p10585_p7 = scmp.lt.s32.totalorder %s342_s18, %s342_s18 }
  0xb1   :  { %p10586_p8 = scmp.lt.s32.totalorder %s10584_s0, %s10580_s26 }
  0xb3   :  { %p10587_p9 = por %p10586_p8, %p10585_p7 }
  0xb5   :  { %p10588_p10 = pnand %p10587_p9, %p10581_p6 }
  0xb7   :  { %10591 = shalt.err (!%p10588_p10)
}
  0xb8   :  { %344 = dma.hbm_to_vmem [thread:$0]  %s11170_s25, 16, %s342_s18, [#allocation18]  }
  0xb9   :  { %s10600_s17 = scalar_lea.vmem %s220_s23, 16  ;;  %s10604_s28 = scalar_lea.vmem %s220_s23, 32 }
  0xba   :  { %p10601_p11 = scmp.ne.s32.totalorder %s220_s23, %s10600_s17  ;;  %p10605_p12 = scmp.lt.s32.totalorder %s220_s23, %s220_s23 }
  0xbb   :  { %p10606_p13 = scmp.lt.s32.totalorder %s10604_s28, %s10600_s17 }
  0xbd   :  { %p10607_p0 = por %p10606_p13, %p10605_p12 }
  0xbf   :  { %p10608_p1 = pnand %p10607_p0, %p10601_p11 }
  0xc1   :  { %10611 = shalt.err (!%p10608_p1)
}
  0xc2   :  { %222 = dma.hbm_to_vmem [thread:$0]  %s11045_s14, 16, %s220_s23, [#allocation3]  }
  0xc3   :  { %s10860_s13 = smov [#allocation7]   ;;  %s10861_s2 = smov [#allocation10]  }
  0xc4   :  { %s239_s1 = sshll.u32 %s10860_s13, 4  ;;  %s275_s7 = sshll.u32 %s10861_s2, 4  ;;  %s240_s1 = int_to_ptr.vmem [resolvable:$true] %s239_s1  ;;  %s276_s7 = int_to_ptr.vmem [resolvable:$true] %s275_s7 }
  0xc5   :  { %s10620_s10 = scalar_lea.vmem %s240_s1, 16  ;;  %s10624_s11 = scalar_lea.vmem %s240_s1, 32 }
  0xc6   :  { %p10621_p2 = scmp.ne.s32.totalorder %s240_s1, %s10620_s10  ;;  %p10625_p3 = scmp.lt.s32.totalorder %s240_s1, %s240_s1 }
  0xc7   :  { %p10626_p4 = scmp.lt.s32.totalorder %s10624_s11, %s10620_s10 }
  0xc9   :  { %p10627_p5 = por %p10626_p4, %p10625_p3 }
  0xcb   :  { %p10628_p6 = pnand %p10627_p5, %p10621_p2 }
  0xcd   :  { %10631 = shalt.err (!%p10628_p6)
}
  0xce   :  { %242 = dma.hbm_to_vmem [thread:$0]  %s11055_s24, 16, %s240_s1, [#allocation6]  }
  0xcf   :  { %s10640_s25 = scalar_lea.vmem %s276_s7, 16  ;;  %s10644_s15 = scalar_lea.vmem %s276_s7, 32 }
  0xd0   :  { %p10641_p7 = scmp.ne.s32.totalorder %s276_s7, %s10640_s25  ;;  %p10645_p8 = scmp.lt.s32.totalorder %s276_s7, %s276_s7 }
  0xd1   :  { %p10646_p9 = scmp.lt.s32.totalorder %s10644_s15, %s10640_s25 }
  0xd3   :  { %p10647_p10 = por %p10646_p9, %p10645_p8 }
  0xd5   :  { %p10648_p11 = pnand %p10647_p10, %p10641_p7 }
  0xd7   :  { %10651 = shalt.err (!%p10648_p11)
}
  0xd8   :  { %278 = dma.hbm_to_vmem [thread:$0]  %s11105_s29, 16, %s276_s7, [#allocation9]  }
  0xd9   :  { %s10862_s14 = smov [#allocation13]   ;;  %s10863_s16 = smov [#allocation16]  }
  0xda   :  { %s295_s30 = sshll.u32 %s10862_s14, 4  ;;  %s315_s3 = sshll.u32 %s10863_s16, 4  ;;  %s296_s30 = int_to_ptr.vmem [resolvable:$true] %s295_s30  ;;  %s316_s3 = int_to_ptr.vmem [resolvable:$true] %s315_s3 }
  0xdb   :  { %s10660_s18 = scalar_lea.vmem %s296_s30, 16  ;;  %s10664_s22 = scalar_lea.vmem %s296_s30, 32 }
  0xdc   :  { %p10661_p12 = scmp.ne.s32.totalorder %s296_s30, %s10660_s18  ;;  %p10665_p13 = scmp.lt.s32.totalorder %s296_s30, %s296_s30 }
  0xdd   :  { %p10666_p0 = scmp.lt.s32.totalorder %s10664_s22, %s10660_s18 }
  0xdf   :  { %p10667_p1 = por %p10666_p0, %p10665_p13 }
  0xe1   :  { %p10668_p2 = pnand %p10667_p1, %p10661_p12 }
  0xe3   :  { %10671 = shalt.err (!%p10668_p2)
}
  0xe4   :  { %298 = dma.hbm_to_vmem [thread:$0]  %s11115_s5, 16, %s296_s30, [#allocation12]  }
  0xe5   :  { %s10680_s24 = scalar_lea.vmem %s316_s3, 16  ;;  %s10684_s23 = scalar_lea.vmem %s316_s3, 32 }
  0xe6   :  { %p10681_p3 = scmp.ne.s32.totalorder %s316_s3, %s10680_s24  ;;  %p10685_p4 = scmp.lt.s32.totalorder %s316_s3, %s316_s3 }
  0xe7   :  { %p10686_p5 = scmp.lt.s32.totalorder %s10684_s23, %s10680_s24 }
  0xe9   :  { %p10687_p6 = por %p10686_p5, %p10685_p4 }
  0xeb   :  { %p10688_p7 = pnand %p10687_p6, %p10681_p3 }
  0xed   :  { %10691 = shalt.err (!%p10688_p7)
}
  0xee   :  { %318 = dma.hbm_to_vmem [thread:$0]  %s11125_s9, 16, %s316_s3, [#allocation15]  }
  0xef   :  { %s10864_s29 = smov [#allocation19]  }
  0xf0   :  { %s355_s26 = sshll.u32 %s10864_s29, 4  ;;  %s356_s26 = int_to_ptr.vmem [resolvable:$true] %s355_s26 }
  0xf1   :  { %s10700_s0 = scalar_lea.vmem %s356_s26, 16  ;;  %s10704_s17 = scalar_lea.vmem %s356_s26, 32 }
  0xf2   :  { %p10701_p8 = scmp.ne.s32.totalorder %s356_s26, %s10700_s0  ;;  %p10705_p9 = scmp.lt.s32.totalorder %s356_s26, %s356_s26 }
  0xf3   :  { %p10706_p10 = scmp.lt.s32.totalorder %s10704_s17, %s10700_s0 }
  0xf5   :  { %p10707_p11 = por %p10706_p10, %p10705_p9 }
  0xf7   :  { %p10708_p12 = pnand %p10707_p11, %p10701_p8 }
  0xf9   :  { %10711 = shalt.err (!%p10708_p12)
}
  0xfa   :  { %358 = dma.hbm_to_vmem [thread:$0]  %s11185_s6, 16, %s356_s26, [#allocation18]  }
  0xfb   :  { %10772 = dma.done.wait [#allocation3], 16  }
  0xfc   :  { %10773 = vsyncadd [#allocation3], 4294967280 }
  0xfd   :  { %10774 = dma.done.wait [#allocation6], 32  }
  0xfe   :  { %10775 = vsyncadd [#allocation6], 4294967264 }
  0xff   :  { %10776 = dma.done.wait [#allocation9], 32  }
 0x100   :  { %10777 = vsyncadd [#allocation9], 4294967264 }
 0x101   :  { %10778 = dma.done.wait [#allocation12], 32  }
 0x102   :  { %10779 = vsyncadd [#allocation12], 4294967264 }
 0x103   :  { %10780 = dma.done.wait [#allocation15], 32  }
 0x104   :  { %10781 = vsyncadd [#allocation15], 4294967264 }
 0x105   :  { %10782 = dma.done.wait [#allocation18], 32  }
 0x106   :  { %10783 = vsyncadd [#allocation18], 4294967264  ;;  %vm400_vm0 = vcmask 261120   ;;  %v397_v0 = vld [vmem:[%s11190_s20 + $0x18] sm:$0xff]  ;;  %v396_v1 = vld [vmem:[%s11190_s20 + $0x10] sm:$0xff]  ;;  %vm579_vm1 = vcmask 392192  }
 0x107   :  { %9382 = vmatprep.subr.mxu1 %v397_v0  ;;  %v8490_v2 = vld [vmem:[%s11010_s12 + $0x10] sm:$0xff]  ;;  %9371 = vmatprep.subr.mxu0 %v397_v0  ;;  %v395_v3 = vld [vmem:[%s11190_s20 + $0x8] sm:$0xff]  ;;  %v394_v4 = vld [vmem:[%s11190_s20] sm:$0xff]  ;;  %s12278_s5 = sld [smem:[#allocation62_spill]]  ;;  %v10865_v34 = vmov 0.0   ;;  %vm10866_vm2 = vmmov 0  }
 0x108   :  { %9383 = vmatpush3.msra.mxu1 %v397_v0  ;;  %9390 = vmatprep.mubr.msk.f32.mxu1 %vm400_vm0, %v8490_v2  ;;  %v8491_v5 = vld [vmem:[%s11010_s12 + $0x18] sm:$0xff]  ;;  %v398_v6 = vld [vmem:[%s11010_s12] sm:$0xff]  ;;  %v399_v7 = vld [vmem:[%s11010_s12 + $0x8] sm:$0xff]  ;;  %s12279_s9 = sld [smem:[#allocation59_spill]]  ;;  %vm928_vm3 = vcmask 130048   ;;  %vm1074_vm4 = vcmask 517120  }
 0x109   :  { %9384 = vmatprep.subr.mxu1 %v396_v1  ;;  %9372 = vmatpush3.msra.mxu0 %v397_v0  ;;  %v8499_v8 = vld [vmem:[%s11025_s4 + $0x58] sm:$0xff]  ;;  %v8504_v9 = vld [vmem:[%s11010_s12 + $0x20] sm:$0xff]  ;;  %v8498_v10 = vld [vmem:[%s11025_s4 + $0x50] sm:$0xff]  ;;  %s12280_s6 = sld [smem:[#allocation58_spill]]  ;;  %vm1087_vm5 = vcmask 15360   ;;  %v10867_v58 = vmov 0  }
 0x10a   :  { %9385 = vmatpush3.msra.mxu1 %v396_v1  ;;  %9373 = vmatprep.subr.mxu0 %v396_v1  ;;  %v8497_v11 = vld [vmem:[%s11025_s4 + $0x48] sm:$0xff]  ;;  %v8496_v12 = vld [vmem:[%s11025_s4 + $0x40] sm:$0xff]  ;;  %v8495_v14 = vld [vmem:[%s11025_s4 + $0x38] sm:$0xff]  ;;  %vm1094_vm6 = vcmask 1041408   ;;  %s12282_s20 = sld [smem:[#allocation63_spill]]  ;;  %vm1303_vm7 = vcmask 523264  }
 0x10b   :  { %9386 = vmatprep.subr.mxu1 %v395_v3  ;;  %9374 = vmatpush3.msra.mxu0 %v396_v1  ;;  %v8505_v13 = vld [vmem:[%s11010_s12 + $0x28] sm:$0xff]  ;;  %v8494_v15 = vld [vmem:[%s11025_s4 + $0x30] sm:$0xff]  ;;  %v486_v20 = vld [vmem:[%s11025_s4 + $0x20] sm:$0xff]  ;;  %s12281_s12 = sld [smem:[#allocation60_spill]]  ;;  %vm1464_vm8 = vcmask 64512   ;;  %vm2852_vm9 = vcmask 1043456  }
 0x10c   :  { %9387 = vmatpush3.msra.mxu1 %v395_v3  ;;  %9375 = vmatprep.subr.mxu0 %v395_v3  ;;  %v487_v16 = vld [vmem:[%s11025_s4 + $0x28] sm:$0xff]  ;;  %v485_v22 = vld [vmem:[%s11025_s4 + $0x18] sm:$0xff]  ;;  %v484_v23 = vld [vmem:[%s11025_s4 + $0x10] sm:$0xff]  ;;  %s12284_s28 = sld [smem:[#allocation61_spill]]  ;;  %vm2848_vm10 = vcmask 31744   ;;  %vm3729_vm11 = vcmask 58368  }
 0x10d   :  { %9388 = vmatprep.subr.mxu1 %v394_v4  ;;  %9376 = vmatpush3.msra.mxu0 %v395_v3  ;;  %v483_v24 = vld [vmem:[%s11025_s4 + $0x8] sm:$0xff]  ;;  %v482_v26 = vld [vmem:[%s11025_s4] sm:$0xff]  ;;  %v8511_v30 = vld [vmem:[%s11025_s4 + $0x78] sm:$0xff]  ;;  %s12285_s13 = sld [smem:[#allocation65_spill]]  ;;  %s10868_s18 = smov 120  }
 0x10e   :  { %9389 = vmatpush3.msra.mxu1 %v394_v4  ;;  %9377 = vmatprep.subr.mxu0 %v394_v4  ;;  %v8513_v27 = vld [vmem:[%s11025_s4 + $0x88] sm:$0xff]  ;;  %v8512_v29 = vld [vmem:[%s11025_s4 + $0x80] sm:$0xff]  ;;  %v8510_v31 = vld [vmem:[%s11025_s4 + $0x70] sm:$0xff]  ;;  %s12286_s1 = sld [smem:[#allocation68_spill]] }
 0x10f   :  { %9391 = vmatmul.mubr.msk.f32.vlgmr.msra.gmra.mxu1 %vm400_vm0, %v8491_v5  ;;  %9378 = vmatpush3.msra.mxu0 %v394_v4  ;;  %v8509_v32 = vld [vmem:[%s11025_s4 + $0x68] sm:$0xff]  ;;  %v8508_v33 = vld [vmem:[%s11025_s4 + $0x60] sm:$0xff]  ;;  %s12283_s4 = sld [smem:[#allocation64_spill]] }
 0x110   :  { %9379 = vmatprep.mubr.msk.f32.mxu0 %vm400_vm0, %v398_v6  ;;  %9423 = vmatprep.subr.mxu0 %v397_v0  ;;  %v8516_v41 = vld [vmem:[%s12278_s5] ss:$0 sm:$0xff]  ;;  %v11299_v61 = vld [vmem:[%s12280_s6 + $0x8] sm:$0xff]  ;;  %s12287_s2 = sld [smem:[#allocation67_spill]] }
 0x111   :  { %9380 = vmatmul.mubr.msk.f32.vlgmr.msra.gmra.mxu0 %vm400_vm0, %v399_v7  ;;  %9393 = vmatprep.subr.mxu1 %v8499_v8  ;;  %v11273_v48 = vld [vmem:[%s12279_s9] sm:$0x3]  ;;  %v1302_v5 = vld [vmem:[%s12281_s12 + $0x38] sm:$0xff]  ;;  %v1301_v6 = vld [vmem:[%s12281_s12 + $0x30] sm:$0xff]  ;;  %s12288_s7 = sld [smem:[#allocation66_spill]] }
 0x112   :  { %9424 = vmatpush3.msra.mxu0 %v397_v0  ;;  %9431 = vmatprep.mubr.msk.f32.mxu0 %vm400_vm0, %v8504_v9  ;;  %v11292_v57 = vld [vmem:[%s12280_s6] sm:$0xff]  ;;  %s12289_s10 = sld [smem:[#allocation69_spill]] }
 0x113   :  { %9425 = vmatprep.subr.mxu0 %v396_v1  ;;  %9394 = vmatpush3.msra.mxu1 %v8499_v8  ;;  %v1300_v8 = vld [vmem:[%s12281_s12 + $0x28] sm:$0xff]  ;;  %v1299_v9 = vld [vmem:[%s12281_s12 + $0x20] sm:$0xff]  ;;  %s12290_s11 = sld [smem:[#allocation71_spill]] }
 0x114   :  { %9426 = vmatpush3.msra.mxu0 %v396_v1  ;;  %9395 = vmatprep.subr.mxu1 %v8498_v10  ;;  %s12291_s25 = sld [smem:[#allocation72_spill]] }
 0x115   :  { %9427 = vmatprep.subr.mxu0 %v395_v3  ;;  %9396 = vmatpush3.msra.mxu1 %v8498_v10  ;;  %v1298_v10 = vld [vmem:[%s12281_s12 + $0x18] sm:$0xff]  ;;  %s12292_s15 = sld [smem:[#allocation70_spill]] }
 0x116   :  { %9428 = vmatpush3.msra.mxu0 %v395_v3  ;;  %9397 = vmatprep.subr.mxu1 %v8497_v11  ;;  %s12293_s14 = sld [smem:[#allocation77_spill]] }
 0x117   :  { %9429 = vmatprep.subr.mxu0 %v394_v4  ;;  %9398 = vmatpush3.msra.mxu1 %v8497_v11  ;;  %s12294_s30 = sld [smem:[#allocation78_spill]] }
 0x118   :  { %9430 = vmatpush3.msra.mxu0 %v394_v4  ;;  %9399 = vmatprep.subr.mxu1 %v8496_v12  ;;  %s12295_s16 = sld [smem:[#allocation73_spill]] }
 0x119   :  { %9432 = vmatmul.mubr.msk.f32.vlgmr.msra.gmra.mxu0 %vm400_vm0, %v8505_v13  ;;  %9400 = vmatpush3.msra.mxu1 %v8496_v12  ;;  %v1297_v12 = vld [vmem:[%s12281_s12 + $0x10] sm:$0xff]  ;;  %s12296_s3 = sld [smem:[#allocation74_spill]] }
 0x11a   :  { %9401 = vmatprep.subr.mxu1 %v8495_v14  ;;  %9449 = vmatprep.subr.mxu0 %v10865_v34  ;;  %s12297_s22 = sld [smem:[#allocation75_spill]] }
 0x11b   :  { %9402 = vmatpush3.msra.mxu1 %v8495_v14  ;;  %9453 = vmatprep.mubr.msk.f32.mxu0 %vm10866_vm2, %v10865_v34  ;;  %v1296_v14 = vld [vmem:[%s12281_s12 + $0x8] sm:$0xff]  ;;  %s12298_s24 = sld [smem:[#allocation32_spill]] }
 0x11c   :  { %9403 = vmatprep.subr.mxu1 %v8494_v15  ;;  %10448 = vset.pattern.permute.xlu1 %v10867_v58  ;;  %s12299_s23 = sld [smem:[#allocation76_spill]] }
 0x11d   :  { %9404 = vmatpush3.msra.mxu1 %v8494_v15  ;;  %10449 = vset.pattern.permute.xlu0 %v10867_v58  ;;  %v1295_v15 = vld [vmem:[%s12281_s12] sm:$0xff]  ;;  %s12300_s29 = sld [smem:[#allocation35_spill]] }
 0x11e   :  { %9408 = vmatprep.subr.mxu1 %v487_v16  ;;  %s12301_s26 = sld [smem:[#allocation38_spill]] }
 0x11f   :  { %s12302_s0 = sld [smem:[#allocation34_spill]] }
 0x120   :  { %s12303_s17 = sld [smem:[#allocation33_spill]] }
 0x121   :  { %s12304_s5 = sld [smem:[#allocation36_spill]] }
 0x122   :  { %s12305_s9 = sld [smem:[#allocation40_spill]] }
 0x123   :  { %s12306_s6 = sld [smem:[#allocation39_spill]] }
 0x124   :  { %s12307_s12 = sld [smem:[#allocation43_spill]] }
 0x1cf   :  { %v9392_v17 = vpop.f32.mrf.mxu1 }
 0x1d1   :  { %v563_v18 = vpop.f32.mrf.mxu1  ;;  %v9381_v19 = vpop.f32.mrf.mxu0 }
 0x1d2   :  { %9405 = vmatprep.mubr.msk.f32.mxu1 %vm579_vm1, %v563_v18 }
 0x1d3   :  { %9406 = vmatmul.mubr.msk.f32.vlgmr.msra.gmra.mxu1 %vm579_vm1, %v9392_v17  ;;  %v473_v21 = vpop.f32.mrf.mxu0 }
 0x1d4   :  { %9409 = vmatpush3.msra.mxu1 %v487_v16  ;;  %9420 = vmatprep.mubr.msk.f32.mxu1 %vm579_vm1, %v473_v21 }
 0x1d5   :  { %9410 = vmatprep.subr.mxu1 %v486_v20 }
 0x1d6   :  { %9411 = vmatpush3.msra.mxu1 %v486_v20 }
 0x1d7   :  { %9412 = vmatprep.subr.mxu1 %v485_v22 }
 0x1d8   :  { %9413 = vmatpush3.msra.mxu1 %v485_v22 }
 0x1d9   :  { %9414 = vmatprep.subr.mxu1 %v484_v23  ;;  %v9433_v25 = vpop.f32.mrf.mxu0 }
 0x1da   :  { %9415 = vmatpush3.msra.mxu1 %v484_v23 }
 0x1db   :  { %9416 = vmatprep.subr.mxu1 %v483_v24  ;;  %v817_v28 = vpop.f32.mrf.mxu0 }
 0x1dc   :  { %9417 = vmatpush3.msra.mxu1 %v483_v24  ;;  %v8526_v24 = vld [vmem:[#allocation2] ss:$0 sm:$0xff] }
 0x1dd   :  { %9418 = vmatprep.subr.mxu1 %v482_v26 }
 0x1de   :  { %9419 = vmatpush3.msra.mxu1 %v482_v26 }
 0x1df   :  { %9421 = vmatmul.mubr.msk.f32.vlgmr.msra.gmra.mxu1 %vm579_vm1, %v9381_v19  ;;  %9434 = vmatprep.subr.mxu1 %v8513_v27  ;;  %v8525_v19 = vld [vmem:[#allocation5] ss:$0 sm:$0xff] }
 0x1e0   :  { %9435 = vmatpush3.msra.mxu1 %v8513_v27  ;;  %9446 = vmatprep.mubr.msk.f32.mxu1 %vm579_vm1, %v817_v28 }
 0x1e1   :  { %9436 = vmatprep.subr.mxu1 %v8512_v29 }
 0x1e2   :  { %9437 = vmatpush3.msra.mxu1 %v8512_v29 }
 0x1e3   :  { %9438 = vmatprep.subr.mxu1 %v8511_v30 }
 0x1e4   :  { %9439 = vmatpush3.msra.mxu1 %v8511_v30 }
 0x1e5   :  { %9440 = vmatprep.subr.mxu1 %v8510_v31 }
 0x1e6   :  { %9441 = vmatpush3.msra.mxu1 %v8510_v31 }
 0x1e7   :  { %9442 = vmatprep.subr.mxu1 %v8509_v32 }
 0x1e8   :  { %9443 = vmatpush3.msra.mxu1 %v8509_v32 }
 0x1e9   :  { %9444 = vmatprep.subr.mxu1 %v8508_v33 }
 0x1ea   :  { %9445 = vmatpush3.msra.mxu1 %v8508_v33 }
 0x1eb   :  { %9447 = vmatmul.mubr.msk.f32.vlgmr.msra.gmra.mxu1 %vm579_vm1, %v9433_v25 }
 0x1ec   :  { %9465 = vmatprep.mubr.msk.f32.mxu1 %vm1087_vm5, %v11292_v57 }
 0x293   :  { %v9407_v35 = vpop.f32.mrf.mxu1 }
 0x295   :  { %v652_v36 = vpop.f32.mrf.mxu1 }
 0x29f   :  { %v9422_v37 = vpop.f32.mrf.mxu1 }
 0x2a0   :  { %v739_v39 = vadd.f32 %v9422_v37, %v9407_v35  ;;  %v1456_v35 = vld [vmem:[%s12282_s20] sm:$0xff]  ;;  %s12308_s20 = sld [smem:[#allocation44_spill]] }
 0x2a1   :  { %v733_v38 = vpop.f32.mrf.mxu1 }
 0x2a2   :  { %v734_v42 = vadd.f32 %v733_v38, %v652_v36 }
 0x2ab   :  { %v9448_v40 = vpop.f32.mrf.mxu1 }
 0x2ac   :  { %v915_v43 = vadd.f32 %v9448_v40, %v739_v39  ;;  %v1539_v39 = vld [vmem:[%s12283_s4] sm:$0x3]  ;;  %v8530_v40 = vld [vmem:[#allocation7] ss:$0 sm:$0xff]  ;;  %s12309_s4 = sld [smem:[#allocation41_spill]] }
 0x2ad   :  { %v905_v44 = vpop.f32.mrf.mxu1 }
 0x2ae   :  { %v11267_v45 = vadd.f32 %v8516_v41, %v915_v43  ;;  %v914_v46 = vadd.f32 %v905_v44, %v734_v42 }
 0x2b0   :  { %v11269_v47 = vadd.f32 %v8516_v41, %v914_v46  ;;  %9450 = vmatpush3.msra.mxu0 %v11267_v45  ;;  %v1003_v49 = vmul.f32 %v11267_v45, %v11267_v45 }
 0x2b1   :  { %9451 = vmatprep.subr.mxu0 %v10865_v34 }
 0x2b2   :  { %9452 = vmatpush3.msra.mxu0 %v11269_v47  ;;  %v1002_v50 = vmul.f32 %v11269_v47, %v11269_v47 }
 0x2b3   :  { %9454 = vmatmul.mubr.msk.f32.vlgmr.msra.gmra.mxu0 %vm928_vm3, %v11273_v48  ;;  %9456 = vmatprep.subr.mxu0 %v10865_v34 }
 0x2b4   :  { %9457 = vmatpush3.msra.mxu0 %v1003_v49  ;;  %9460 = vmatprep.mubr.msk.f32.mxu0 %vm10866_vm2, %v10865_v34 }
 0x2b5   :  { %9458 = vmatprep.subr.mxu0 %v10865_v34 }
 0x2b6   :  { %9459 = vmatpush3.msra.mxu0 %v1002_v50 }
 0x2b7   :  { %9461 = vmatmul.mubr.msk.f32.vlgmr.msra.gmra.mxu0 %vm928_vm3, %v11273_v48 }
 0x2b8   :  { %9470 = vmatprep.mubr.msk.f32.mxu0 %vm1087_vm5, %v11292_v57 }
 0x373   :  { %v998_v51 = vpop.f32.mrf.mxu0 }
 0x374   :  { %v1075_v52 = vsel %vm1074_vm4, %v998_v51, 0.0 }
 0x375   :  { %1076 = vadd.xlane.f32.xlu0 %v1075_v52  ;;  %v9455_v53 = vpop.f32.mrf.mxu0 }
 0x376   :  { %v1707_v53 = vld [vmem:[%s12284_s28] sm:$0xff]  ;;  %s12310_s28 = sld [smem:[#allocation42_spill]] }
 0x377   :  { %v1070_v54 = vpop.f32.mrf.mxu0 }
 0x378   :  { %v1079_v55 = vsel %vm1074_vm4, %v1070_v54, 0.0 }
 0x379   :  { %1080 = vadd.xlane.f32.xlu0 %v1079_v55  ;;  %v9462_v56 = vpop.f32.mrf.mxu0 }
 0x3fe   :  { %v1077_v59 = vpop.xlane.xlu0 %1076 }
 0x3ff   :  { %v1078_v60 = vmul.f32 0.001953125, %v1077_v59 }
 0x401   :  { %9463 = vmatprep.subr.msk.mxu1 %vm1094_vm6, %v1078_v60  ;;  %v1083_v63 = vmul.f32 %v1078_v60, %v1078_v60 }
 0x402   :  { %9464 = vmatpush3.msk.msra.mxu1 %vm1094_vm6, %v1078_v60  ;;  %v1081_v62 = vpop.xlane.xlu0 %1080  ;;  %v1791_v60 = vld [vmem:[%s12285_s13] sm:$0xff] }
 0x403   :  { %v1082_v0 = vmul.f32 0.001953125, %v1081_v62  ;;  %9466 = vmatmul.mubr.msk.f32.vlgmr.msra.gmra.mxu1 %vm1087_vm5, %v11299_v61  ;;  %9473 = vmatprep.subr.mxu1 %v1302_v5  ;;  %v8551_v62 = vld [vmem:[%s12286_s1 + $0x78] sm:$0xff] }
 0x404   :  { %9474 = vmatpush3.msra.mxu1 %v1302_v5  ;;  %v1869_v5 = vld [vmem:[%s12286_s1 + $0x20] sm:$0xff] }
 0x405   :  { %v1084_v1 = vsub.f32 %v1082_v0, %v1083_v63  ;;  %9475 = vmatprep.subr.mxu1 %v1301_v6  ;;  %v1872_v63 = vld [vmem:[%s12286_s1 + $0x38] sm:$0xff]  ;;  %v8550_v0 = vld [vmem:[%s12286_s1 + $0x70] sm:$0xff] }
 0x406   :  { %9476 = vmatpush3.msra.mxu1 %v1301_v6  ;;  %v8547_v6 = vld [vmem:[%s12286_s1 + $0x58] sm:$0xff] }
 0x407   :  { %v1085_v2 = vadd.f32 1e-05, %v1084_v1  ;;  %9477 = vmatprep.subr.mxu1 %v1300_v8  ;;  %v1871_v1 = vld [vmem:[%s12286_s1 + $0x30] sm:$0xff] }
 0x408   :  { %9478 = vmatpush3.msra.mxu1 %v1300_v8  ;;  %v8546_v8 = vld [vmem:[%s12286_s1 + $0x50] sm:$0xff] }
 0x409   :  { %10450 = vrsqrt.f32 %v1085_v2  ;;  %9479 = vmatprep.subr.mxu1 %v1299_v9  ;;  %v8549_v2 = vld [vmem:[%s12286_s1 + $0x68] sm:$0xff] }
 0x40a   :  { %9480 = vmatpush3.msra.mxu1 %v1299_v9  ;;  %v1867_v9 = vld [vmem:[%s12286_s1 + $0x10] sm:$0xff] }
 0x40b   :  { %9481 = vmatprep.subr.mxu1 %v1298_v10 }
 0x40c   :  { %9482 = vmatpush3.msra.mxu1 %v1298_v10  ;;  %v8545_v10 = vld [vmem:[%s12286_s1 + $0x48] sm:$0xff] }
 0x40d   :  { %9483 = vmatprep.subr.mxu1 %v1297_v12 }
 0x40e   :  { %9484 = vmatpush3.msra.mxu1 %v1297_v12  ;;  %v8544_v12 = vld [vmem:[%s12286_s1 + $0x40] sm:$0xff] }
 0x40f   :  { %9485 = vmatprep.subr.mxu1 %v1296_v14 }
 0x410   :  { %9486 = vmatpush3.msra.mxu1 %v1296_v14 }
 0x411   :  { %9487 = vmatprep.subr.mxu1 %v1295_v15 }
 0x412   :  { %9488 = vmatpush3.msra.mxu1 %v1295_v15 }
 0x413   :  { %9514 = vmatprep.subr.mxu1 %v1707_v53 }
 0x416   :  { %v10451_v3 = vpop.eup %10450 }
 0x417   :  { %9468 = vmatprep.subr.msk.mxu0 %vm1094_vm6, %v10451_v3 }
 0x418   :  { %9469 = vmatpush3.msk.msra.mxu0 %vm1094_vm6, %v10451_v3  ;;  %v1870_v3 = vld [vmem:[%s12286_s1 + $0x28] sm:$0xff] }
 0x419   :  { %9471 = vmatmul.mubr.msk.f32.vlgmr.msra.gmra.mxu0 %vm1087_vm5, %v11299_v61  ;;  %9492 = vmatprep.subr.mxu0 %v10865_v34 }
 0x41a   :  { %9496 = vmatprep.mubr.msk.f32.mxu0 %vm10866_vm2, %v10865_v34 }
 0x4c3   :  { %v9467_v4 = vpop.f32.mrf.mxu1 }
 0x4c4   :  { %1258 = vperm.xlu1 %10448, %v9467_v4   ;;  %v8548_v4 = vld [vmem:[%s12286_s1 + $0x60] sm:$0xff] }
 0x4c5   :  { %v1164_v7 = vpop.f32.mrf.mxu1 }
 0x4c8   :  { %1253 = vperm.xlu1 %10448, %v1164_v7   ;;  %v1868_v7 = vld [vmem:[%s12286_s1 + $0x18] sm:$0xff] }
 0x4d9   :  { %v9472_v11 = vpop.f32.mrf.mxu0 }
 0x4da   :  { %1270 = vperm.xlu1 %10448, %v9472_v11   ;;  %v1866_v11 = vld [vmem:[%s12286_s1 + $0x8] sm:$0xff] }
 0x4db   :  { %v1242_v13 = vpop.f32.mrf.mxu0 }
 0x4dc   :  { %1265 = vperm.xlu0 %10449, %v1242_v13   ;;  %v1865_v13 = vld [vmem:[%s12286_s1] sm:$0xff] }
 0x53f   :  { %v1259_v16 = vpop.permute.xlu1 %1258 }
 0x540   :  { %v1262_v18 = vsub.f32 %v11267_v45, %v1259_v16  ;;  %v8532_v45 = vld [vmem:[#allocation8] ss:$0 sm:$0xff]  ;;  %v8563_v16 = vld [vmem:[%s12286_s1 + $0xb8] sm:$0xff] }
 0x543   :  { %v1254_v17 = vpop.permute.xlu1 %1253 }
 0x544   :  { %v1261_v21 = vsub.f32 %v11269_v47, %v1254_v17 }
 0x555   :  { %v1271_v20 = vpop.permute.xlu1 %1270 }
 0x556   :  { %v1274_v22 = vmul.f32 %v1271_v20, %v1262_v18  ;;  %v8554_v18 = vld [vmem:[%s12285_s13 + $0x10] sm:$0xff] }
 0x557   :  { %v1266_v23 = vpop.permute.xlu0 %1265  ;;  %v8562_v20 = vld [vmem:[%s12286_s1 + $0xb0] sm:$0xff] }
 0x558   :  { %v1283_v25 = vmul.f32 %v8525_v19, %v1274_v22  ;;  %v1273_v26 = vmul.f32 %v1266_v23, %v1261_v21  ;;  %v8561_v21 = vld [vmem:[%s12286_s1 + $0xa8] sm:$0xff]  ;;  %v8560_v22 = vld [vmem:[%s12286_s1 + $0xa0] sm:$0xff]  ;;  %v8559_v23 = vld [vmem:[%s12286_s1 + $0x98] sm:$0xff] }
 0x55a   :  { %v1282_v27 = vmul.f32 %v8525_v19, %v1273_v26  ;;  %v1292_v28 = vadd.f32 %v8526_v24, %v1283_v25  ;;  %v8557_v25 = vld [vmem:[%s12286_s1 + $0x88] sm:$0xff]  ;;  %v8556_v26 = vld [vmem:[%s12286_s1 + $0x80] sm:$0xff] }
 0x55c   :  { %v1291_v29 = vadd.f32 %v8526_v24, %v1282_v27  ;;  %v1294_v31 = vmax.f32 %v1292_v28, 0.0  ;;  %v8558_v24 = vld [vmem:[%s12286_s1 + $0x90] sm:$0xff]  ;;  %s12312_s1 = sld [smem:[#allocation45_spill]] }
 0x55e   :  { %v1293_v30 = vmax.f32 %v1291_v29, 0.0 }
 0x560   :  { %9489 = vmatprep.mubr.msk.f32.mxu1 %vm1303_vm7, %v1293_v30 }
 0x561   :  { %9490 = vmatmul.mubr.msk.f32.vlgmr.msra.gmra.mxu1 %vm1303_vm7, %v1294_v31 }
 0x562   :  { %9515 = vmatpush3.msra.mxu1 %v1707_v53 }
 0x563   :  { %9526 = vmatprep.subr.mxu1 %v10865_v34 }
 0x621   :  { %v9491_v32 = vpop.f32.mrf.mxu1 }
 0x622   :  { %9493 = vmatpush3.msra.mxu0 %v9491_v32 }
 0x623   :  { %v1376_v33 = vpop.f32.mrf.mxu1  ;;  %9494 = vmatprep.subr.mxu0 %v10865_v34 }
 0x624   :  { %9495 = vmatpush3.msra.mxu0 %v1376_v33 }
 0x625   :  { %9497 = vmatmul.mubr.msk.f32.vlgmr.msra.gmra.mxu0 %vm928_vm3, %v11273_v48  ;;  %9499 = vmatprep.subr.mxu0 %v10865_v34 }
 0x626   :  { %9501 = vmatprep.mubr.msk.f32.mxu0 %vm10866_vm2, %v10865_v34  ;;  %9500 = vmatpush3.msra.mxu0 %v1456_v35 }
 0x627   :  { %9504 = vmatprep.subr.mxu0 %v10865_v34 }
 0x6e5   :  { %v1451_v36 = vpop.f32.mrf.mxu0 }
 0x6e6   :  { %v1455_v37 = vmul.f32 0.015625, %v1451_v36  ;;  %v8565_v36 = vld [vmem:[#allocation10] ss:$0 sm:$0xff] }
 0x6e7   :  { %v9498_v38 = vpop.f32.mrf.mxu0 }
 0x6e8   :  { %9502 = vmatmul.mubr.msk.f32.vlgmr.msra.gmra.mxu0 %vm1464_vm8, %v1455_v37 }
 0x6e9   :  { %9506 = vmatprep.mubr.msk.f32.mxu0 %vm10866_vm2, %v10865_v34  ;;  %9505 = vmatpush3.msk.msra.mxu0 %vm1094_vm6, %v1539_v39 }
 0x7a8   :  { %v1534_v41 = vpop.f32.mrf.mxu0 }
 0x7a9   :  { %v1535_v42 = vadd.f32 %v8530_v40, %v1534_v41  ;;  %v11441_v40 = vld [vmem:[%s12287_s2] sm:$0x3]  ;;  %s12313_s2 = sld [smem:[#allocation48_spill]] }
 0x7aa   :  { %v9503_v43 = vpop.f32.mrf.mxu0 }
 0x7ab   :  { %v1538_v44 = vmax.f32 %v1535_v42, 0.0 }
 0x7ad   :  { %9507 = vmatmul.mubr.msk.f32.vlgmr.msra.gmra.mxu0 %vm1087_vm5, %v1538_v44 }
 0x7ae   :  { %9511 = vmatprep.mubr.msk.f32.mxu0 %vm1087_vm5, %v11292_v57 }
 0x86d   :  { %v1619_v46 = vpop.f32.mrf.mxu0 }
 0x86e   :  { %v1620_v47 = vadd.f32 %v8532_v45, %v1619_v46 }
 0x86f   :  { %v9508_v48 = vpop.f32.mrf.mxu0 }
 0x870   :  { %v8535_v49 = vmul.f32 -1.442695, %v1620_v47 }
 0x872   :  { %10452 = vpow2.f32 %v8535_v49 }
 0x87f   :  { %v10453_v50 = vpop.eup %10452 }
 0x880   :  { %v1626_v51 = vadd.f32 1.0, %v10453_v50  ;;  %v11459_v50 = vld [vmem:[%s12288_s7] sm:$0xff]  ;;  %s12314_s7 = sld [smem:[#allocation51_spill]] }
 0x882   :  { %10454 = vrcp.f32 %v1626_v51 }
 0x88f   :  { %v10455_v52 = vpop.eup %10454 }
 0x890   :  { %9509 = vmatprep.subr.msk.mxu0 %vm1094_vm6, %v10455_v52 }
 0x891   :  { %9510 = vmatpush3.msk.msra.mxu0 %vm1094_vm6, %v10455_v52 }
 0x892   :  { %9512 = vmatmul.mubr.msk.f32.vlgmr.msra.gmra.mxu0 %vm1087_vm5, %v11299_v61  ;;  %9519 = vmatprep.subr.mxu0 %v10865_v34  ;;  %v8542_v61 = vld [vmem:[%s12285_s13 + $0x8] sm:$0xff]  ;;  %s12311_s13 = sld [smem:[#allocation37_spill]] }
 0x893   :  { %9523 = vmatprep.mubr.msk.f32.mxu0 %vm10866_vm2, %v10865_v34 }
 0x952   :  { %v9513_v54 = vpop.f32.mrf.mxu0 }
 0x954   :  { %v1698_v55 = vpop.f32.mrf.mxu0 }
 0x955   :  { %9516 = vmatprep.mubr.msk.f32.mxu1 %vm1464_vm8, %v1698_v55 }
 0x956   :  { %9517 = vmatmul.mubr.msk.f32.vlgmr.msra.gmra.mxu1 %vm1464_vm8, %v9513_v54 }
 0x957   :  { %9530 = vmatprep.mubr.msk.f32.mxu1 %vm10866_vm2, %v10865_v34 }
 0xa16   :  { %v9518_v56 = vpop.f32.mrf.mxu1 }
 0xa17   :  { %v11353_v57 = vmul.f32 %v9518_v56, %v1294_v31 }
 0xa18   :  { %v1780_v58 = vpop.f32.mrf.mxu1 }
 0xa19   :  { %v11355_v59 = vmul.f32 %v1780_v58, %v1293_v30  ;;  %9520 = vmatpush3.msra.mxu0 %v11353_v57  ;;  %9527 = vmatpush3.msra.mxu1 %v11353_v57  ;;  %v2611_v58 = vld [vmem:[%s12289_s10 + $0x30] sm:$0xff] }
 0xa1a   :  { %9521 = vmatprep.subr.mxu0 %v10865_v34  ;;  %9528 = vmatprep.subr.mxu1 %v10865_v34 }
 0xa1b   :  { %9522 = vmatpush3.msra.mxu0 %v11355_v59  ;;  %9529 = vmatpush3.msra.mxu1 %v11355_v59 }
 0xa1c   :  { %9524 = vmatmul.mubr.msk.f32.vlgmr.msra.gmra.mxu0 %vm928_vm3, %v1791_v60  ;;  %9531 = vmatmul.mubr.msk.f32.vlgmr.msra.gmra.mxu1 %vm928_vm3, %v8542_v61  ;;  %v2609_v61 = vld [vmem:[%s12289_s10 + $0x20] sm:$0xff] }
 0xa1d   :  { %9533 = vmatprep.subr.mxu0 %v10865_v34  ;;  %9552 = vmatprep.subr.mxu1 %v10865_v34 }
 0xa1e   :  { %9534 = vmatpush3.msra.mxu0 %v8551_v62  ;;  %9553 = vmatpush3.msra.mxu1 %v1872_v63  ;;  %v2608_v63 = vld [vmem:[%s12289_s10 + $0x18] sm:$0xff] }
 0xa1f   :  { %9535 = vmatprep.subr.mxu0 %v10865_v34  ;;  %9554 = vmatprep.subr.mxu1 %v10865_v34 }
 0xa20   :  { %9536 = vmatpush3.msra.mxu0 %v8550_v0  ;;  %9555 = vmatpush3.msra.mxu1 %v1871_v1  ;;  %v2607_v1 = vld [vmem:[%s12289_s10 + $0x10] sm:$0xff] }
 0xa21   :  { %9537 = vmatprep.subr.mxu0 %v10865_v34  ;;  %9556 = vmatprep.subr.mxu1 %v10865_v34 }
 0xa22   :  { %9538 = vmatpush3.msra.mxu0 %v8549_v2  ;;  %9557 = vmatpush3.msra.mxu1 %v1870_v3  ;;  %v2606_v3 = vld [vmem:[%s12289_s10 + $0x8] sm:$0xff] }
 0xa23   :  { %9539 = vmatprep.subr.mxu0 %v10865_v34  ;;  %9558 = vmatprep.subr.mxu1 %v10865_v34 }
 0xa24   :  { %9540 = vmatpush3.msra.mxu0 %v8548_v4  ;;  %9559 = vmatpush3.msra.mxu1 %v1869_v5  ;;  %v2605_v4 = vld [vmem:[%s12289_s10] sm:$0xff] }
 0xa25   :  { %9541 = vmatprep.subr.mxu0 %v10865_v34  ;;  %9560 = vmatprep.subr.mxu1 %v10865_v34 }
 0xa26   :  { %9542 = vmatpush3.msra.mxu0 %v8547_v6  ;;  %9561 = vmatpush3.msra.mxu1 %v1868_v7  ;;  %v8572_v7 = vld [vmem:[#allocation13] ss:$0 sm:$0xff] }
 0xa27   :  { %9543 = vmatprep.subr.mxu0 %v10865_v34  ;;  %9562 = vmatprep.subr.mxu1 %v10865_v34 }
 0xa28   :  { %9544 = vmatpush3.msra.mxu0 %v8546_v8  ;;  %9563 = vmatpush3.msra.mxu1 %v1867_v9 }
 0xa29   :  { %9545 = vmatprep.subr.mxu0 %v10865_v34  ;;  %9564 = vmatprep.subr.mxu1 %v10865_v34 }
 0xa2a   :  { %9546 = vmatpush3.msra.mxu0 %v8545_v10  ;;  %9565 = vmatpush3.msra.mxu1 %v1866_v11  ;;  %v8573_v10 = vld [vmem:[#allocation11] ss:$0 sm:$0xff] }
 0xa2b   :  { %9547 = vmatprep.subr.mxu0 %v10865_v34  ;;  %9566 = vmatprep.subr.mxu1 %v10865_v34 }
 0xa2c   :  { %9548 = vmatpush3.msra.mxu0 %v8544_v12  ;;  %9549 = vmatprep.mubr.msk.f32.mxu0 %vm10866_vm2, %v10865_v34 }
 0xa2d   :  { %9568 = vmatprep.mubr.msk.f32.mxu1 %vm10866_vm2, %v10865_v34  ;;  %9571 = vmatprep.subr.mxu0 %v10865_v34 }
 0xa2e   :  { %9567 = vmatpush3.msra.mxu1 %v1865_v13 }
 0xa2f   :  { %9578 = vmatprep.subr.mxu1 %v10865_v34 }
 0xadc   :  { %v1861_v14 = vpop.f32.mrf.mxu0  ;;  %v1944_v15 = vpop.f32.mrf.mxu1 }
 0xadd   :  { %9550 = vmatmul.mubr.msk.f32.vlgmr.msra.gmra.mxu0 %vm1303_vm7, %v1944_v15  ;;  %9569 = vmatmul.mubr.msk.f32.vlgmr.msra.gmra.mxu1 %vm1303_vm7, %v1861_v14 }
 0xade   :  { %9572 = vmatpush3.msra.mxu0 %v11353_v57  ;;  %v9532_v17 = vpop.f32.mrf.mxu1  ;;  %9575 = vmatprep.mubr.msk.f32.mxu0 %vm10866_vm2, %v10865_v34  ;;  %v9525_v19 = vpop.f32.mrf.mxu0  ;;  %v2612_v57 = vld [vmem:[%s12289_s10 + $0x38] sm:$0xff] }
 0xadf   :  { %9573 = vmatprep.subr.mxu0 %v10865_v34  ;;  %9579 = vmatpush3.msra.mxu1 %v8563_v16  ;;  %v2758_v16 = vld [vmem:[%s12290_s11 + $0x8] sm:$0xff]  ;;  %v2757_v17 = vld [vmem:[%s12290_s11] sm:$0xff]  ;;  %s12316_s11 = sld [smem:[#allocation46_spill]] }
 0xae0   :  { %9574 = vmatpush3.msra.mxu0 %v11355_v59  ;;  %9580 = vmatprep.subr.mxu1 %v10865_v34  ;;  %v2610_v59 = vld [vmem:[%s12289_s10 + $0x28] sm:$0xff]  ;;  %s12315_s10 = sld [smem:[#allocation47_spill]] }
 0xae1   :  { %9576 = vmatmul.mubr.msk.f32.vlgmr.msra.gmra.mxu0 %vm928_vm3, %v8554_v18  ;;  %9581 = vmatpush3.msra.mxu1 %v8562_v20 }
 0xae2   :  { %9582 = vmatprep.subr.mxu1 %v10865_v34  ;;  %9594 = vmatprep.mubr.msk.f32.mxu1 %vm10866_vm2, %v10865_v34 }
 0xae3   :  { %9583 = vmatpush3.msra.mxu1 %v8561_v21  ;;  %9597 = vmatprep.subr.mxu0 %v10865_v34  ;;  %v2840_v21 = vld [vmem:[%s12291_s25] sm:$0xf]  ;;  %s12317_s25 = sld [smem:[#allocation49_spill]] }
 0xae4   :  { %9584 = vmatprep.subr.mxu1 %v10865_v34  ;;  %9599 = vmatprep.mubr.msk.f32.mxu0 %vm10866_vm2, %v10865_v34 }
 0xae5   :  { %9585 = vmatpush3.msra.mxu1 %v8560_v22  ;;  %v8576_v22 = vld [vmem:[#allocation14] ss:$0 sm:$0xff] }
 0xae6   :  { %9586 = vmatprep.subr.mxu1 %v10865_v34 }
 0xae7   :  { %9587 = vmatpush3.msra.mxu1 %v8559_v23 }
 0xae8   :  { %9588 = vmatprep.subr.mxu1 %v10865_v34 }
 0xae9   :  { %9589 = vmatpush3.msra.mxu1 %v8558_v24 }
 0xaea   :  { %9590 = vmatprep.subr.mxu1 %v10865_v34 }
 0xaeb   :  { %9591 = vmatpush3.msra.mxu1 %v8557_v25 }
 0xaec   :  { %9592 = vmatprep.subr.mxu1 %v10865_v34 }
 0xaed   :  { %9593 = vmatpush3.msra.mxu1 %v8556_v26 }
 0xaee   :  { %9617 = vmatprep.subr.mxu1 %v10865_v34 }
 0xb9d   :  { %v2026_v27 = vpop.f32.mrf.mxu0  ;;  %v2099_v28 = vpop.f32.mrf.mxu1 }
 0xb9e   :  { %v2100_v29 = vadd.f32 %v2099_v28, %v2026_v27  ;;  %v3006_v27 = vld [vmem:[%s12292_s15 + $0x8] sm:$0xff]  ;;  %v8578_v28 = vld [vmem:[#allocation16] ss:$0 sm:$0xff] }
 0xb9f   :  { %v9551_v30 = vpop.f32.mrf.mxu0  ;;  %v9570_v31 = vpop.f32.mrf.mxu1 }
 0xba1   :  { %v2174_v32 = vpop.f32.mrf.mxu0 }
 0xba2   :  { %9595 = vmatmul.mubr.msk.f32.vlgmr.msra.gmra.mxu1 %vm1303_vm7, %v2174_v32 }
 0xba3   :  { %v9577_v33 = vpop.f32.mrf.mxu0  ;;  %9633 = vmatprep.mubr.msk.f32.mxu1 %vm10866_vm2, %v10865_v34  ;;  %9618 = vmatpush3.msra.mxu1 %v2612_v57  ;;  %v8589_v57 = vld [vmem:[%s12294_s30 + $0x48] sm:$0xff] }
 0xba4   :  { %9619 = vmatprep.subr.mxu1 %v10865_v34 }
 0xba5   :  { %9620 = vmatpush3.msra.mxu1 %v2611_v58  ;;  %v3156_v58 = vld [vmem:[%s12294_s30 + $0x8] sm:$0xff] }
 0xba6   :  { %9621 = vmatprep.subr.mxu1 %v10865_v34 }
 0xba7   :  { %9622 = vmatpush3.msra.mxu1 %v2610_v59  ;;  %v8588_v59 = vld [vmem:[%s12294_s30 + $0x40] sm:$0xff] }
 0xba8   :  { %9623 = vmatprep.subr.mxu1 %v10865_v34 }
 0xba9   :  { %9624 = vmatpush3.msra.mxu1 %v2609_v61 }
 0xbaa   :  { %9625 = vmatprep.subr.mxu1 %v10865_v34 }
 0xbab   :  { %9626 = vmatpush3.msra.mxu1 %v2608_v63  ;;  %v8607_v63 = vld [vmem:[%s12294_s30 + $0xb8] sm:$0xff] }
 0xbac   :  { %9627 = vmatprep.subr.mxu1 %v10865_v34 }
 0xbad   :  { %9628 = vmatpush3.msra.mxu1 %v2607_v1  ;;  %v8598_v1 = vld [vmem:[%s12293_s14 + $0x4] sm:$0x3] }
 0xbae   :  { %9629 = vmatprep.subr.mxu1 %v10865_v34 }
 0xbaf   :  { %9630 = vmatpush3.msra.mxu1 %v2606_v3  ;;  %v8606_v3 = vld [vmem:[%s12294_s30 + $0xb0] sm:$0xff] }
 0xbb0   :  { %9631 = vmatprep.subr.mxu1 %v10865_v34 }
 0xbb1   :  { %9632 = vmatpush3.msra.mxu1 %v2605_v4  ;;  %v8605_v4 = vld [vmem:[%s12294_s30 + $0xa8] sm:$0xff] }
 0xbb2   :  { %9658 = vmatprep.subr.mxu1 %v10865_v34 }
 0xc62   :  { %v2256_v35 = vpop.f32.mrf.mxu1 }
 0xc63   :  { %v2260_v37 = vadd.f32 %v2256_v35, %v2100_v29 }
 0xc64   :  { %v9596_v38 = vpop.f32.mrf.mxu1 }
 0xc65   :  { %v11438_v39 = vadd.f32 %v8565_v36, %v2260_v37  ;;  %v3005_v37 = vld [vmem:[%s12292_s15] sm:$0xff]  ;;  %s12318_s15 = sld [smem:[#allocation53_spill]] }
 0xc67   :  { %v2344_v41 = vmul.f32 %v11438_v39, %v11438_v39  ;;  %9598 = vmatpush3.msra.mxu0 %v11438_v39 }
 0xc68   :  { %9600 = vmatmul.mubr.msk.f32.vlgmr.msra.gmra.mxu0 %vm1464_vm8, %v11441_v40  ;;  %9602 = vmatprep.subr.mxu0 %v10865_v34 }
 0xc69   :  { %9603 = vmatpush3.msra.mxu0 %v2344_v41  ;;  %9604 = vmatprep.mubr.msk.f32.mxu0 %vm10866_vm2, %v10865_v34 }
 0xc6a   :  { %9607 = vmatprep.subr.mxu0 %v10865_v34 }
 0xc6c   :  { %9605 = vmatmul.mubr.msk.f32.vlgmr.msra.gmra.mxu0 %vm1464_vm8, %v11441_v40 }
 0xc6d   :  { %9609 = vmatprep.mubr.msk.f32.mxu0 %vm10866_vm2, %v10865_v34 }
 0xd28   :  { %v2340_v42 = vpop.f32.mrf.mxu0 }
 0xd29   :  { %v2415_v43 = vsel %vm1074_vm4, %v2340_v42, 0.0  ;;  %v3081_v42 = vld [vmem:[%s12293_s14] sm:$0x3] }
 0xd2a   :  { %2416 = vadd.xlane.f32.xlu1 %v2415_v43  ;;  %v9601_v44 = vpop.f32.mrf.mxu0  ;;  %v8586_v43 = vld [vmem:[%s12293_s14 + $0x2] sm:$0x3] }
 0xd2c   :  { %v2411_v45 = vpop.f32.mrf.mxu0 }
 0xd2d   :  { %v2419_v46 = vsel %vm1074_vm4, %v2411_v45, 0.0  ;;  %v8595_v45 = vld [vmem:[%s12294_s30 + $0x78] sm:$0xff] }
 0xd2e   :  { %2420 = vadd.xlane.f32.xlu1 %v2419_v46  ;;  %v9606_v47 = vpop.f32.mrf.mxu0  ;;  %v3162_v46 = vld [vmem:[%s12294_s30 + $0x38] sm:$0xff] }
 0xd2f   :  { %v8594_v47 = vld [vmem:[%s12294_s30 + $0x70] sm:$0xff] }
 0xdb3   :  { %v2417_v48 = vpop.xlane.xlu1 %2416 }
 0xdb4   :  { %v2418_v49 = vmul.f32 0.00390625, %v2417_v48  ;;  %v3161_v48 = vld [vmem:[%s12294_s30 + $0x30] sm:$0xff] }
 0xdb6   :  { %9608 = vmatpush3.msk.msra.mxu0 %vm1094_vm6, %v2418_v49  ;;  %v2423_v52 = vmul.f32 %v2418_v49, %v2418_v49  ;;  %v8593_v49 = vld [vmem:[%s12294_s30 + $0x68] sm:$0xff] }
 0xdb7   :  { %9610 = vmatmul.mubr.msk.f32.vlgmr.msra.gmra.mxu0 %vm1087_vm5, %v11459_v50  ;;  %v2421_v51 = vpop.xlane.xlu1 %2420  ;;  %9612 = vmatprep.subr.mxu0 %v10865_v34 }
 0xdb8   :  { %v2422_v53 = vmul.f32 0.00390625, %v2421_v51  ;;  %9614 = vmatprep.mubr.msk.f32.mxu0 %vm10866_vm2, %v10865_v34  ;;  %v8592_v51 = vld [vmem:[%s12294_s30 + $0x60] sm:$0xff] }
 0xdba   :  { %v2424_v54 = vsub.f32 %v2422_v53, %v2423_v52  ;;  %v3159_v52 = vld [vmem:[%s12294_s30 + $0x20] sm:$0xff]  ;;  %v8591_v53 = vld [vmem:[%s12294_s30 + $0x58] sm:$0xff] }
 0xdbc   :  { %v2425_v55 = vadd.f32 1e-05, %v2424_v54  ;;  %v3158_v54 = vld [vmem:[%s12294_s30 + $0x18] sm:$0xff] }
 0xdbe   :  { %10456 = vrsqrt.f32 %v2425_v55  ;;  %v8590_v55 = vld [vmem:[%s12294_s30 + $0x50] sm:$0xff] }
 0xdcb   :  { %v10457_v56 = vpop.eup %10456 }
 0xdcc   :  { %9613 = vmatpush3.msk.msra.mxu0 %vm1094_vm6, %v10457_v56  ;;  %v3157_v56 = vld [vmem:[%s12294_s30 + $0x10] sm:$0xff] }
 0xdcd   :  { %9615 = vmatmul.mubr.msk.f32.vlgmr.msra.gmra.mxu0 %vm1087_vm5, %v11459_v50  ;;  %9636 = vmatprep.subr.mxu0 %v10865_v34 }
 0xdce   :  { %9638 = vmatprep.mubr.msk.f32.mxu0 %vm10866_vm2, %v10865_v34 }
 0xe77   :  { %v2499_v60 = vpop.f32.mrf.mxu0 }
 0xe78   :  { %2578 = vperm.xlu0 %10449, %v2499_v60   ;;  %v3155_v60 = vld [vmem:[%s12294_s30] sm:$0xff] }
 0xe79   :  { %v9611_v62 = vpop.f32.mrf.mxu0 }
 0xe8d   :  { %v2572_v0 = vpop.f32.mrf.mxu0 }
 0xe8e   :  { %2584 = vperm.xlu1 %10448, %v2572_v0  }
 0xe8f   :  { %v9616_v2 = vpop.f32.mrf.mxu0 }
 0xef3   :  { %v2579_v5 = vpop.permute.xlu0 %2578 }
 0xef4   :  { %v2581_v6 = vsub.f32 %v11438_v39, %v2579_v5  ;;  %v8609_v5 = vld [vmem:[%s12293_s14 + $0x6] sm:$0x3]  ;;  %s12319_s14 = sld [smem:[#allocation52_spill]] }
 0xf09   :  { %v2585_v8 = vpop.permute.xlu1 %2584 }
 0xf0a   :  { %v2587_v9 = vmul.f32 %v2585_v8, %v2581_v6  ;;  %v8618_v6 = vld [vmem:[%s12294_s30 + $0xf8] sm:$0xff]  ;;  %v8617_v8 = vld [vmem:[%s12294_s30 + $0xf0] sm:$0xff] }
 0xf0c   :  { %v2595_v11 = vmul.f32 %v8572_v7, %v2587_v9  ;;  %v8604_v7 = vld [vmem:[%s12294_s30 + $0xa0] sm:$0xff]  ;;  %v8603_v9 = vld [vmem:[%s12294_s30 + $0x98] sm:$0xff] }
 0xf0e   :  { %v2603_v12 = vadd.f32 %v8573_v10, %v2595_v11  ;;  %v8616_v10 = vld [vmem:[%s12294_s30 + $0xe8] sm:$0xff]  ;;  %v8602_v11 = vld [vmem:[%s12294_s30 + $0x90] sm:$0xff] }
 0xf10   :  { %v2604_v13 = vmax.f32 %v2603_v12, 0.0  ;;  %v8615_v12 = vld [vmem:[%s12294_s30 + $0xe0] sm:$0xff] }
 0xf12   :  { %9634 = vmatmul.mubr.msk.f32.vlgmr.msra.gmra.mxu1 %vm1303_vm7, %v2604_v13 }
 0xf13   :  { %9662 = vmatprep.mubr.msk.f32.mxu1 %vm10866_vm2, %v10865_v34  ;;  %9659 = vmatpush3.msra.mxu1 %v3006_v27 }
 0xf14   :  { %9660 = vmatprep.subr.mxu1 %v10865_v34 }
 0xf15   :  { %9661 = vmatpush3.msra.mxu1 %v3005_v37 }
 0xf16   :  { %9670 = vmatprep.subr.mxu1 %v10865_v34 }
 0xfd2   :  { %v2682_v14 = vpop.f32.mrf.mxu1 }
 0xfd3   :  { %9637 = vmatpush3.msra.mxu0 %v2682_v14  ;;  %v8614_v14 = vld [vmem:[%s12294_s30 + $0xd8] sm:$0xff] }
 0xfd4   :  { %v9635_v15 = vpop.f32.mrf.mxu1  ;;  %9639 = vmatmul.mubr.msk.f32.vlgmr.msra.gmra.mxu0 %vm1464_vm8, %v11441_v40  ;;  %9641 = vmatprep.subr.mxu0 %v10865_v34 }
 0xfd5   :  { %9645 = vmatprep.mubr.msk.f32.mxu0 %vm10866_vm2, %v10865_v34  ;;  %9642 = vmatpush3.msra.mxu0 %v2758_v16  ;;  %v8600_v15 = vld [vmem:[%s12294_s30 + $0x80] sm:$0xff]  ;;  %v8613_v16 = vld [vmem:[%s12294_s30 + $0xd0] sm:$0xff] }
 0xfd6   :  { %9643 = vmatprep.subr.mxu0 %v10865_v34 }
 0xfd7   :  { %9644 = vmatpush3.msra.mxu0 %v2757_v17  ;;  %v8612_v17 = vld [vmem:[%s12294_s30 + $0xc8] sm:$0xff] }
 0xfd8   :  { %9648 = vmatprep.subr.mxu0 %v10865_v34 }
0x1094   :  { %v2752_v18 = vpop.f32.mrf.mxu0 }
0x1095   :  { %v2756_v19 = vmul.f32 0.0625, %v2752_v18  ;;  %v8611_v18 = vld [vmem:[%s12294_s30 + $0xc0] sm:$0xff] }
0x1096   :  { %v9640_v20 = vpop.f32.mrf.mxu0 }
0x1097   :  { %9646 = vmatmul.mubr.msk.f32.vlgmr.msra.gmra.mxu0 %vm928_vm3, %v2756_v19 }
0x1098   :  { %9650 = vmatprep.mubr.msk.f32.mxu0 %vm10866_vm2, %v10865_v34  ;;  %9649 = vmatpush3.msk.msra.mxu0 %vm2852_vm9, %v2840_v21 }
0x1099   :  { %9653 = vmatprep.subr.mxu0 %v10865_v34 }
0x1157   :  { %v2835_v23 = vpop.f32.mrf.mxu0 }
0x1158   :  { %v2836_v24 = vadd.f32 %v8576_v22, %v2835_v23 }
0x1159   :  { %v9647_v25 = vpop.f32.mrf.mxu0 }
0x115a   :  { %v2839_v26 = vmax.f32 %v2836_v24, 0.0 }
0x115c   :  { %9651 = vmatmul.mubr.msk.f32.vlgmr.msra.gmra.mxu0 %vm2848_vm10, %v2839_v26 }
0x115d   :  { %9655 = vmatprep.mubr.msk.f32.mxu0 %vm10866_vm2, %v10865_v34 }
0x121c   :  { %v2922_v29 = vpop.f32.mrf.mxu0 }
0x121d   :  { %v2923_v30 = vadd.f32 %v8578_v28, %v2922_v29 }
0x121e   :  { %v9652_v31 = vpop.f32.mrf.mxu0 }
0x121f   :  { %v8581_v32 = vmul.f32 -1.442695, %v2923_v30 }
0x1221   :  { %10458 = vpow2.f32 %v8581_v32  ;;  %v8620_v32 = vld [vmem:[#allocation17] ss:$0 sm:$0xff] }
0x122e   :  { %v10459_v33 = vpop.eup %10458 }
0x122f   :  { %v2929_v35 = vadd.f32 1.0, %v10459_v33 }
0x1231   :  { %10460 = vrcp.f32 %v2929_v35 }
0x123e   :  { %v10461_v36 = vpop.eup %10460 }
0x123f   :  { %9654 = vmatpush3.msk.msra.mxu0 %vm1094_vm6, %v10461_v36 }
0x1240   :  { %9656 = vmatmul.mubr.msk.f32.vlgmr.msra.gmra.mxu0 %vm1087_vm5, %v11459_v50  ;;  %9665 = vmatprep.subr.mxu0 %v10865_v34  ;;  %v3160_v50 = vld [vmem:[%s12294_s30 + $0x28] sm:$0xff] }
0x1241   :  { %9667 = vmatprep.mubr.msk.f32.mxu0 %vm10866_vm2, %v10865_v34 }
0x1300   :  { %v3001_v38 = vpop.f32.mrf.mxu0 }
0x1301   :  { %9663 = vmatmul.mubr.msk.f32.vlgmr.msra.gmra.mxu1 %vm928_vm3, %v3001_v38 }
0x1302   :  { %v9657_v39 = vpop.f32.mrf.mxu0  ;;  %9672 = vmatprep.mubr.msk.f32.mxu1 %vm10866_vm2, %v10865_v34 }
0x13c1   :  { %v3076_v40 = vpop.f32.mrf.mxu1 }
0x13c2   :  { %v11522_v41 = vmul.f32 %v3076_v40, %v2604_v13  ;;  %v8601_v13 = vld [vmem:[%s12294_s30 + $0x88] sm:$0xff]  ;;  %s12320_s30 = sld [smem:[#allocation56_spill]] }
0x13c3   :  { %v9664_v44 = vpop.f32.mrf.mxu1 }
0x13c4   :  { %9666 = vmatpush3.msra.mxu0 %v11522_v41  ;;  %9671 = vmatpush3.msra.mxu1 %v11522_v41 }
0x13c5   :  { %9668 = vmatmul.mubr.msk.f32.vlgmr.msra.gmra.mxu0 %vm1464_vm8, %v3081_v42  ;;  %9673 = vmatmul.mubr.msk.f32.vlgmr.msra.gmra.mxu1 %vm1464_vm8, %v8586_v43 }
0x13c6   :  { %9675 = vmatprep.subr.mxu0 %v10865_v34  ;;  %9694 = vmatprep.subr.mxu1 %v10865_v34 }
0x13c7   :  { %9676 = vmatpush3.msra.mxu0 %v8595_v45  ;;  %9695 = vmatpush3.msra.mxu1 %v3162_v46  ;;  %v3737_v45 = vld [vmem:[%s12296_s3] sm:$0xff]  ;;  %v8624_v46 = vld [vmem:[%s12296_s3 + $0x8] sm:$0xff] }
0x13c8   :  { %9677 = vmatprep.subr.mxu0 %v10865_v34  ;;  %9696 = vmatprep.subr.mxu1 %v10865_v34 }
0x13c9   :  { %9678 = vmatpush3.msra.mxu0 %v8594_v47  ;;  %9697 = vmatpush3.msra.mxu1 %v3161_v48  ;;  %v3814_v47 = vld [vmem:[%s12297_s22] sm:$0xff]  ;;  %v8627_v48 = vld [vmem:[%s12297_s22 + $0x8] sm:$0xff] }
0x13ca   :  { %9679 = vmatprep.subr.mxu0 %v10865_v34  ;;  %9698 = vmatprep.subr.mxu1 %v10865_v34 }
0x13cb   :  { %9680 = vmatpush3.msra.mxu0 %v8593_v49  ;;  %9699 = vmatpush3.msra.mxu1 %v3160_v50 }
0x13cc   :  { %9681 = vmatprep.subr.mxu0 %v10865_v34  ;;  %9700 = vmatprep.subr.mxu1 %v10865_v34 }
0x13cd   :  { %9682 = vmatpush3.msra.mxu0 %v8592_v51  ;;  %9701 = vmatpush3.msra.mxu1 %v3159_v52 }
0x13ce   :  { %9683 = vmatprep.subr.mxu0 %v10865_v34  ;;  %9702 = vmatprep.subr.mxu1 %v10865_v34 }
0x13cf   :  { %9684 = vmatpush3.msra.mxu0 %v8591_v53  ;;  %9703 = vmatpush3.msra.mxu1 %v3158_v54  ;;  %v8630_v53 = vld [vmem:[%s12296_s3 + $0x10] sm:$0xff]  ;;  %v8635_v54 = vld [vmem:[%s12296_s3 + $0x18] sm:$0xff]  ;;  %s12322_s3 = sld [smem:[#allocation54_spill]] }
0x13d0   :  { %9685 = vmatprep.subr.mxu0 %v10865_v34  ;;  %9704 = vmatprep.subr.mxu1 %v10865_v34 }
0x13d1   :  { %9686 = vmatpush3.msra.mxu0 %v8590_v55  ;;  %9705 = vmatpush3.msra.mxu1 %v3157_v56  ;;  %v8633_v55 = vld [vmem:[%s12297_s22 + $0x10] sm:$0xff] }
0x13d2   :  { %9687 = vmatprep.subr.mxu0 %v10865_v34  ;;  %9706 = vmatprep.subr.mxu1 %v10865_v34 }
0x13d3   :  { %9688 = vmatpush3.msra.mxu0 %v8589_v57  ;;  %9707 = vmatpush3.msra.mxu1 %v3156_v58 }
0x13d4   :  { %9689 = vmatprep.subr.mxu0 %v10865_v34  ;;  %9708 = vmatprep.subr.mxu1 %v10865_v34 }
0x13d5   :  { %9690 = vmatpush3.msra.mxu0 %v8588_v59  ;;  %9691 = vmatprep.mubr.msk.f32.mxu0 %vm10866_vm2, %v10865_v34 }
0x13d6   :  { %9710 = vmatprep.mubr.msk.f32.mxu1 %vm10866_vm2, %v10865_v34  ;;  %9713 = vmatprep.subr.mxu0 %v10865_v34 }
0x13d7   :  { %9709 = vmatpush3.msra.mxu1 %v3155_v60 }
0x13d8   :  { %9718 = vmatprep.subr.mxu1 %v10865_v34 }
0x1485   :  { %v3151_v61 = vpop.f32.mrf.mxu0  ;;  %v3234_v62 = vpop.f32.mrf.mxu1 }
0x1486   :  { %9692 = vmatmul.mubr.msk.f32.vlgmr.msra.gmra.mxu0 %vm1303_vm7, %v3234_v62  ;;  %9711 = vmatmul.mubr.msk.f32.vlgmr.msra.gmra.mxu1 %vm1303_vm7, %v3151_v61  ;;  %v8638_v61 = vld [vmem:[%s12297_s22 + $0x18] sm:$0xff]  ;;  %s12324_s22 = sld [smem:[#allocation50_spill]] }
0x1487   :  { %9714 = vmatpush3.msra.mxu0 %v11522_v41  ;;  %v9674_v0 = vpop.f32.mrf.mxu1  ;;  %9715 = vmatprep.mubr.msk.f32.mxu0 %vm10866_vm2, %v10865_v34  ;;  %v9669_v2 = vpop.f32.mrf.mxu0 }
0x1488   :  { %9737 = vmatprep.subr.mxu0 %v10865_v34  ;;  %9719 = vmatpush3.msra.mxu1 %v8607_v63  ;;  %v4342_v2 = vld [vmem:[%s12298_s24] sm:$0xff] }
0x1489   :  { %9720 = vmatprep.subr.mxu1 %v10865_v34  ;;  %9734 = vmatprep.mubr.msk.f32.mxu1 %vm10866_vm2, %v10865_v34 }
0x148a   :  { %9716 = vmatmul.mubr.msk.f32.vlgmr.msra.gmra.mxu0 %vm1464_vm8, %v8598_v1  ;;  %9721 = vmatpush3.msra.mxu1 %v8606_v3  ;;  %v8642_v3 = vld [vmem:[%s12298_s24 + $0x10] sm:$0xff] }
0x148b   :  { %9738 = vmatpush3.msra.mxu0 %v11522_v41  ;;  %9739 = vmatprep.mubr.msk.f32.mxu0 %vm10866_vm2, %v10865_v34  ;;  %v3719_v41 = vld [vmem:[%s12295_s16] sm:$0x3]  ;;  %s12321_s16 = sld [smem:[#allocation57_spill]] }
0x148c   :  { %9722 = vmatprep.subr.mxu1 %v10865_v34  ;;  %9742 = vmatprep.subr.mxu0 %v10865_v34 }
0x148d   :  { %9723 = vmatpush3.msra.mxu1 %v8605_v4 }
0x148e   :  { %9740 = vmatmul.mubr.msk.f32.vlgmr.msra.gmra.mxu0 %vm1464_vm8, %v8609_v5  ;;  %9724 = vmatprep.subr.mxu1 %v10865_v34 }
0x148f   :  { %9743 = vmatpush3.msra.mxu0 %v8618_v6  ;;  %9725 = vmatpush3.msra.mxu1 %v8604_v7 }
0x1490   :  { %9744 = vmatprep.subr.mxu0 %v10865_v34  ;;  %9726 = vmatprep.subr.mxu1 %v10865_v34 }
0x1491   :  { %9745 = vmatpush3.msra.mxu0 %v8617_v8  ;;  %9727 = vmatpush3.msra.mxu1 %v8603_v9  ;;  %v4340_v8 = vld [vmem:[%s12299_s23] sm:$0xff]  ;;  %s12326_s23 = sld [smem:[#allocation80_spill]] }
0x1492   :  { %9746 = vmatprep.subr.mxu0 %v10865_v34  ;;  %9728 = vmatprep.subr.mxu1 %v10865_v34 }
0x1493   :  { %9747 = vmatpush3.msra.mxu0 %v8616_v10  ;;  %9758 = vmatprep.mubr.msk.f32.mxu0 %vm10866_vm2, %v10865_v34 }
0x1494   :  { %9748 = vmatprep.subr.mxu0 %v10865_v34  ;;  %9729 = vmatpush3.msra.mxu1 %v8602_v11 }
0x1495   :  { %9749 = vmatpush3.msra.mxu0 %v8615_v12  ;;  %9730 = vmatprep.subr.mxu1 %v10865_v34  ;;  %v4343_v12 = vld [vmem:[%s12298_s24 + $0x8] sm:$0xff] }
0x1496   :  { %9750 = vmatprep.subr.mxu0 %v10865_v34  ;;  %9731 = vmatpush3.msra.mxu1 %v8601_v13  ;;  %v8643_v13 = vld [vmem:[%s12298_s24 + $0x18] sm:$0xff] }
0x1497   :  { %9751 = vmatpush3.msra.mxu0 %v8614_v14  ;;  %9732 = vmatprep.subr.mxu1 %v10865_v34  ;;  %v8653_v14 = vld [vmem:[%s12300_s29 + $0x78] sm:$0xff] }
0x1498   :  { %9752 = vmatprep.subr.mxu0 %v10865_v34  ;;  %9733 = vmatpush3.msra.mxu1 %v8600_v15  ;;  %v4432_v15 = vld [vmem:[%s12300_s29 + $0x38] sm:$0xff] }
0x1499   :  { %9753 = vmatpush3.msra.mxu0 %v8613_v16  ;;  %9761 = vmatprep.subr.mxu1 %v10865_v34  ;;  %v8652_v16 = vld [vmem:[%s12300_s29 + $0x70] sm:$0xff] }
0x149a   :  { %9754 = vmatprep.subr.mxu0 %v10865_v34 }
0x149b   :  { %9755 = vmatpush3.msra.mxu0 %v8612_v17  ;;  %v4431_v17 = vld [vmem:[%s12300_s29 + $0x30] sm:$0xff] }
0x149c   :  { %9756 = vmatprep.subr.mxu0 %v10865_v34 }
0x149d   :  { %9757 = vmatpush3.msra.mxu0 %v8611_v18  ;;  %v8651_v18 = vld [vmem:[%s12300_s29 + $0x68] sm:$0xff] }
0x149e   :  { %9771 = vmatprep.subr.mxu0 %v10865_v34 }
0x1546   :  { %v3316_v19 = vpop.f32.mrf.mxu0  ;;  %v3389_v20 = vpop.f32.mrf.mxu1 }
0x1547   :  { %v3390_v21 = vadd.f32 %v3389_v20, %v3316_v19  ;;  %v4430_v19 = vld [vmem:[%s12300_s29 + $0x28] sm:$0xff]  ;;  %v8650_v20 = vld [vmem:[%s12300_s29 + $0x60] sm:$0xff] }
0x1548   :  { %v9693_v22 = vpop.f32.mrf.mxu0  ;;  %v9712_v23 = vpop.f32.mrf.mxu1 }
0x1549   :  { %v8649_v22 = vld [vmem:[%s12300_s29 + $0x58] sm:$0xff] }
0x154a   :  { %v3464_v24 = vpop.f32.mrf.mxu0  ;;  %v4428_v23 = vld [vmem:[%s12300_s29 + $0x18] sm:$0xff] }
0x154b   :  { %9735 = vmatmul.mubr.msk.f32.vlgmr.msra.gmra.mxu1 %vm1303_vm7, %v3464_v24  ;;  %v8648_v24 = vld [vmem:[%s12300_s29 + $0x50] sm:$0xff] }
0x154c   :  { %v9717_v25 = vpop.f32.mrf.mxu0  ;;  %9763 = vmatprep.mubr.msk.f32.mxu1 %vm10866_vm2, %v10865_v34 }
0x154d   :  { %v4427_v25 = vld [vmem:[%s12300_s29 + $0x10] sm:$0xff] }
0x154e   :  { %v3622_v26 = vpop.f32.mrf.mxu0 }
0x154f   :  { %9759 = vmatmul.mubr.msk.f32.vlgmr.msra.gmra.mxu0 %vm1303_vm7, %v3622_v26  ;;  %v8647_v26 = vld [vmem:[%s12300_s29 + $0x48] sm:$0xff] }
0x1550   :  { %v9741_v27 = vpop.f32.mrf.mxu0  ;;  %9773 = vmatprep.mubr.msk.f32.mxu0 %vm10866_vm2, %v10865_v34  ;;  %9772 = vmatpush3.msra.mxu0 %v8627_v48  ;;  %v8681_v48 = vld [vmem:[%s12300_s29 + $0xe8] sm:$0xff] }
0x1551   :  { %9781 = vmatprep.subr.mxu0 %v10865_v34  ;;  %v8646_v27 = vld [vmem:[%s12300_s29 + $0x40] sm:$0xff] }
0x160b   :  { %v3546_v28 = vpop.f32.mrf.mxu1 }
0x160c   :  { %v3550_v30 = vadd.f32 %v3546_v28, %v3390_v21  ;;  %v4429_v21 = vld [vmem:[%s12300_s29 + $0x20] sm:$0xff]  ;;  %v4426_v28 = vld [vmem:[%s12300_s29 + $0x8] sm:$0xff] }
0x160d   :  { %v9736_v29 = vpop.f32.mrf.mxu1 }
0x160e   :  { %v4425_v29 = vld [vmem:[%s12300_s29] sm:$0xff] }
0x160f   :  { %v3704_v31 = vpop.f32.mrf.mxu0 }
0x1610   :  { %v3708_v33 = vadd.f32 %v3704_v31, %v3550_v30  ;;  %v8669_v30 = vld [vmem:[%s12300_s29 + $0xb8] sm:$0xff] }
0x1611   :  { %v9760_v35 = vpop.f32.mrf.mxu0 }
0x1612   :  { %v11624_v36 = vadd.f32 %v8620_v32, %v3708_v33 }
0x1614   :  { %v8621_v37 = vclamps-f32 %v11624_v36, 10.0  ;;  %3730 = vst.msk [vmem:[#allocation20] sm:$0x3] %vm3729_vm11, %v11624_v36 }
0x1616   :  { %v3720_v38 = vmul.f32 0.5, %v8621_v37 }
0x1618   :  { %v3721_v39 = vmul.f32 1.442695, %v3720_v38  ;;  %v8658_v38 = vld [vmem:[%s12298_s24 + $0x20] sm:$0xff] }
0x161a   :  { %10462 = vpow2.f32 %v3721_v39  ;;  %v8668_v39 = vld [vmem:[%s12300_s29 + $0xb0] sm:$0xff] }
0x1627   :  { %v10463_v40 = vpop.eup %10462 }
0x1628   :  { %3724 = vrot.lane.b32.xlu0 %v10463_v40, %s10868_s18  ;;  %v8659_v40 = vld [vmem:[%s12298_s24 + $0x28] sm:$0xff] }
0x169a   :  { %v3725_v42 = vpop.permute.xlu0 %3724 }
0x169b   :  { %v3727_v43 = vmul.f32 %v3725_v42, %v3719_v41  ;;  %v8672_v41 = vld [vmem:[%s12298_s24 + $0x30] sm:$0xff]  ;;  %v8667_v42 = vld [vmem:[%s12300_s29 + $0xa8] sm:$0xff] }
0x169d   :  { %v3728_v44 = vadd.f32 %v3727_v43, %v11624_v36  ;;  %v8683_v43 = vld [vmem:[%s12300_s29 + $0xf8] sm:$0xff] }
0x169f   :  { %9762 = vmatpush3.msk.msra.mxu1 %vm1094_vm6, %v3728_v44  ;;  %3736 = vst.msk [vmem:[#allocation23] sm:$0x3] %vm3729_vm11, %v3728_v44 }
0x16a0   :  { %9764 = vmatmul.mubr.msk.f32.vlgmr.msra.gmra.mxu1 %vm1087_vm5, %v3737_v45  ;;  %9766 = vmatprep.subr.mxu1 %v10865_v34  ;;  %v8666_v45 = vld [vmem:[%s12300_s29 + $0xa0] sm:$0xff] }
0x16a1   :  { %9767 = vmatpush3.msk.msra.mxu1 %vm1094_vm6, %v3728_v44  ;;  %9768 = vmatprep.mubr.msk.f32.mxu1 %vm10866_vm2, %v10865_v34 }
0x16a2   :  { %9776 = vmatprep.subr.mxu1 %v10865_v34 }
0x16a4   :  { %9769 = vmatmul.mubr.msk.f32.vlgmr.msra.gmra.mxu1 %vm1087_vm5, %v8624_v46  ;;  %v8682_v46 = vld [vmem:[%s12300_s29 + $0xf0] sm:$0xff] }
0x16a5   :  { %9778 = vmatprep.mubr.msk.f32.mxu1 %vm10866_vm2, %v10865_v34  ;;  %9777 = vmatpush3.msra.mxu1 %v3814_v47  ;;  %v8665_v47 = vld [vmem:[%s12300_s29 + $0x98] sm:$0xff] }
0x16a6   :  { %9786 = vmatprep.subr.mxu1 %v10865_v34 }
0x1760   :  { %v3810_v49 = vpop.f32.mrf.mxu1 }
0x1761   :  { %9779 = vmatmul.mubr.msk.f32.vlgmr.msra.gmra.mxu1 %vm1464_vm8, %v3810_v49  ;;  %v8664_v49 = vld [vmem:[%s12300_s29 + $0x90] sm:$0xff] }
0x1762   :  { %v9765_v50 = vpop.f32.mrf.mxu1  ;;  %9788 = vmatprep.mubr.msk.f32.mxu1 %vm10866_vm2, %v10865_v34  ;;  %9787 = vmatpush3.msra.mxu1 %v8633_v55  ;;  %v8677_v55 = vld [vmem:[%s12300_s29 + $0xc8] sm:$0xff] }
0x1763   :  { %9796 = vmatprep.subr.mxu1 %v10865_v34  ;;  %v8680_v50 = vld [vmem:[%s12300_s29 + $0xe0] sm:$0xff] }
0x1764   :  { %v3886_v51 = vpop.f32.mrf.mxu1 }
0x1765   :  { %9774 = vmatmul.mubr.msk.f32.vlgmr.msra.gmra.mxu0 %vm1464_vm8, %v3886_v51  ;;  %v8663_v51 = vld [vmem:[%s12300_s29 + $0x88] sm:$0xff] }
0x1766   :  { %9782 = vmatpush3.msk.msra.mxu0 %vm1094_vm6, %v3728_v44  ;;  %v9770_v52 = vpop.f32.mrf.mxu1  ;;  %9783 = vmatprep.mubr.msk.f32.mxu0 %vm10866_vm2, %v10865_v34 }
0x1767   :  { %9791 = vmatprep.subr.mxu0 %v10865_v34  ;;  %v8679_v52 = vld [vmem:[%s12300_s29 + $0xd8] sm:$0xff] }
0x1769   :  { %9784 = vmatmul.mubr.msk.f32.vlgmr.msra.gmra.mxu0 %vm1087_vm5, %v8630_v53  ;;  %v8662_v53 = vld [vmem:[%s12300_s29 + $0x80] sm:$0xff] }
0x176a   :  { %9792 = vmatpush3.msk.msra.mxu0 %vm1094_vm6, %v3728_v44  ;;  %9793 = vmatprep.mubr.msk.f32.mxu0 %vm10866_vm2, %v10865_v34  ;;  %v8673_v44 = vld [vmem:[%s12298_s24 + $0x38] sm:$0xff]  ;;  %s12325_s24 = sld [smem:[#allocation79_spill]] }
0x176d   :  { %9794 = vmatmul.mubr.msk.f32.vlgmr.msra.gmra.mxu0 %vm1087_vm5, %v8635_v54  ;;  %v8678_v54 = vld [vmem:[%s12300_s29 + $0xd0] sm:$0xff] }
0x176e   :  { %9803 = vmatprep.mubr.msk.f32.mxu0 %vm1464_vm8, %v4342_v2 }
0x1821   :  { %v4034_v56 = vpop.f32.mrf.mxu1 }
0x1823   :  { %v9780_v57 = vpop.f32.mrf.mxu1 }
0x1825   :  { %v3961_v58 = vpop.f32.mrf.mxu0 }
0x1826   :  { %v4035_v59 = vadd.f32 %v4034_v56, %v3961_v58  ;;  %v8676_v56 = vld [vmem:[%s12300_s29 + $0xc0] sm:$0xff]  ;;  %s10869_s29 = smov [#allocation21]  }
0x1827   :  { %v9775_v60 = vpop.f32.mrf.mxu0 }
0x1829   :  { %v4109_v62 = vpop.f32.mrf.mxu0 }
0x182a   :  { %9789 = vmatmul.mubr.msk.f32.vlgmr.msra.gmra.mxu1 %vm1464_vm8, %v4109_v62 }
0x182b   :  { %v9785_v63 = vpop.f32.mrf.mxu0  ;;  %9797 = vmatpush3.msra.mxu1 %v8638_v61  ;;  %9798 = vmatprep.mubr.msk.f32.mxu1 %vm10866_vm2, %v10865_v34 }
0x182d   :  { %v4260_v0 = vpop.f32.mrf.mxu0 }
0x182e   :  { %9799 = vmatmul.mubr.msk.f32.vlgmr.msra.gmra.mxu1 %vm1464_vm8, %v4260_v0 }
0x182f   :  { %v9795_v1 = vpop.f32.mrf.mxu0  ;;  %9808 = vmatprep.mubr.msk.f32.mxu1 %vm1464_vm8, %v8642_v3 }
0x18ea   :  { %v4184_v4 = vpop.f32.mrf.mxu1 }
0x18eb   :  { %v4188_v6 = vadd.f32 %v4184_v4, %v4035_v59 }
0x18ec   :  { %v9790_v5 = vpop.f32.mrf.mxu1 }
0x18ee   :  { %v4335_v7 = vpop.f32.mrf.mxu1 }
0x18ef   :  { %v4339_v9 = vadd.f32 %v4335_v7, %v4188_v6  ;;  %v8686_v7 = vld [vmem:[%s12301_s26] ss:$0 sm:$0xff]  ;;  %s8389_s26 = sshll.u32 %s10869_s29, 4  ;;  %s8390_s26 = int_to_ptr.vmem [resolvable:$true] %s8389_s26 }
0x18f0   :  { %v9800_v10 = vpop.f32.mrf.mxu1  ;;  %p10717_p0 = scmp.lt.s32.totalorder %s8390_s26, %s8390_s26 }
0x18f1   :  { %v11678_v11 = vadd.f32 %v4340_v8, %v4339_v9 }
0x18f3   :  { %9801 = vmatprep.subr.mxu0 %v11678_v11  ;;  %9806 = vmatprep.subr.mxu1 %v11678_v11 }
0x18f4   :  { %9802 = vmatpush3.msra.mxu0 %v11678_v11  ;;  %9807 = vmatpush3.msra.mxu1 %v11678_v11 }
0x18f5   :  { %9804 = vmatmul.mubr.msk.f32.vlgmr.msra.gmra.mxu0 %vm1464_vm8, %v4343_v12  ;;  %9809 = vmatmul.mubr.msk.f32.vlgmr.msra.gmra.mxu1 %vm1464_vm8, %v8643_v13 }
0x18f6   :  { %9811 = vmatprep.subr.mxu0 %v8653_v14  ;;  %9830 = vmatprep.subr.mxu1 %v4432_v15 }
0x18f7   :  { %9812 = vmatpush3.msra.mxu0 %v8653_v14  ;;  %9831 = vmatpush3.msra.mxu1 %v4432_v15  ;;  %v11750_v14 = vld [vmem:[%s12302_s0] sm:$0x3]  ;;  %s10870_s0 = smov [#allocation20]  }
0x18f8   :  { %9813 = vmatprep.subr.mxu0 %v8652_v16  ;;  %9832 = vmatprep.subr.mxu1 %v4431_v17 }
0x18f9   :  { %9814 = vmatpush3.msra.mxu0 %v8652_v16  ;;  %9833 = vmatpush3.msra.mxu1 %v4431_v17 }
0x18fa   :  { %9815 = vmatprep.subr.mxu0 %v8651_v18  ;;  %9834 = vmatprep.subr.mxu1 %v4430_v19 }
0x18fb   :  { %9816 = vmatpush3.msra.mxu0 %v8651_v18  ;;  %9835 = vmatpush3.msra.mxu1 %v4430_v19 }
0x18fc   :  { %9817 = vmatprep.subr.mxu0 %v8650_v20  ;;  %9836 = vmatprep.subr.mxu1 %v4429_v21 }
0x18fd   :  { %9818 = vmatpush3.msra.mxu0 %v8650_v20  ;;  %9837 = vmatpush3.msra.mxu1 %v4429_v21 }
0x18fe   :  { %9819 = vmatprep.subr.mxu0 %v8649_v22  ;;  %9838 = vmatprep.subr.mxu1 %v4428_v23 }
0x18ff   :  { %9820 = vmatpush3.msra.mxu0 %v8649_v22  ;;  %9839 = vmatpush3.msra.mxu1 %v4428_v23  ;;  %v11769_v23 = vld [vmem:[%s12303_s17] sm:$0xff] }
0x1900   :  { %9821 = vmatprep.subr.mxu0 %v8648_v24  ;;  %9840 = vmatprep.subr.mxu1 %v4427_v25 }
0x1901   :  { %9822 = vmatpush3.msra.mxu0 %v8648_v24  ;;  %9841 = vmatpush3.msra.mxu1 %v4427_v25 }
0x1902   :  { %9823 = vmatprep.subr.mxu0 %v8647_v26  ;;  %9842 = vmatprep.subr.mxu1 %v4426_v28 }
0x1903   :  { %9824 = vmatpush3.msra.mxu0 %v8647_v26  ;;  %9843 = vmatpush3.msra.mxu1 %v4426_v28  ;;  %v11776_v26 = vld [vmem:[%s12303_s17 + $0x8] sm:$0xff]  ;;  %s8379_s17 = sshll.u32 %s10870_s0, 4  ;;  %s8380_s17 = int_to_ptr.vmem [resolvable:$true] %s8379_s17 }
0x1904   :  { %9825 = vmatprep.subr.mxu0 %v8646_v27  ;;  %9844 = vmatprep.subr.mxu1 %v4425_v29 }
0x1905   :  { %9826 = vmatpush3.msra.mxu0 %v8646_v27  ;;  %9845 = vmatpush3.msra.mxu1 %v4425_v29 }
0x1906   :  { %9849 = vmatprep.subr.mxu0 %v11678_v11  ;;  %9854 = vmatprep.subr.mxu1 %v8669_v30 }
0x19b5   :  { %v9805_v31 = vpop.f32.mrf.mxu0  ;;  %v9810_v32 = vpop.f32.mrf.mxu1 }
0x19b7   :  { %v4416_v33 = vpop.f32.mrf.mxu0  ;;  %v4508_v35 = vpop.f32.mrf.mxu1 }
0x19b8   :  { %9827 = vmatprep.mubr.msk.f32.mxu0 %vm1303_vm7, %v4508_v35  ;;  %9846 = vmatprep.mubr.msk.f32.mxu1 %vm1303_vm7, %v4416_v33  ;;  %v5422_v33 = vld [vmem:[%s12304_s5 + $0x38] sm:$0xff]  ;;  %v5421_v35 = vld [vmem:[%s12304_s5 + $0x30] sm:$0xff] }
0x19b9   :  { %9828 = vmatmul.mubr.msk.f32.vlgmr.msra.gmra.mxu0 %vm1303_vm7, %v9810_v32  ;;  %9847 = vmatmul.mubr.msk.f32.vlgmr.msra.gmra.mxu1 %vm1303_vm7, %v9805_v31 }
0x19ba   :  { %9850 = vmatpush3.msra.mxu0 %v11678_v11  ;;  %9851 = vmatprep.mubr.msk.f32.mxu0 %vm1464_vm8, %v8658_v38 }
0x19bb   :  { %9873 = vmatprep.subr.mxu0 %v11678_v11  ;;  %9855 = vmatpush3.msra.mxu1 %v8669_v30 }
0x19bc   :  { %9856 = vmatprep.subr.mxu1 %v8668_v39 }
0x19bd   :  { %9852 = vmatmul.mubr.msk.f32.vlgmr.msra.gmra.mxu0 %vm1464_vm8, %v8659_v40  ;;  %9857 = vmatpush3.msra.mxu1 %v8668_v39  ;;  %v5420_v40 = vld [vmem:[%s12304_s5 + $0x28] sm:$0xff] }
0x19be   :  { %9874 = vmatpush3.msra.mxu0 %v11678_v11  ;;  %9875 = vmatprep.mubr.msk.f32.mxu0 %vm1464_vm8, %v8672_v41 }
0x19bf   :  { %9858 = vmatprep.subr.mxu1 %v8667_v42  ;;  %9878 = vmatprep.subr.mxu0 %v8683_v43 }
0x19c0   :  { %9859 = vmatpush3.msra.mxu1 %v8667_v42  ;;  %v5419_v42 = vld [vmem:[%s12304_s5 + $0x20] sm:$0xff] }
0x19c1   :  { %9876 = vmatmul.mubr.msk.f32.vlgmr.msra.gmra.mxu0 %vm1464_vm8, %v8673_v44  ;;  %9860 = vmatprep.subr.mxu1 %v8666_v45  ;;  %v5418_v44 = vld [vmem:[%s12304_s5 + $0x18] sm:$0xff] }
0x19c2   :  { %9879 = vmatpush3.msra.mxu0 %v8683_v43  ;;  %9861 = vmatpush3.msra.mxu1 %v8666_v45  ;;  %v5417_v45 = vld [vmem:[%s12304_s5 + $0x10] sm:$0xff] }
0x19c3   :  { %9880 = vmatprep.subr.mxu0 %v8682_v46  ;;  %9862 = vmatprep.subr.mxu1 %v8665_v47 }
0x19c4   :  { %9881 = vmatpush3.msra.mxu0 %v8682_v46  ;;  %9863 = vmatpush3.msra.mxu1 %v8665_v47  ;;  %v5416_v46 = vld [vmem:[%s12304_s5 + $0x8] sm:$0xff]  ;;  %v5415_v47 = vld [vmem:[%s12304_s5] sm:$0xff]  ;;  %s10712_s5 = scalar_lea.vmem %s8390_s26, 32 }
0x19c5   :  { %9882 = vmatprep.subr.mxu0 %v8681_v48  ;;  %9864 = vmatprep.subr.mxu1 %v8664_v49  ;;  %p10713_p13 = scmp.ne.s32.totalorder %s8390_s26, %s10712_s5  ;;  %p10718_p1 = scmp.lt.s32.totalorder %s10712_s5, %s10712_s5 }
0x19c6   :  { %9883 = vmatpush3.msra.mxu0 %v8681_v48  ;;  %9865 = vmatpush3.msra.mxu1 %v8664_v49 }
0x19c7   :  { %9884 = vmatprep.subr.mxu0 %v8680_v50  ;;  %9866 = vmatprep.subr.mxu1 %v8663_v51  ;;  %p10719_p2 = por %p10718_p1, %p10717_p0 }
0x19c8   :  { %9885 = vmatpush3.msra.mxu0 %v8680_v50  ;;  %9867 = vmatpush3.msra.mxu1 %v8663_v51  ;;  %v8695_v51 = vld [vmem:[%s12305_s9] ss:$0 sm:$0xff] }
0x19c9   :  { %9886 = vmatprep.subr.mxu0 %v8679_v52  ;;  %9868 = vmatprep.subr.mxu1 %v8662_v53  ;;  %p10720_p3 = pnand %p10719_p2, %p10713_p13 }
0x19ca   :  { %9887 = vmatpush3.msra.mxu0 %v8679_v52  ;;  %9869 = vmatpush3.msra.mxu1 %v8662_v53 }
0x19cb   :  { %9888 = vmatprep.subr.mxu0 %v8678_v54  ;;  %9897 = vmatprep.subr.mxu1 %v10865_v34 }
0x19cc   :  { %9889 = vmatpush3.msra.mxu0 %v8678_v54  ;;  %v8696_v54 = vld [vmem:[%s12306_s6] ss:$0 sm:$0xff] }
0x19cd   :  { %9890 = vmatprep.subr.mxu0 %v8677_v55 }
0x19ce   :  { %9891 = vmatpush3.msra.mxu0 %v8677_v55 }
0x19cf   :  { %9892 = vmatprep.subr.mxu0 %v8676_v56 }
0x19d0   :  { %9893 = vmatpush3.msra.mxu0 %v8676_v56 }
0x1a79   :  { %v9829_v57 = vpop.f32.mrf.mxu0  ;;  %v9848_v63 = vpop.f32.mrf.mxu1 }
0x1a7a   :  { %v4685_v2 = vadd.f32 %v9848_v63, %v9829_v57 }
0x1a7b   :  { %v4598_v58 = vpop.f32.mrf.mxu0  ;;  %v4679_v0 = vpop.f32.mrf.mxu1 }
0x1a7c   :  { %v4680_v4 = vadd.f32 %v4679_v0, %v4598_v58 }
0x1a7d   :  { %v9853_v59 = vpop.f32.mrf.mxu0 }
0x1a7f   :  { %v4763_v60 = vpop.f32.mrf.mxu0 }
0x1a80   :  { %9870 = vmatprep.mubr.msk.f32.mxu1 %vm1303_vm7, %v4763_v60 }
0x1a81   :  { %9871 = vmatmul.mubr.msk.f32.vlgmr.msra.gmra.mxu1 %vm1303_vm7, %v9853_v59  ;;  %v9877_v61 = vpop.f32.mrf.mxu0 }
0x1a82   :  { %9901 = vmatprep.mubr.msk.f32.mxu1 %vm10866_vm2, %v10865_v34 }
0x1a83   :  { %v4939_v62 = vpop.f32.mrf.mxu0 }
0x1a84   :  { %9894 = vmatprep.mubr.msk.f32.mxu0 %vm1303_vm7, %v4939_v62 }
0x1a85   :  { %9895 = vmatmul.mubr.msk.f32.vlgmr.msra.gmra.mxu0 %vm1303_vm7, %v9877_v61 }
0x1a86   :  { %9913 = vmatprep.mubr.msk.f32.mxu0 %vm1087_vm5, %v11769_v23 }
0x1b41   :  { %v9872_v1 = vpop.f32.mrf.mxu1 }
0x1b42   :  { %v4863_v5 = vadd.f32 %v9872_v1, %v4685_v2  ;;  %v5575_v2 = vld [vmem:[%s12307_s12] sm:$0xff] }
0x1b43   :  { %v4853_v3 = vpop.f32.mrf.mxu1 }
0x1b44   :  { %v4862_v8 = vadd.f32 %v4853_v3, %v4680_v4 }
0x1b45   :  { %v9896_v6 = vpop.f32.mrf.mxu0 }
0x1b46   :  { %v5039_v9 = vadd.f32 %v9896_v6, %v4863_v5  ;;  %v5657_v6 = vld [vmem:[%s12308_s20] sm:$0x3] }
0x1b47   :  { %v5029_v10 = vpop.f32.mrf.mxu0 }
0x1b48   :  { %v11744_v11 = vadd.f32 %v8686_v7, %v5039_v9  ;;  %v5038_v12 = vadd.f32 %v5029_v10, %v4862_v8 }
0x1b4a   :  { %v11746_v13 = vadd.f32 %v8686_v7, %v5038_v12  ;;  %9898 = vmatpush3.msra.mxu1 %v11744_v11  ;;  %v5126_v15 = vmul.f32 %v11744_v11, %v11744_v11  ;;  %v8700_v7 = vld [vmem:[%s12309_s4] ss:$0 sm:$0xff] }
0x1b4b   :  { %9899 = vmatprep.subr.mxu1 %v10865_v34  ;;  %v8702_v12 = vld [vmem:[%s12310_s28] ss:$0 sm:$0xff] }
0x1b4c   :  { %9900 = vmatpush3.msra.mxu1 %v11746_v13  ;;  %v5125_v16 = vmul.f32 %v11746_v13, %v11746_v13 }
0x1b4d   :  { %9902 = vmatmul.mubr.msk.f32.vlgmr.msra.gmra.mxu1 %vm928_vm3, %v11750_v14  ;;  %9904 = vmatprep.subr.mxu1 %v10865_v34 }
0x1b4e   :  { %9905 = vmatpush3.msra.mxu1 %v5126_v15  ;;  %9908 = vmatprep.mubr.msk.f32.mxu1 %vm10866_vm2, %v10865_v34 }
0x1b4f   :  { %9906 = vmatprep.subr.mxu1 %v10865_v34 }
0x1b50   :  { %9907 = vmatpush3.msra.mxu1 %v5125_v16 }
0x1b51   :  { %9909 = vmatmul.mubr.msk.f32.vlgmr.msra.gmra.mxu1 %vm928_vm3, %v11750_v14 }
0x1b52   :  { %9918 = vmatprep.mubr.msk.f32.mxu1 %vm1087_vm5, %v11769_v23 }
0x1c0d   :  { %v5121_v17 = vpop.f32.mrf.mxu1 }
0x1c0e   :  { %v5197_v18 = vsel %vm1074_vm4, %v5121_v17, 0.0 }
0x1c0f   :  { %5198 = vadd.xlane.f32.xlu0 %v5197_v18  ;;  %v9903_v19 = vpop.f32.mrf.mxu1 }
0x1c11   :  { %v5193_v20 = vpop.f32.mrf.mxu1 }
0x1c12   :  { %v5201_v21 = vsel %vm1074_vm4, %v5193_v20, 0.0  ;;  %v5825_v20 = vld [vmem:[%s12311_s13] sm:$0xff] }
0x1c13   :  { %5202 = vadd.xlane.f32.xlu1 %v5201_v21  ;;  %v9910_v22 = vpop.f32.mrf.mxu1 }
0x1c98   :  { %v5199_v24 = vpop.xlane.xlu0 %5198 }
0x1c99   :  { %v5200_v25 = vmul.f32 0.001953125, %v5199_v24  ;;  %v8715_v24 = vld [vmem:[%s12312_s1 + $0x20] sm:$0xff] }
0x1c9b   :  { %9911 = vmatprep.subr.msk.mxu0 %vm1094_vm6, %v5200_v25  ;;  %v5205_v28 = vmul.f32 %v5200_v25, %v5200_v25 }
0x1c9c   :  { %9912 = vmatpush3.msk.msra.mxu0 %vm1094_vm6, %v5200_v25  ;;  %v5203_v27 = vpop.xlane.xlu1 %5202 }
0x1c9d   :  { %v5204_v29 = vmul.f32 0.001953125, %v5203_v27  ;;  %9914 = vmatmul.mubr.msk.f32.vlgmr.msra.gmra.mxu0 %vm1087_vm5, %v11776_v26  ;;  %9921 = vmatprep.subr.mxu0 %v5422_v33 }
0x1c9e   :  { %9922 = vmatpush3.msra.mxu0 %v5422_v33  ;;  %v8717_v33 = vld [vmem:[%s12312_s1 + $0x30] sm:$0xff] }
0x1c9f   :  { %v5206_v30 = vsub.f32 %v5204_v29, %v5205_v28  ;;  %9923 = vmatprep.subr.mxu0 %v5421_v35  ;;  %v5910_v29 = vld [vmem:[%s12312_s1 + $0x8] sm:$0xff] }
0x1ca0   :  { %9924 = vmatpush3.msra.mxu0 %v5421_v35  ;;  %v8729_v35 = vld [vmem:[%s12313_s2 + $0x70] sm:$0xff] }
0x1ca1   :  { %v5207_v31 = vadd.f32 1e-05, %v5206_v30  ;;  %9925 = vmatprep.subr.mxu0 %v5420_v40  ;;  %v8716_v30 = vld [vmem:[%s12312_s1 + $0x28] sm:$0xff] }
0x1ca2   :  { %9926 = vmatpush3.msra.mxu0 %v5420_v40  ;;  %v5912_v40 = vld [vmem:[%s12312_s1 + $0x18] sm:$0xff] }
0x1ca3   :  { %10464 = vrsqrt.f32 %v5207_v31  ;;  %9927 = vmatprep.subr.mxu0 %v5419_v42  ;;  %v8730_v31 = vld [vmem:[%s12313_s2 + $0x78] sm:$0xff] }
0x1ca4   :  { %9928 = vmatpush3.msra.mxu0 %v5419_v42  ;;  %v8727_v42 = vld [vmem:[%s12313_s2 + $0x60] sm:$0xff] }
0x1ca5   :  { %9929 = vmatprep.subr.mxu0 %v5418_v44 }
0x1ca6   :  { %9930 = vmatpush3.msra.mxu0 %v5418_v44  ;;  %v8726_v44 = vld [vmem:[%s12313_s2 + $0x58] sm:$0xff] }
0x1ca7   :  { %9931 = vmatprep.subr.mxu0 %v5417_v45 }
0x1ca8   :  { %9932 = vmatpush3.msra.mxu0 %v5417_v45  ;;  %v6015_v45 = vld [vmem:[%s12313_s2 + $0x28] sm:$0xff] }
0x1ca9   :  { %9933 = vmatprep.subr.mxu0 %v5416_v46 }
0x1caa   :  { %9934 = vmatpush3.msra.mxu0 %v5416_v46  ;;  %v8725_v46 = vld [vmem:[%s12313_s2 + $0x50] sm:$0xff] }
0x1cab   :  { %9935 = vmatprep.subr.mxu0 %v5415_v47 }
0x1cac   :  { %9936 = vmatpush3.msra.mxu0 %v5415_v47  ;;  %v6014_v47 = vld [vmem:[%s12313_s2 + $0x20] sm:$0xff] }
0x1cad   :  { %9962 = vmatprep.subr.mxu0 %v5825_v20 }
0x1cb0   :  { %v10465_v32 = vpop.eup %10464 }
0x1cb1   :  { %9916 = vmatprep.subr.msk.mxu1 %vm1094_vm6, %v10465_v32 }
0x1cb2   :  { %9917 = vmatpush3.msk.msra.mxu1 %vm1094_vm6, %v10465_v32  ;;  %v5911_v32 = vld [vmem:[%s12312_s1 + $0x10] sm:$0xff] }
0x1cb3   :  { %9919 = vmatmul.mubr.msk.f32.vlgmr.msra.gmra.mxu1 %vm1087_vm5, %v11776_v26  ;;  %9940 = vmatprep.subr.mxu1 %v10865_v34 }
0x1cb4   :  { %9944 = vmatprep.mubr.msk.f32.mxu1 %vm10866_vm2, %v10865_v34 }
0x1d5d   :  { %v9915_v38 = vpop.f32.mrf.mxu0 }
0x1d5e   :  { %5378 = vperm.xlu1 %10448, %v9915_v38   ;;  %v6017_v38 = vld [vmem:[%s12313_s2 + $0x38] sm:$0xff] }
0x1d5f   :  { %v5284_v39 = vpop.f32.mrf.mxu0 }
0x1d60   :  { %5373 = vperm.xlu0 %10449, %v5284_v39   ;;  %v8718_v39 = vld [vmem:[%s12312_s1 + $0x38] sm:$0xff] }
0x1d73   :  { %v9920_v41 = vpop.f32.mrf.mxu1 }
0x1d75   :  { %v5362_v43 = vpop.f32.mrf.mxu1 }
0x1d76   :  { %5385 = vperm.xlu0 %10449, %v5362_v43   ;;  %v6016_v43 = vld [vmem:[%s12313_s2 + $0x30] sm:$0xff] }
0x1d7a   :  { %5390 = vperm.xlu0 %10449, %v9920_v41   ;;  %v8728_v41 = vld [vmem:[%s12313_s2 + $0x68] sm:$0xff] }
0x1dd9   :  { %v5379_v50 = vpop.permute.xlu1 %5378 }
0x1dda   :  { %v5382_v55 = vsub.f32 %v11744_v11, %v5379_v50  ;;  %v8723_v50 = vld [vmem:[%s12313_s2 + $0x40] sm:$0xff] }
0x1ddb   :  { %v5374_v48 = vpop.permute.xlu0 %5373 }
0x1ddc   :  { %v5381_v49 = vsub.f32 %v11746_v13, %v5374_v48  ;;  %v8724_v48 = vld [vmem:[%s12313_s2 + $0x48] sm:$0xff] }
0x1df1   :  { %v5386_v52 = vpop.permute.xlu0 %5385 }
0x1df2   :  { %v5393_v53 = vmul.f32 %v5386_v52, %v5381_v49  ;;  %v6013_v49 = vld [vmem:[%s12313_s2 + $0x18] sm:$0xff]  ;;  %v6011_v52 = vld [vmem:[%s12313_s2 + $0x8] sm:$0xff] }
0x1df4   :  { %v5402_v56 = vmul.f32 %v8695_v51, %v5393_v53  ;;  %v6010_v53 = vld [vmem:[%s12313_s2] sm:$0xff] }
0x1df5   :  { %v5391_v57 = vpop.permute.xlu0 %5390 }
0x1df6   :  { %v5411_v58 = vadd.f32 %v8696_v54, %v5402_v56  ;;  %v5394_v59 = vmul.f32 %v5391_v57, %v5382_v55 }
0x1df8   :  { %v5413_v60 = vmax.f32 %v5411_v58, 0.0  ;;  %v5403_v61 = vmul.f32 %v8695_v51, %v5394_v59  ;;  %v6012_v51 = vld [vmem:[%s12313_s2 + $0x10] sm:$0xff] }
0x1df9   :  { %v8753_v59 = vld [vmem:[%s12313_s2 + $0xb0] sm:$0xff] }
0x1dfa   :  { %v5412_v62 = vadd.f32 %v8696_v54, %v5403_v61  ;;  %9937 = vmatprep.mubr.msk.f32.mxu0 %vm1303_vm7, %v5413_v60  ;;  %v8754_v54 = vld [vmem:[%s12313_s2 + $0xb8] sm:$0xff] }
0x1dfc   :  { %v5414_v63 = vmax.f32 %v5412_v62, 0.0 }
0x1dfe   :  { %9938 = vmatmul.mubr.msk.f32.vlgmr.msra.gmra.mxu0 %vm1303_vm7, %v5414_v63 }
0x1dff   :  { %9963 = vmatpush3.msra.mxu0 %v5825_v20  ;;  %v8768_v20 = vld [vmem:[%s12313_s2 + $0xc8] sm:$0xff] }
0x1ebe   :  { %v9939_v0 = vpop.f32.mrf.mxu0 }
0x1ebf   :  { %9941 = vmatpush3.msra.mxu1 %v9939_v0  ;;  %v8739_v0 = vld [vmem:[%s12312_s1 + $0x40] sm:$0xff] }
0x1ec0   :  { %v5495_v1 = vpop.f32.mrf.mxu0  ;;  %9942 = vmatprep.subr.mxu1 %v10865_v34 }
0x1ec1   :  { %9943 = vmatpush3.msra.mxu1 %v5495_v1  ;;  %v8740_v1 = vld [vmem:[%s12312_s1 + $0x48] sm:$0xff] }
0x1ec2   :  { %9945 = vmatmul.mubr.msk.f32.vlgmr.msra.gmra.mxu1 %vm928_vm3, %v11750_v14  ;;  %9947 = vmatprep.subr.mxu1 %v10865_v34 }
0x1ec3   :  { %9949 = vmatprep.mubr.msk.f32.mxu1 %vm10866_vm2, %v10865_v34  ;;  %9948 = vmatpush3.msra.mxu1 %v5575_v2  ;;  %v8741_v2 = vld [vmem:[%s12312_s1 + $0x50] sm:$0xff] }
0x1ec4   :  { %9952 = vmatprep.subr.mxu1 %v10865_v34 }
0x1f82   :  { %v5570_v3 = vpop.f32.mrf.mxu1 }
0x1f83   :  { %v5574_v4 = vmul.f32 0.015625, %v5570_v3  ;;  %v8742_v3 = vld [vmem:[%s12312_s1 + $0x58] sm:$0xff] }
0x1f84   :  { %v9946_v5 = vpop.f32.mrf.mxu1 }
0x1f85   :  { %9950 = vmatmul.mubr.msk.f32.vlgmr.msra.gmra.mxu1 %vm1464_vm8, %v5574_v4  ;;  %v8759_v4 = vld [vmem:[%s12312_s1 + $0x60] sm:$0xff]  ;;  %v8760_v5 = vld [vmem:[%s12312_s1 + $0x68] sm:$0xff] }
0x1f86   :  { %9954 = vmatprep.mubr.msk.f32.mxu1 %vm10866_vm2, %v10865_v34  ;;  %9953 = vmatpush3.msk.msra.mxu1 %vm1094_vm6, %v5657_v6  ;;  %v8761_v6 = vld [vmem:[%s12312_s1 + $0x70] sm:$0xff] }
0x2045   :  { %v5652_v8 = vpop.f32.mrf.mxu1 }
0x2046   :  { %v5653_v9 = vadd.f32 %v8700_v7, %v5652_v8  ;;  %v8762_v7 = vld [vmem:[%s12312_s1 + $0x78] sm:$0xff]  ;;  %v8752_v8 = vld [vmem:[%s12313_s2 + $0xa8] sm:$0xff] }
0x2047   :  { %v9951_v10 = vpop.f32.mrf.mxu1 }
0x2048   :  { %v5656_v11 = vmax.f32 %v5653_v9, 0.0  ;;  %v8751_v9 = vld [vmem:[%s12313_s2 + $0xa0] sm:$0xff]  ;;  %v8750_v10 = vld [vmem:[%s12313_s2 + $0x98] sm:$0xff] }
0x204a   :  { %9955 = vmatmul.mubr.msk.f32.vlgmr.msra.gmra.mxu1 %vm1087_vm5, %v5656_v11  ;;  %v8774_v11 = vld [vmem:[%s12313_s2 + $0xf8] sm:$0xff] }
0x204b   :  { %9959 = vmatprep.mubr.msk.f32.mxu1 %vm1087_vm5, %v11769_v23  ;;  %v5909_v23 = vld [vmem:[%s12312_s1] sm:$0xff] }
0x210a   :  { %v5737_v13 = vpop.f32.mrf.mxu1 }
0x210b   :  { %v5738_v14 = vadd.f32 %v8702_v12, %v5737_v13  ;;  %v8749_v12 = vld [vmem:[%s12313_s2 + $0x90] sm:$0xff] }
0x210c   :  { %v9956_v15 = vpop.f32.mrf.mxu1  ;;  %v8773_v13 = vld [vmem:[%s12313_s2 + $0xf0] sm:$0xff] }
0x210d   :  { %v8705_v16 = vmul.f32 -1.442695, %v5738_v14  ;;  %v8748_v14 = vld [vmem:[%s12313_s2 + $0x88] sm:$0xff] }
0x210e   :  { %v8772_v15 = vld [vmem:[%s12313_s2 + $0xe8] sm:$0xff] }
0x210f   :  { %10466 = vpow2.f32 %v8705_v16  ;;  %v8747_v16 = vld [vmem:[%s12313_s2 + $0x80] sm:$0xff] }
0x211c   :  { %v10467_v17 = vpop.eup %10466 }
0x211d   :  { %v5744_v18 = vadd.f32 1.0, %v10467_v17  ;;  %v8771_v17 = vld [vmem:[%s12313_s2 + $0xe0] sm:$0xff] }
0x211f   :  { %10468 = vrcp.f32 %v5744_v18  ;;  %v8770_v18 = vld [vmem:[%s12313_s2 + $0xd8] sm:$0xff] }
0x212c   :  { %v10469_v19 = vpop.eup %10468 }
0x212d   :  { %9957 = vmatprep.subr.msk.mxu1 %vm1094_vm6, %v10469_v19 }
0x212e   :  { %9958 = vmatpush3.msk.msra.mxu1 %vm1094_vm6, %v10469_v19  ;;  %v8769_v19 = vld [vmem:[%s12313_s2 + $0xd0] sm:$0xff] }
0x212f   :  { %9960 = vmatmul.mubr.msk.f32.vlgmr.msra.gmra.mxu1 %vm1087_vm5, %v11776_v26 }
0x2130   :  { %9971 = vmatprep.mubr.msk.f32.mxu1 %vm928_vm3, %v5909_v23 }
0x21ef   :  { %v9961_v21 = vpop.f32.mrf.mxu1 }
0x21f1   :  { %v5816_v22 = vpop.f32.mrf.mxu1 }
0x21f2   :  { %9964 = vmatprep.mubr.msk.f32.mxu0 %vm1464_vm8, %v5816_v22 }
0x21f3   :  { %9965 = vmatmul.mubr.msk.f32.vlgmr.msra.gmra.mxu0 %vm1464_vm8, %v9961_v21  ;;  %v8767_v21 = vld [vmem:[%s12313_s2 + $0xc0] sm:$0xff] }
0x21f4   :  { %9981 = vmatprep.mubr.msk.f32.mxu0 %vm928_vm3, %v8715_v24 }
0x22b3   :  { %v9966_v25 = vpop.f32.mrf.mxu0 }
0x22b4   :  { %v11832_v26 = vmul.f32 %v9966_v25, %v5414_v63 }
0x22b5   :  { %v5898_v27 = vpop.f32.mrf.mxu0 }
0x22b6   :  { %v11834_v28 = vmul.f32 %v5898_v27, %v5413_v60  ;;  %9967 = vmatprep.subr.mxu1 %v11832_v26  ;;  %9977 = vmatprep.subr.mxu0 %v11832_v26 }
0x22b7   :  { %9968 = vmatpush3.msra.mxu1 %v11832_v26  ;;  %9978 = vmatpush3.msra.mxu0 %v11832_v26 }
0x22b8   :  { %9969 = vmatprep.subr.mxu1 %v11834_v28  ;;  %9979 = vmatprep.subr.mxu0 %v11834_v28 }
0x22b9   :  { %9970 = vmatpush3.msra.mxu1 %v11834_v28  ;;  %9980 = vmatpush3.msra.mxu0 %v11834_v28 }
0x22ba   :  { %9972 = vmatmul.mubr.msk.f32.vlgmr.msra.gmra.mxu1 %vm928_vm3, %v5910_v29  ;;  %9982 = vmatmul.mubr.msk.f32.vlgmr.msra.gmra.mxu0 %vm928_vm3, %v8716_v30 }
0x22bb   :  { %9987 = vmatprep.subr.mxu1 %v8730_v31  ;;  %9974 = vmatprep.mubr.msk.f32.mxu1 %vm928_vm3, %v5911_v32 }
0x22bc   :  { %9988 = vmatpush3.msra.mxu1 %v8730_v31  ;;  %9984 = vmatprep.mubr.msk.f32.mxu0 %vm928_vm3, %v8717_v33 }
0x22bd   :  { %9989 = vmatprep.subr.mxu1 %v8729_v35  ;;  %10009 = vmatprep.subr.mxu0 %v6017_v38 }
0x22be   :  { %9990 = vmatpush3.msra.mxu1 %v8729_v35  ;;  %9985 = vmatmul.mubr.msk.f32.gmra.mxu0 %vm928_vm3, %v8718_v39 }
0x22bf   :  { %9975 = vmatmul.mubr.msk.f32.gmra.mxu1 %vm928_vm3, %v5912_v40  ;;  %9991 = vmatprep.subr.mxu1 %v8728_v41 }
0x22c0   :  { %9992 = vmatpush3.msra.mxu1 %v8728_v41  ;;  %10010 = vmatpush3.msra.mxu0 %v6017_v38 }
0x22c1   :  { %9993 = vmatprep.subr.mxu1 %v8727_v42  ;;  %10011 = vmatprep.subr.mxu0 %v6016_v43 }
0x22c2   :  { %9994 = vmatpush3.msra.mxu1 %v8727_v42  ;;  %10012 = vmatpush3.msra.mxu0 %v6016_v43 }
0x22c3   :  { %9995 = vmatprep.subr.mxu1 %v8726_v44  ;;  %10013 = vmatprep.subr.mxu0 %v6015_v45 }
0x22c4   :  { %9996 = vmatpush3.msra.mxu1 %v8726_v44  ;;  %10014 = vmatpush3.msra.mxu0 %v6015_v45 }
0x22c5   :  { %9997 = vmatprep.subr.mxu1 %v8725_v46  ;;  %10015 = vmatprep.subr.mxu0 %v6014_v47 }
0x22c6   :  { %9998 = vmatpush3.msra.mxu1 %v8725_v46  ;;  %10016 = vmatpush3.msra.mxu0 %v6014_v47 }
0x22c7   :  { %9999 = vmatprep.subr.mxu1 %v8724_v48  ;;  %10017 = vmatprep.subr.mxu0 %v6013_v49 }
0x22c8   :  { %10000 = vmatpush3.msra.mxu1 %v8724_v48  ;;  %10018 = vmatpush3.msra.mxu0 %v6013_v49 }
0x22c9   :  { %10001 = vmatprep.subr.mxu1 %v8723_v50  ;;  %10019 = vmatprep.subr.mxu0 %v6012_v51 }
0x22ca   :  { %10002 = vmatpush3.msra.mxu1 %v8723_v50  ;;  %10020 = vmatpush3.msra.mxu0 %v6012_v51 }
0x22cb   :  { %10031 = vmatprep.subr.mxu1 %v11832_v26  ;;  %10021 = vmatprep.subr.mxu0 %v6011_v52 }
0x22cc   :  { %10022 = vmatpush3.msra.mxu0 %v6011_v52 }
0x22cd   :  { %10023 = vmatprep.subr.mxu0 %v6010_v53 }
0x22ce   :  { %10024 = vmatpush3.msra.mxu0 %v6010_v53 }
0x22cf   :  { %10041 = vmatprep.subr.mxu0 %v8754_v54 }
0x237a   :  { %v9973_v55 = vpop.f32.mrf.mxu1  ;;  %v9983_v56 = vpop.f32.mrf.mxu0 }
0x237c   :  { %v5991_v57 = vpop.f32.mrf.mxu1  ;;  %v6101_v58 = vpop.f32.mrf.mxu0 }
0x237d   :  { %10003 = vmatprep.mubr.msk.f32.mxu1 %vm1303_vm7, %v6101_v58  ;;  %10025 = vmatprep.mubr.msk.f32.mxu0 %vm1303_vm7, %v5991_v57 }
0x237e   :  { %v9986_v60 = vpop.f32.mrf.mxu0  ;;  %10004 = vmatmul.mubr.msk.f32.vlgmr.msra.gmra.mxu1 %vm1303_vm7, %v9983_v56  ;;  %10026 = vmatmul.mubr.msk.f32.vlgmr.msra.gmra.mxu0 %vm1303_vm7, %v9973_v55  ;;  %v8779_v56 = vld [vmem:[%s12314_s7] ss:$0 sm:$0xff] }
0x237f   :  { %v9976_v61 = vpop.f32.mrf.mxu1  ;;  %10032 = vmatpush3.msra.mxu1 %v11832_v26  ;;  %10042 = vmatpush3.msra.mxu0 %v8754_v54 }
0x2380   :  { %10033 = vmatprep.subr.mxu1 %v11834_v28  ;;  %v6111_v62 = vpop.f32.mrf.mxu0  ;;  %10043 = vmatprep.subr.mxu0 %v8753_v59 }
0x2381   :  { %v6001_v63 = vpop.f32.mrf.mxu1  ;;  %10034 = vmatpush3.msra.mxu1 %v11834_v28  ;;  %10006 = vmatprep.mubr.msk.f32.mxu1 %vm1303_vm7, %v6111_v62 }
0x2382   :  { %10028 = vmatprep.mubr.msk.f32.mxu0 %vm1303_vm7, %v6001_v63  ;;  %10063 = vmatprep.subr.mxu1 %v11832_v26 }
0x2383   :  { %10007 = vmatmul.mubr.msk.f32.gmra.mxu1 %vm1303_vm7, %v9986_v60  ;;  %10029 = vmatmul.mubr.msk.f32.gmra.mxu0 %vm1303_vm7, %v9976_v61 }
0x2384   :  { %10035 = vmatprep.mubr.msk.f32.mxu1 %vm928_vm3, %v8739_v0  ;;  %10044 = vmatpush3.msra.mxu0 %v8753_v59 }
0x2385   :  { %10045 = vmatprep.subr.mxu0 %v8752_v8 }
0x2386   :  { %10046 = vmatpush3.msra.mxu0 %v8752_v8 }
0x2387   :  { %10036 = vmatmul.mubr.msk.f32.vlgmr.msra.gmra.mxu1 %vm928_vm3, %v8740_v1  ;;  %10047 = vmatprep.subr.mxu0 %v8751_v9 }
0x2388   :  { %10064 = vmatpush3.msra.mxu1 %v11832_v26  ;;  %10038 = vmatprep.mubr.msk.f32.mxu1 %vm928_vm3, %v8741_v2  ;;  %v11946_v2 = vld [vmem:[%s12315_s10] sm:$0x3] }
0x2389   :  { %10065 = vmatprep.subr.mxu1 %v11834_v28  ;;  %10048 = vmatpush3.msra.mxu0 %v8751_v9 }
0x238a   :  { %10066 = vmatpush3.msra.mxu1 %v11834_v28  ;;  %10049 = vmatprep.subr.mxu0 %v8750_v10 }
0x238b   :  { %10039 = vmatmul.mubr.msk.f32.gmra.mxu1 %vm928_vm3, %v8742_v3  ;;  %10073 = vmatprep.subr.mxu1 %v8774_v11 }
0x238c   :  { %10067 = vmatprep.mubr.msk.f32.mxu1 %vm928_vm3, %v8759_v4  ;;  %10050 = vmatpush3.msra.mxu0 %v8750_v10 }
0x238d   :  { %10051 = vmatprep.subr.mxu0 %v8749_v12 }
0x238e   :  { %10052 = vmatpush3.msra.mxu0 %v8749_v12 }
0x238f   :  { %10068 = vmatmul.mubr.msk.f32.vlgmr.msra.gmra.mxu1 %vm928_vm3, %v8760_v5  ;;  %10053 = vmatprep.subr.mxu0 %v8748_v14 }
0x2390   :  { %10070 = vmatprep.mubr.msk.f32.mxu1 %vm928_vm3, %v8761_v6  ;;  %10074 = vmatpush3.msra.mxu1 %v8774_v11 }
0x2391   :  { %10075 = vmatprep.subr.mxu1 %v8773_v13  ;;  %10054 = vmatpush3.msra.mxu0 %v8748_v14 }
0x2392   :  { %10076 = vmatpush3.msra.mxu1 %v8773_v13  ;;  %10055 = vmatprep.subr.mxu0 %v8747_v16  ;;  %v11971_v13 = vld [vmem:[%s12316_s11] sm:$0xff] }
0x2393   :  { %10071 = vmatmul.mubr.msk.f32.gmra.mxu1 %vm928_vm3, %v8762_v7  ;;  %10077 = vmatprep.subr.mxu1 %v8772_v15 }
0x2394   :  { %10078 = vmatpush3.msra.mxu1 %v8772_v15  ;;  %10056 = vmatpush3.msra.mxu0 %v8747_v16  ;;  %v11978_v16 = vld [vmem:[%s12316_s11 + $0x8] sm:$0xff] }
0x2395   :  { %10079 = vmatprep.subr.mxu1 %v8771_v17  ;;  %10095 = vmatprep.subr.mxu0 %v10865_v34 }
0x2396   :  { %10080 = vmatpush3.msra.mxu1 %v8771_v17  ;;  %v11982_v17 = vld [vmem:[%s12316_s11 + $0x10] sm:$0xff] }
0x2397   :  { %10081 = vmatprep.subr.mxu1 %v8770_v18 }
0x2398   :  { %10082 = vmatpush3.msra.mxu1 %v8770_v18  ;;  %v11990_v18 = vld [vmem:[%s12316_s11 + $0x18] sm:$0xff] }
0x2399   :  { %10083 = vmatprep.subr.mxu1 %v8769_v19 }
0x239a   :  { %10084 = vmatpush3.msra.mxu1 %v8769_v19 }
0x239b   :  { %10085 = vmatprep.subr.mxu1 %v8768_v20 }
0x239c   :  { %10086 = vmatpush3.msra.mxu1 %v8768_v20 }
0x239d   :  { %10087 = vmatprep.subr.mxu1 %v8767_v21 }
0x239e   :  { %10088 = vmatpush3.msra.mxu1 %v8767_v21 }
0x243e   :  { %v10005_v22 = vpop.f32.mrf.mxu1  ;;  %v10027_v35 = vpop.f32.mrf.mxu0 }
0x243f   :  { %v6310_v48 = vadd.f32 %v10027_v35, %v10005_v22  ;;  %v7194_v35 = vld [vmem:[%s12317_s25 + $0x50] sm:$0xff] }
0x2440   :  { %v6207_v23 = vpop.f32.mrf.mxu1  ;;  %v6304_v38 = vpop.f32.mrf.mxu0 }
0x2441   :  { %v6305_v52 = vadd.f32 %v6304_v38, %v6207_v23  ;;  %v7193_v38 = vld [vmem:[%s12317_s25 + $0x48] sm:$0xff] }
0x2443   :  { %v10008_v24 = vpop.f32.mrf.mxu1  ;;  %v10030_v39 = vpop.f32.mrf.mxu0 }
0x2444   :  { %v6320_v45 = vadd.f32 %v10030_v39, %v10008_v24  ;;  %v7192_v39 = vld [vmem:[%s12317_s25 + $0x40] sm:$0xff] }
0x2445   :  { %v6217_v25 = vpop.f32.mrf.mxu1  ;;  %v6314_v40 = vpop.f32.mrf.mxu0 }
0x2446   :  { %v6315_v49 = vadd.f32 %v6314_v40, %v6217_v25  ;;  %v7191_v40 = vld [vmem:[%s12317_s25 + $0x38] sm:$0xff] }
0x2447   :  { %v10037_v26 = vpop.f32.mrf.mxu1 }
0x2449   :  { %v6406_v27 = vpop.f32.mrf.mxu1 }
0x244a   :  { %10057 = vmatprep.mubr.msk.f32.mxu0 %vm1303_vm7, %v6406_v27 }
0x244b   :  { %v10040_v28 = vpop.f32.mrf.mxu1  ;;  %10058 = vmatmul.mubr.msk.f32.vlgmr.msra.gmra.mxu0 %vm1303_vm7, %v10037_v26  ;;  %v7199_v26 = vld [vmem:[%s12317_s25 + $0x78] sm:$0xff] }
0x244d   :  { %v6416_v29 = vpop.f32.mrf.mxu1 }
0x244e   :  { %10060 = vmatprep.mubr.msk.f32.mxu0 %vm1303_vm7, %v6416_v29  ;;  %v7197_v29 = vld [vmem:[%s12317_s25 + $0x68] sm:$0xff] }
0x244f   :  { %10061 = vmatmul.mubr.msk.f32.gmra.mxu0 %vm1303_vm7, %v10040_v28  ;;  %v10069_v30 = vpop.f32.mrf.mxu1  ;;  %v7198_v28 = vld [vmem:[%s12317_s25 + $0x70] sm:$0xff] }
0x2450   :  { %10103 = vmatprep.mubr.msk.f32.mxu0 %vm10866_vm2, %v10865_v34 }
0x2451   :  { %v6618_v31 = vpop.f32.mrf.mxu1 }
0x2452   :  { %10089 = vmatprep.mubr.msk.f32.mxu1 %vm1303_vm7, %v6618_v31  ;;  %v7196_v31 = vld [vmem:[%s12317_s25 + $0x60] sm:$0xff] }
0x2453   :  { %v10072_v32 = vpop.f32.mrf.mxu1  ;;  %10090 = vmatmul.mubr.msk.f32.vlgmr.msra.gmra.mxu1 %vm1303_vm7, %v10069_v30 }
0x2455   :  { %v6628_v33 = vpop.f32.mrf.mxu1 }
0x2456   :  { %10092 = vmatprep.mubr.msk.f32.mxu1 %vm1303_vm7, %v6628_v33  ;;  %v7195_v33 = vld [vmem:[%s12317_s25 + $0x58] sm:$0xff] }
0x2457   :  { %10093 = vmatmul.mubr.msk.f32.gmra.mxu1 %vm1303_vm7, %v10072_v32 }
0x2458   :  { %10127 = vmatprep.mubr.msk.f32.mxu1 %vm1087_vm5, %v11971_v13 }
0x250b   :  { %v10059_v41 = vpop.f32.mrf.mxu0 }
0x250c   :  { %v6532_v53 = vadd.f32 %v10059_v41, %v6310_v48  ;;  %v7190_v41 = vld [vmem:[%s12317_s25 + $0x30] sm:$0xff] }
0x250d   :  { %v6512_v42 = vpop.f32.mrf.mxu0 }
0x250e   :  { %v6531_v58 = vadd.f32 %v6512_v42, %v6305_v52  ;;  %v7189_v42 = vld [vmem:[%s12317_s25 + $0x28] sm:$0xff] }
0x250f   :  { %v10062_v43 = vpop.f32.mrf.mxu0 }
0x2510   :  { %v6534_v50 = vadd.f32 %v10062_v43, %v6320_v45  ;;  %v7188_v43 = vld [vmem:[%s12317_s25 + $0x20] sm:$0xff]  ;;  %v7187_v45 = vld [vmem:[%s12317_s25 + $0x18] sm:$0xff] }
0x2511   :  { %v6522_v46 = vpop.f32.mrf.mxu0 }
0x2512   :  { %v6533_v54 = vadd.f32 %v6522_v46, %v6315_v49  ;;  %v7185_v49 = vld [vmem:[%s12317_s25 + $0x8] sm:$0xff] }
0x2513   :  { %v10091_v44 = vpop.f32.mrf.mxu1 }
0x2514   :  { %v6744_v59 = vadd.f32 %v10091_v44, %v6532_v53 }
0x2515   :  { %v6724_v47 = vpop.f32.mrf.mxu1 }
0x2516   :  { %v6743_v62 = vadd.f32 %v6724_v47, %v6531_v58  ;;  %v11938_v0 = vadd.f32 %v8779_v56, %v6744_v59  ;;  %v7186_v47 = vld [vmem:[%s12317_s25 + $0x10] sm:$0xff] }
0x2517   :  { %v10094_v51 = vpop.f32.mrf.mxu1 }
0x2518   :  { %v6746_v55 = vadd.f32 %v10094_v51, %v6534_v50  ;;  %v11942_v1 = vadd.f32 %v8779_v56, %v6743_v62  ;;  %v6837_v5 = vmul.f32 %v11938_v0, %v11938_v0  ;;  %v7184_v50 = vld [vmem:[%s12317_s25] sm:$0xff] }
0x2519   :  { %v6734_v57 = vpop.f32.mrf.mxu1 }
0x251a   :  { %v11932_v60 = vadd.f32 %v8779_v56, %v6746_v55  ;;  %v6745_v61 = vadd.f32 %v6734_v57, %v6533_v54  ;;  %v6836_v6 = vmul.f32 %v11942_v1, %v11942_v1  ;;  %v8792_v57 = vld [vmem:[%s12318_s15] ss:$0 sm:$0xff] }
0x251c   :  { %v11934_v63 = vadd.f32 %v8779_v56, %v6745_v61  ;;  %10096 = vmatpush3.msra.mxu0 %v11932_v60  ;;  %v6839_v3 = vmul.f32 %v11932_v60, %v11932_v60 }
0x251d   :  { %10097 = vmatprep.subr.mxu0 %v10865_v34 }
0x251e   :  { %10098 = vmatpush3.msra.mxu0 %v11934_v63  ;;  %v6838_v4 = vmul.f32 %v11934_v63, %v11934_v63 }
0x251f   :  { %10099 = vmatprep.subr.mxu0 %v10865_v34 }
0x2520   :  { %10100 = vmatpush3.msra.mxu0 %v11938_v0 }
0x2521   :  { %10101 = vmatprep.subr.mxu0 %v10865_v34 }
0x2522   :  { %10102 = vmatpush3.msra.mxu0 %v11942_v1 }
0x2523   :  { %10104 = vmatmul.mubr.msk.f32.vlgmr.msra.gmra.mxu0 %vm400_vm0, %v11946_v2  ;;  %10106 = vmatprep.subr.mxu0 %v10865_v34 }
0x2524   :  { %10107 = vmatpush3.msra.mxu0 %v6839_v3  ;;  %10114 = vmatprep.mubr.msk.f32.mxu0 %vm10866_vm2, %v10865_v34 }
0x2525   :  { %10108 = vmatprep.subr.mxu0 %v10865_v34 }
0x2526   :  { %10109 = vmatpush3.msra.mxu0 %v6838_v4  ;;  %v8793_v4 = vld [vmem:[%s12319_s14] ss:$0 sm:$0xff] }
0x2527   :  { %10110 = vmatprep.subr.mxu0 %v10865_v34 }
0x2528   :  { %10111 = vmatpush3.msra.mxu0 %v6837_v5 }
0x2529   :  { %10112 = vmatprep.subr.mxu0 %v10865_v34 }
0x252a   :  { %10113 = vmatpush3.msra.mxu0 %v6836_v6 }
0x252b   :  { %10115 = vmatmul.mubr.msk.f32.vlgmr.msra.gmra.mxu0 %vm400_vm0, %v11946_v2 }
0x252c   :  { %10119 = vmatprep.mubr.msk.f32.mxu0 %vm1087_vm5, %v11971_v13 }
0x25e3   :  { %v6832_v7 = vpop.f32.mrf.mxu0 }
0x25e4   :  { %v6910_v8 = vsel %vm1094_vm6, %v6832_v7, 0.0 }
0x25e5   :  { %6911 = vadd.xlane.f32.xlu0 %v6910_v8  ;;  %v10105_v9 = vpop.f32.mrf.mxu0 }
0x25eb   :  { %v6906_v10 = vpop.f32.mrf.mxu0 }
0x25ec   :  { %v6914_v11 = vsel %vm1094_vm6, %v6906_v10, 0.0 }
0x25ed   :  { %6915 = vadd.xlane.f32.xlu1 %v6914_v11  ;;  %v10116_v12 = vpop.f32.mrf.mxu0 }
0x266e   :  { %v6912_v14 = vpop.xlane.xlu0 %6911 }
0x266f   :  { %v6913_v15 = vmul.f32 0.00048828125, %v6912_v14 }
0x2671   :  { %10117 = vmatprep.subr.msk.mxu0 %vm1094_vm6, %v6913_v15  ;;  %v6918_v20 = vmul.f32 %v6913_v15, %v6913_v15 }
0x2672   :  { %10118 = vmatpush3.msk.msra.mxu0 %vm1094_vm6, %v6913_v15 }
0x2673   :  { %10120 = vmatmul.mubr.msk.f32.vlgmr.msra.gmra.mxu0 %vm1087_vm5, %v11978_v16  ;;  %10133 = vmatprep.subr.mxu0 %v7199_v26 }
0x2674   :  { %10122 = vmatprep.mubr.msk.f32.mxu0 %vm1087_vm5, %v11982_v17  ;;  %10134 = vmatpush3.msra.mxu0 %v7199_v26  ;;  %v7356_v26 = vld [vmem:[%s12320_s30] sm:$0xff] }
0x2675   :  { %10135 = vmatprep.subr.mxu0 %v7198_v28 }
0x2676   :  { %v6916_v19 = vpop.xlane.xlu1 %6915  ;;  %10136 = vmatpush3.msra.mxu0 %v7198_v28 }
0x2677   :  { %v6917_v21 = vmul.f32 0.00048828125, %v6916_v19  ;;  %10123 = vmatmul.mubr.msk.f32.gmra.mxu0 %vm1087_vm5, %v11990_v18  ;;  %10137 = vmatprep.subr.mxu0 %v7197_v29 }
0x2678   :  { %10138 = vmatpush3.msra.mxu0 %v7197_v29 }
0x2679   :  { %v6919_v22 = vsub.f32 %v6917_v21, %v6918_v20  ;;  %10139 = vmatprep.subr.mxu0 %v7196_v31 }
0x267a   :  { %10140 = vmatpush3.msra.mxu0 %v7196_v31 }
0x267b   :  { %v6920_v23 = vadd.f32 1e-05, %v6919_v22  ;;  %10141 = vmatprep.subr.mxu0 %v7195_v33 }
0x267c   :  { %10142 = vmatpush3.msra.mxu0 %v7195_v33 }
0x267d   :  { %10470 = vrsqrt.f32 %v6920_v23  ;;  %10143 = vmatprep.subr.mxu0 %v7194_v35 }
0x267e   :  { %10144 = vmatpush3.msra.mxu0 %v7194_v35 }
0x267f   :  { %10145 = vmatprep.subr.mxu0 %v7193_v38 }
0x2680   :  { %10146 = vmatpush3.msra.mxu0 %v7193_v38 }
0x2681   :  { %10147 = vmatprep.subr.mxu0 %v7192_v39 }
0x2682   :  { %10148 = vmatpush3.msra.mxu0 %v7192_v39 }
0x2683   :  { %10149 = vmatprep.subr.mxu0 %v7191_v40 }
0x2684   :  { %10150 = vmatpush3.msra.mxu0 %v7191_v40 }
0x2685   :  { %10151 = vmatprep.subr.mxu0 %v7190_v41 }
0x2686   :  { %10152 = vmatpush3.msra.mxu0 %v7190_v41 }
0x2687   :  { %10153 = vmatprep.subr.mxu0 %v7189_v42 }
0x2688   :  { %10154 = vmatpush3.msra.mxu0 %v7189_v42 }
0x2689   :  { %10155 = vmatprep.subr.mxu0 %v7188_v43 }
0x268a   :  { %v10471_v24 = vpop.eup %10470  ;;  %10156 = vmatpush3.msra.mxu0 %v7188_v43 }
0x268b   :  { %10125 = vmatprep.subr.msk.mxu1 %vm1094_vm6, %v10471_v24  ;;  %10157 = vmatprep.subr.mxu0 %v7187_v45 }
0x268c   :  { %10126 = vmatpush3.msk.msra.mxu1 %vm1094_vm6, %v10471_v24  ;;  %10158 = vmatpush3.msra.mxu0 %v7187_v45 }
0x268d   :  { %10128 = vmatmul.mubr.msk.f32.vlgmr.msra.gmra.mxu1 %vm1087_vm5, %v11978_v16  ;;  %10171 = vmatprep.subr.mxu1 %v10865_v34 }
0x268e   :  { %10130 = vmatprep.mubr.msk.f32.mxu1 %vm1087_vm5, %v11982_v17  ;;  %10159 = vmatprep.subr.mxu0 %v7186_v47 }
0x268f   :  { %10160 = vmatpush3.msra.mxu0 %v7186_v47 }
0x2690   :  { %10161 = vmatprep.subr.mxu0 %v7185_v49 }
0x2691   :  { %10131 = vmatmul.mubr.msk.f32.gmra.mxu1 %vm1087_vm5, %v11990_v18  ;;  %10162 = vmatpush3.msra.mxu0 %v7185_v49 }
0x2692   :  { %10179 = vmatprep.mubr.msk.f32.mxu1 %vm10866_vm2, %v10865_v34  ;;  %10163 = vmatprep.subr.mxu0 %v7184_v50 }
0x2693   :  { %10164 = vmatpush3.msra.mxu0 %v7184_v50 }
0x2733   :  { %v10121_v25 = vpop.f32.mrf.mxu0 }
0x2734   :  { %7117 = vperm.xlu1 %10448, %v10121_v25  }
0x2735   :  { %v7003_v27 = vpop.f32.mrf.mxu0 }
0x2736   :  { %7112 = vperm.xlu0 %10449, %v7003_v27  }
0x2737   :  { %v10124_v30 = vpop.f32.mrf.mxu0 }
0x2738   :  { %7127 = vperm.xlu1 %10448, %v10124_v30   ;;  %v7438_v30 = vld [vmem:[%s12321_s16] sm:$0x3] }
0x2739   :  { %v7013_v32 = vpop.f32.mrf.mxu0 }
0x273a   :  { %7122 = vperm.xlu0 %10449, %v7013_v32  }
0x274d   :  { %v10129_v44 = vpop.f32.mrf.mxu1 }
0x274e   :  { %7141 = vperm.xlu1 %10448, %v10129_v44  }
0x274f   :  { %v7091_v46 = vpop.f32.mrf.mxu1 }
0x2750   :  { %7136 = vperm.xlu0 %10449, %v7091_v46  }
0x2751   :  { %v10132_v48 = vpop.f32.mrf.mxu1 }
0x2752   :  { %7151 = vperm.xlu1 %10448, %v10132_v48  }
0x2753   :  { %v7101_v51 = vpop.f32.mrf.mxu1 }
0x2754   :  { %7146 = vperm.xlu0 %10449, %v7101_v51  }
0x2758   :  { %3732 = vrot.lane.b32.xlu0 %v8621_v37, %s10868_s18  ;;  %s12323_s18 = sld [smem:[#allocation55_spill]] }
0x275e   :  { %v8797_v38 = vld [vmem:[%s12323_s18] ss:$0 sm:$0xff] }
0x27af   :  { %v7118_v52 = vpop.permute.xlu1 %7117 }
0x27b0   :  { %v7131_v56 = vsub.f32 %v11938_v0, %v7118_v52 }
0x27b1   :  { %v7113_v53 = vpop.permute.xlu0 %7112 }
0x27b2   :  { %v7130_v59 = vsub.f32 %v11942_v1, %v7113_v53 }
0x27b3   :  { %v7128_v54 = vpop.permute.xlu1 %7127 }
0x27b4   :  { %v7133_v3 = vsub.f32 %v11932_v60, %v7128_v54 }
0x27b5   :  { %v7123_v55 = vpop.permute.xlu0 %7122 }
0x27b6   :  { %v7132_v36 = vsub.f32 %v11934_v63, %v7123_v55 }
0x27c9   :  { %v7142_v58 = vpop.permute.xlu1 %7141 }
0x27ca   :  { %v7155_v61 = vmul.f32 %v7142_v58, %v7131_v56  ;;  %v8815_v56 = vld [vmem:[%s12325_s24 + $0x28] sm:$0xff] }
0x27cb   :  { %v7137_v62 = vpop.permute.xlu0 %7136  ;;  %v7719_v58 = vld [vmem:[%s12325_s24 + $0x8] sm:$0xff] }
0x27cc   :  { %v7166_v5 = vmul.f32 %v8792_v57, %v7155_v61  ;;  %v7154_v6 = vmul.f32 %v7137_v62, %v7130_v59  ;;  %v8816_v59 = vld [vmem:[%s12325_s24 + $0x30] sm:$0xff] }
0x27cd   :  { %v7152_v7 = vpop.permute.xlu1 %7151  ;;  %v7720_v61 = vld [vmem:[%s12325_s24 + $0x10] sm:$0xff] }
0x27ce   :  { %v7165_v37 = vmul.f32 %v8792_v57, %v7154_v6  ;;  %v7157_v8 = vmul.f32 %v7152_v7, %v7133_v3  ;;  %v12030_v9 = vadd.f32 %v8793_v4, %v7166_v5  ;;  %v8836_v62 = vld [vmem:[%s12326_s23 + $0xf0] sm:$0xff]  ;;  %v7834_v3 = vld [vmem:[%s12326_s23 + $0x78] sm:$0xff]  ;;  %v8835_v5 = vld [vmem:[%s12326_s23 + $0xe8] sm:$0xff] }
0x27cf   :  { %v7147_v10 = vpop.permute.xlu0 %7146  ;;  %v7721_v6 = vld [vmem:[%s12325_s24 + $0x18] sm:$0xff]  ;;  %v8834_v7 = vld [vmem:[%s12326_s23 + $0xe0] sm:$0xff] }
0x27d0   :  { %v7168_v0 = vmul.f32 %v8792_v57, %v7157_v8  ;;  %v7156_v11 = vmul.f32 %v7147_v10, %v7132_v36  ;;  %v12032_v12 = vadd.f32 %v8793_v4, %v7165_v37  ;;  %v7181_v60 = vmax.f32 %v12030_v9, 0.0  ;;  %v7833_v36 = vld [vmem:[%s12326_s23 + $0x70] sm:$0xff]  ;;  %v8833_v37 = vld [vmem:[%s12326_s23 + $0xd8] sm:$0xff]  ;;  %v7832_v8 = vld [vmem:[%s12326_s23 + $0x68] sm:$0xff] }
0x27d1   :  { %v8832_v9 = vld [vmem:[%s12326_s23 + $0xd0] sm:$0xff]  ;;  %v7831_v10 = vld [vmem:[%s12326_s23 + $0x60] sm:$0xff] }
0x27d2   :  { %v7167_v1 = vmul.f32 %v8792_v57, %v7156_v11  ;;  %v7180_v14 = vmax.f32 %v12032_v12, 0.0  ;;  %v12036_v19 = vadd.f32 %v8793_v4, %v7168_v0  ;;  %v8837_v57 = vld [vmem:[%s12326_s23 + $0xf8] sm:$0xff]  ;;  %v8831_v0 = vld [vmem:[%s12326_s23 + $0xc8] sm:$0xff]  ;;  %v8830_v12 = vld [vmem:[%s12326_s23 + $0xc0] sm:$0xff] }
0x27d3   :  { %v3733_v15 = vpop.permute.xlu0 %3732  ;;  %v7830_v11 = vld [vmem:[%s12326_s23 + $0x58] sm:$0xff] }
0x27d4   :  { %10165 = vmatprep.mubr.f32.mxu0 %v7180_v14  ;;  %v12040_v63 = vadd.f32 %v8793_v4, %v7167_v1  ;;  %3735 = vst.msk [vmem:[#allocation21] sm:$0x3] %vm3729_vm11, %v3733_v15  ;;  %v7183_v21 = vmax.f32 %v12036_v19, 0.0  ;;  %v8817_v4 = vld [vmem:[%s12325_s24 + $0x38] sm:$0xff]  ;;  %v7829_v1 = vld [vmem:[%s12326_s23 + $0x50] sm:$0xff]  ;;  %v7827_v19 = vld [vmem:[%s12326_s23 + $0x40] sm:$0xff] }
0x27d5   :  { %10166 = vmatmul.mubr.f32.vlgmr.msra.gmra.mxu0 %v7181_v60  ;;  %v8828_v15 = vld [vmem:[%s12326_s23 + $0xb0] sm:$0xff] }
0x27d6   :  { %v7182_v20 = vmax.f32 %v12040_v63, 0.0  ;;  %v8827_v63 = vld [vmem:[%s12326_s23 + $0xa8] sm:$0xff] }
0x27d8   :  { %10168 = vmatprep.mubr.f32.mxu0 %v7182_v20 }
0x27d9   :  { %10169 = vmatmul.mubr.f32.gmra.mxu0 %v7183_v21 }
0x2895   :  { %v10167_v22 = vpop.f32.mrf.mxu0 }
0x2897   :  { %v7266_v23 = vpop.f32.mrf.mxu0 }
0x2899   :  { %v10170_v24 = vpop.f32.mrf.mxu0 }
0x289a   :  { %10172 = vmatpush3.msra.mxu1 %v10170_v24  ;;  %v7824_v24 = vld [vmem:[%s12326_s23 + $0x28] sm:$0xff] }
0x289b   :  { %v7276_v25 = vpop.f32.mrf.mxu0  ;;  %10173 = vmatprep.subr.mxu1 %v10865_v34 }
0x289c   :  { %10174 = vmatpush3.msra.mxu1 %v7276_v25  ;;  %v8824_v25 = vld [vmem:[%s12326_s23 + $0x90] sm:$0xff] }
0x289d   :  { %10175 = vmatprep.subr.mxu1 %v10865_v34 }
0x289e   :  { %10176 = vmatpush3.msra.mxu1 %v10167_v22  ;;  %v7825_v22 = vld [vmem:[%s12326_s23 + $0x30] sm:$0xff] }
0x289f   :  { %10177 = vmatprep.subr.mxu1 %v10865_v34 }
0x28a0   :  { %10178 = vmatpush3.msra.mxu1 %v7266_v23  ;;  %v8825_v23 = vld [vmem:[%s12326_s23 + $0x98] sm:$0xff] }
0x28a1   :  { %10180 = vmatmul.mubr.msk.f32.vlgmr.msra.gmra.mxu1 %vm400_vm0, %v11946_v2  ;;  %10182 = vmatprep.subr.mxu1 %v10865_v34  ;;  %v8795_v2 = vld [vmem:[%s12322_s3] ss:$0 sm:$0xff] }
0x28a2   :  { %10184 = vmatprep.mubr.msk.f32.mxu1 %vm10866_vm2, %v10865_v34  ;;  %10183 = vmatpush3.msra.mxu1 %v7356_v26  ;;  %v7823_v26 = vld [vmem:[%s12326_s23 + $0x20] sm:$0xff] }
0x28a3   :  { %10187 = vmatprep.subr.mxu1 %v10865_v34 }
0x2961   :  { %v7351_v27 = vpop.f32.mrf.mxu1 }
0x2962   :  { %v7355_v28 = vmul.f32 0.00390625, %v7351_v27  ;;  %v8823_v27 = vld [vmem:[%s12326_s23 + $0x88] sm:$0xff] }
0x2963   :  { %v10181_v29 = vpop.f32.mrf.mxu1 }
0x2964   :  { %10185 = vmatmul.mubr.msk.f32.vlgmr.msra.gmra.mxu1 %vm1464_vm8, %v7355_v28  ;;  %v7822_v28 = vld [vmem:[%s12326_s23 + $0x18] sm:$0xff]  ;;  %v8822_v29 = vld [vmem:[%s12326_s23 + $0x80] sm:$0xff] }
0x2965   :  { %10189 = vmatprep.mubr.msk.f32.mxu1 %vm10866_vm2, %v10865_v34  ;;  %10188 = vmatpush3.msk.msra.mxu1 %vm1094_vm6, %v7438_v30  ;;  %v7821_v30 = vld [vmem:[%s12326_s23 + $0x10] sm:$0xff] }
0x2a24   :  { %v7433_v31 = vpop.f32.mrf.mxu1 }
0x2a25   :  { %v7434_v32 = vadd.f32 %v8795_v2, %v7433_v31  ;;  %v7820_v2 = vld [vmem:[%s12326_s23 + $0x8] sm:$0xff]  ;;  %v7819_v31 = vld [vmem:[%s12326_s23] sm:$0xff] }
0x2a26   :  { %v10186_v33 = vpop.f32.mrf.mxu1 }
0x2a27   :  { %v7437_v35 = vmax.f32 %v7434_v32, 0.0  ;;  %v8861_v32 = vld [vmem:[%s12326_s23 + $0x178] sm:$0xff] }
0x2a29   :  { %10190 = vmatmul.mubr.msk.f32.vlgmr.msra.gmra.mxu1 %vm1087_vm5, %v7437_v35 }
0x2a2a   :  { %10194 = vmatprep.mubr.msk.f32.mxu1 %vm1087_vm5, %v11971_v13  ;;  %v7616_v13 = vld [vmem:[%s12324_s22] sm:$0xff] }
0x2ae9   :  { %v7518_v39 = vpop.f32.mrf.mxu1 }
0x2aea   :  { %v7519_v40 = vadd.f32 %v8797_v38, %v7518_v39 }
0x2aeb   :  { %v10191_v41 = vpop.f32.mrf.mxu1 }
0x2aec   :  { %v8800_v42 = vmul.f32 -1.442695, %v7519_v40 }
0x2aee   :  { %10472 = vpow2.f32 %v8800_v42 }
0x2afb   :  { %v10473_v34 = vpop.eup %10472 }
0x2afc   :  { %v7525_v43 = vadd.f32 1.0, %v10473_v34 }
0x2afe   :  { %10474 = vrcp.f32 %v7525_v43  ;;  %v8838_v43 = vld [vmem:[%s12325_s24 + $0x40] sm:$0xff] }
0x2b0b   :  { %v10475_v44 = vpop.eup %10474 }
0x2b0c   :  { %10192 = vmatprep.subr.msk.mxu1 %vm1094_vm6, %v10475_v44 }
0x2b0d   :  { %10193 = vmatpush3.msk.msra.mxu1 %vm1094_vm6, %v10475_v44  ;;  %v8839_v44 = vld [vmem:[%s12325_s24 + $0x48] sm:$0xff] }
0x2b0e   :  { %10195 = vmatmul.mubr.msk.f32.vlgmr.msra.gmra.mxu1 %vm1087_vm5, %v11978_v16  ;;  %10200 = vmatprep.subr.mxu1 %v7616_v13  ;;  %v8814_v16 = vld [vmem:[%s12325_s24 + $0x20] sm:$0xff] }
0x2b0f   :  { %10197 = vmatprep.mubr.msk.f32.mxu1 %vm1087_vm5, %v11982_v17  ;;  %10201 = vmatpush3.msra.mxu1 %v7616_v13  ;;  %v7718_v17 = vld [vmem:[%s12325_s24] sm:$0xff]  ;;  %v8860_v13 = vld [vmem:[%s12326_s23 + $0x170] sm:$0xff] }
0x2b10   :  { %10230 = vmatprep.mubr.msk.f32.mxu0 %vm400_vm0, %v8814_v16  ;;  %v8857_v16 = vld [vmem:[%s12326_s23 + $0x158] sm:$0xff] }
0x2b12   :  { %10198 = vmatmul.mubr.msk.f32.gmra.mxu1 %vm1087_vm5, %v11990_v18 }
0x2bce   :  { %v10196_v45 = vpop.f32.mrf.mxu1 }
0x2bd0   :  { %v7597_v46 = vpop.f32.mrf.mxu1 }
0x2bd1   :  { %10202 = vmatprep.mubr.msk.f32.mxu1 %vm1464_vm8, %v7597_v46  ;;  %v8859_v46 = vld [vmem:[%s12326_s23 + $0x168] sm:$0xff] }
0x2bd2   :  { %v10199_v47 = vpop.f32.mrf.mxu1  ;;  %10203 = vmatmul.mubr.msk.f32.vlgmr.msra.gmra.mxu1 %vm1464_vm8, %v10196_v45  ;;  %v8840_v45 = vld [vmem:[%s12325_s24 + $0x50] sm:$0xff] }
0x2bd4   :  { %v7607_v48 = vpop.f32.mrf.mxu1 }
0x2bd5   :  { %10205 = vmatprep.mubr.msk.f32.mxu1 %vm1464_vm8, %v7607_v48  ;;  %v8858_v48 = vld [vmem:[%s12326_s23 + $0x160] sm:$0xff] }
0x2bd6   :  { %10206 = vmatmul.mubr.msk.f32.gmra.mxu1 %vm1464_vm8, %v10199_v47  ;;  %v8841_v47 = vld [vmem:[%s12325_s24 + $0x58] sm:$0xff] }
0x2bd7   :  { %10216 = vmatprep.mubr.msk.f32.mxu1 %vm400_vm0, %v7718_v17  ;;  %v8856_v17 = vld [vmem:[%s12326_s23 + $0x150] sm:$0xff] }
0x2c92   :  { %v10204_v18 = vpop.f32.mrf.mxu1 }
0x2c93   :  { %v12102_v54 = vmul.f32 %v10204_v18, %v7181_v60  ;;  %v7828_v60 = vld [vmem:[%s12326_s23 + $0x48] sm:$0xff] }
0x2c94   :  { %v7695_v49 = vpop.f32.mrf.mxu1  ;;  %v8855_v18 = vld [vmem:[%s12326_s23 + $0x148] sm:$0xff] }
0x2c95   :  { %v12110_v55 = vmul.f32 %v7695_v49, %v7180_v14  ;;  %v8829_v14 = vld [vmem:[%s12326_s23 + $0xb8] sm:$0xff]  ;;  %v8854_v49 = vld [vmem:[%s12326_s23 + $0x140] sm:$0xff] }
0x2c96   :  { %v10207_v50 = vpop.f32.mrf.mxu1 }
0x2c97   :  { %v12090_v51 = vmul.f32 %v10207_v50, %v7183_v21  ;;  %v8826_v21 = vld [vmem:[%s12326_s23 + $0xa0] sm:$0xff]  ;;  %v8853_v50 = vld [vmem:[%s12326_s23 + $0x138] sm:$0xff] }
0x2c98   :  { %v7705_v52 = vpop.f32.mrf.mxu1 }
0x2c99   :  { %v12094_v53 = vmul.f32 %v7705_v52, %v7182_v20  ;;  %10208 = vmatprep.subr.mxu1 %v12090_v51  ;;  %10222 = vmatprep.subr.mxu0 %v12090_v51  ;;  %v7826_v20 = vld [vmem:[%s12326_s23 + $0x38] sm:$0xff]  ;;  %v8851_v52 = vld [vmem:[%s12326_s23 + $0x128] sm:$0xff] }
0x2c9a   :  { %10209 = vmatpush3.msra.mxu1 %v12090_v51  ;;  %10223 = vmatpush3.msra.mxu0 %v12090_v51 }
0x2c9b   :  { %10210 = vmatprep.subr.mxu1 %v12094_v53  ;;  %10224 = vmatprep.subr.mxu0 %v12094_v53 }
0x2c9c   :  { %10211 = vmatpush3.msra.mxu1 %v12094_v53  ;;  %10225 = vmatpush3.msra.mxu0 %v12094_v53 }
0x2c9d   :  { %10212 = vmatprep.subr.mxu1 %v12102_v54  ;;  %10226 = vmatprep.subr.mxu0 %v12102_v54 }
0x2c9e   :  { %10213 = vmatpush3.msra.mxu1 %v12102_v54  ;;  %10227 = vmatpush3.msra.mxu0 %v12102_v54 }
0x2c9f   :  { %10214 = vmatprep.subr.mxu1 %v12110_v55  ;;  %10228 = vmatprep.subr.mxu0 %v12110_v55 }
0x2ca0   :  { %10215 = vmatpush3.msra.mxu1 %v12110_v55  ;;  %10229 = vmatpush3.msra.mxu0 %v12110_v55 }
0x2ca1   :  { %10231 = vmatmul.mubr.msk.f32.vlgmr.msra.gmra.mxu0 %vm400_vm0, %v8815_v56  ;;  %10236 = vmatprep.subr.mxu1 %v8837_v57  ;;  %v8847_v56 = vld [vmem:[%s12326_s23 + $0x108] sm:$0xff] }
0x2ca2   :  { %10217 = vmatmul.mubr.msk.f32.vlgmr.msra.gmra.mxu1 %vm400_vm0, %v7719_v58  ;;  %10233 = vmatprep.mubr.msk.f32.mxu0 %vm400_vm0, %v8816_v59 }
0x2ca3   :  { %10237 = vmatpush3.msra.mxu1 %v8837_v57  ;;  %10219 = vmatprep.mubr.msk.f32.mxu1 %vm400_vm0, %v7720_v61  ;;  %v8846_v57 = vld [vmem:[%s12326_s23 + $0x100] sm:$0xff] }
0x2ca4   :  { %10238 = vmatprep.subr.mxu1 %v8836_v62  ;;  %10274 = vmatprep.subr.mxu0 %v7834_v3 }
0x2ca5   :  { %10239 = vmatpush3.msra.mxu1 %v8836_v62  ;;  %10234 = vmatmul.mubr.msk.f32.gmra.mxu0 %vm400_vm0, %v8817_v4 }
0x2ca6   :  { %10240 = vmatprep.subr.mxu1 %v8835_v5  ;;  %10220 = vmatmul.mubr.msk.f32.gmra.mxu1 %vm400_vm0, %v7721_v6 }
0x2ca7   :  { %10241 = vmatpush3.msra.mxu1 %v8835_v5  ;;  %10275 = vmatpush3.msra.mxu0 %v7834_v3 }
0x2ca8   :  { %10242 = vmatprep.subr.mxu1 %v8834_v7  ;;  %10276 = vmatprep.subr.mxu0 %v7833_v36 }
0x2ca9   :  { %10243 = vmatpush3.msra.mxu1 %v8834_v7  ;;  %10277 = vmatpush3.msra.mxu0 %v7833_v36 }
0x2caa   :  { %10244 = vmatprep.subr.mxu1 %v8833_v37  ;;  %10278 = vmatprep.subr.mxu0 %v7832_v8 }
0x2cab   :  { %10245 = vmatpush3.msra.mxu1 %v8833_v37  ;;  %10279 = vmatpush3.msra.mxu0 %v7832_v8 }
0x2cac   :  { %10246 = vmatprep.subr.mxu1 %v8832_v9  ;;  %10280 = vmatprep.subr.mxu0 %v7831_v10 }
0x2cad   :  { %10247 = vmatpush3.msra.mxu1 %v8832_v9  ;;  %10281 = vmatpush3.msra.mxu0 %v7831_v10 }
0x2cae   :  { %10248 = vmatprep.subr.mxu1 %v8831_v0  ;;  %10282 = vmatprep.subr.mxu0 %v7830_v11 }
0x2caf   :  { %10249 = vmatpush3.msra.mxu1 %v8831_v0  ;;  %10283 = vmatpush3.msra.mxu0 %v7830_v11 }
0x2cb0   :  { %10250 = vmatprep.subr.mxu1 %v8830_v12  ;;  %10284 = vmatprep.subr.mxu0 %v7829_v1 }
0x2cb1   :  { %10251 = vmatpush3.msra.mxu1 %v8830_v12  ;;  %10285 = vmatpush3.msra.mxu0 %v7829_v1 }
0x2cb2   :  { %10252 = vmatprep.subr.mxu1 %v8829_v14  ;;  %10286 = vmatprep.subr.mxu0 %v7828_v60 }
0x2cb3   :  { %10253 = vmatpush3.msra.mxu1 %v8829_v14  ;;  %10287 = vmatpush3.msra.mxu0 %v7828_v60 }
0x2cb4   :  { %10254 = vmatprep.subr.mxu1 %v8828_v15  ;;  %10288 = vmatprep.subr.mxu0 %v7827_v19 }
0x2cb5   :  { %10255 = vmatpush3.msra.mxu1 %v8828_v15  ;;  %10289 = vmatpush3.msra.mxu0 %v7827_v19 }
0x2cb6   :  { %10256 = vmatprep.subr.mxu1 %v8827_v63  ;;  %10290 = vmatprep.subr.mxu0 %v7826_v20 }
0x2cb7   :  { %10257 = vmatpush3.msra.mxu1 %v8827_v63  ;;  %10291 = vmatpush3.msra.mxu0 %v7826_v20 }
0x2cb8   :  { %10258 = vmatprep.subr.mxu1 %v8826_v21  ;;  %10292 = vmatprep.subr.mxu0 %v7825_v22 }
0x2cb9   :  { %10259 = vmatpush3.msra.mxu1 %v8826_v21  ;;  %10293 = vmatpush3.msra.mxu0 %v7825_v22 }
0x2cba   :  { %10260 = vmatprep.subr.mxu1 %v8825_v23  ;;  %10294 = vmatprep.subr.mxu0 %v7824_v24 }
0x2cbb   :  { %10261 = vmatpush3.msra.mxu1 %v8825_v23  ;;  %10295 = vmatpush3.msra.mxu0 %v7824_v24 }
0x2cbc   :  { %10262 = vmatprep.subr.mxu1 %v8824_v25  ;;  %10296 = vmatprep.subr.mxu0 %v7823_v26 }
0x2cbd   :  { %10263 = vmatpush3.msra.mxu1 %v8824_v25  ;;  %10297 = vmatpush3.msra.mxu0 %v7823_v26 }
0x2cbe   :  { %10264 = vmatprep.subr.mxu1 %v8823_v27  ;;  %10298 = vmatprep.subr.mxu0 %v7822_v28 }
0x2cbf   :  { %10265 = vmatpush3.msra.mxu1 %v8823_v27  ;;  %10299 = vmatpush3.msra.mxu0 %v7822_v28 }
0x2cc0   :  { %10266 = vmatprep.subr.mxu1 %v8822_v29  ;;  %10300 = vmatprep.subr.mxu0 %v7821_v30 }
0x2cc1   :  { %10267 = vmatpush3.msra.mxu1 %v8822_v29  ;;  %10301 = vmatpush3.msra.mxu0 %v7821_v30 }
0x2cc2   :  { %10312 = vmatprep.subr.mxu1 %v12090_v51  ;;  %10302 = vmatprep.subr.mxu0 %v7820_v2 }
0x2cc3   :  { %10303 = vmatpush3.msra.mxu0 %v7820_v2 }
0x2cc4   :  { %10304 = vmatprep.subr.mxu0 %v7819_v31 }
0x2cc5   :  { %10305 = vmatpush3.msra.mxu0 %v7819_v31 }
0x2cc6   :  { %10326 = vmatprep.subr.mxu0 %v8861_v32 }
0x2d61   :  { %v10232_v33 = vpop.f32.mrf.mxu0 }
0x2d62   :  { %v10218_v35 = vpop.f32.mrf.mxu1 }
0x2d63   :  { %v7918_v38 = vpop.f32.mrf.mxu0 }
0x2d64   :  { %10268 = vmatprep.mubr.f32.mxu1 %v7918_v38  ;;  %v7800_v39 = vpop.f32.mrf.mxu1 }
0x2d65   :  { %v10235_v40 = vpop.f32.mrf.mxu0  ;;  %10269 = vmatmul.mubr.f32.vlgmr.msra.gmra.mxu1 %v10232_v33  ;;  %10306 = vmatprep.mubr.f32.mxu0 %v7800_v39 }
0x2d66   :  { %10313 = vmatpush3.msra.mxu1 %v12090_v51  ;;  %v10221_v41 = vpop.f32.mrf.mxu1  ;;  %10307 = vmatmul.mubr.f32.vlgmr.msra.gmra.mxu0 %v10218_v35  ;;  %v8852_v51 = vld [vmem:[%s12326_s23 + $0x130] sm:$0xff] }
0x2d67   :  { %10314 = vmatprep.subr.mxu1 %v12094_v53  ;;  %v7928_v42 = vpop.f32.mrf.mxu0  ;;  %10327 = vmatpush3.msra.mxu0 %v8861_v32 }
0x2d68   :  { %10315 = vmatpush3.msra.mxu1 %v12094_v53  ;;  %10271 = vmatprep.mubr.f32.mxu1 %v7928_v42  ;;  %v7810_v34 = vpop.f32.mrf.mxu1  ;;  %v8850_v53 = vld [vmem:[%s12326_s23 + $0x120] sm:$0xff] }
0x2d69   :  { %10316 = vmatprep.subr.mxu1 %v12102_v54  ;;  %10272 = vmatmul.mubr.f32.gmra.mxu1 %v10235_v40 }
0x2d6a   :  { %10317 = vmatpush3.msra.mxu1 %v12102_v54  ;;  %10309 = vmatprep.mubr.f32.mxu0 %v7810_v34  ;;  %v8849_v54 = vld [vmem:[%s12326_s23 + $0x118] sm:$0xff] }
0x2d6b   :  { %10318 = vmatprep.subr.mxu1 %v12110_v55  ;;  %10310 = vmatmul.mubr.f32.gmra.mxu0 %v10221_v41 }
0x2d6c   :  { %10319 = vmatpush3.msra.mxu1 %v12110_v55  ;;  %10320 = vmatprep.mubr.msk.f32.mxu1 %vm400_vm0, %v8838_v43  ;;  %v8848_v55 = vld [vmem:[%s12326_s23 + $0x110] sm:$0xff] }
0x2d6d   :  { %10321 = vmatmul.mubr.msk.f32.vlgmr.msra.gmra.mxu1 %vm400_vm0, %v8839_v44  ;;  %10328 = vmatprep.subr.mxu0 %v8860_v13 }
0x2d6e   :  { %10323 = vmatprep.mubr.msk.f32.mxu1 %vm400_vm0, %v8840_v45  ;;  %10329 = vmatpush3.msra.mxu0 %v8860_v13 }
0x2d6f   :  { %10330 = vmatprep.subr.mxu0 %v8859_v46 }
0x2d70   :  { %10331 = vmatpush3.msra.mxu0 %v8859_v46 }
0x2d71   :  { %10324 = vmatmul.mubr.msk.f32.gmra.mxu1 %vm400_vm0, %v8841_v47  ;;  %10332 = vmatprep.subr.mxu0 %v8858_v48 }
0x2d72   :  { %10333 = vmatpush3.msra.mxu0 %v8858_v48 }
0x2d73   :  { %10334 = vmatprep.subr.mxu0 %v8857_v16 }
0x2d74   :  { %10335 = vmatpush3.msra.mxu0 %v8857_v16 }
0x2d75   :  { %10336 = vmatprep.subr.mxu0 %v8856_v17 }
0x2d76   :  { %10337 = vmatpush3.msra.mxu0 %v8856_v17 }
0x2d77   :  { %10338 = vmatprep.subr.mxu0 %v8855_v18 }
0x2d78   :  { %10339 = vmatpush3.msra.mxu0 %v8855_v18 }
0x2d79   :  { %10340 = vmatprep.subr.mxu0 %v8854_v49 }
0x2d7a   :  { %10341 = vmatpush3.msra.mxu0 %v8854_v49 }
0x2d7b   :  { %10342 = vmatprep.subr.mxu0 %v8853_v50 }
0x2d7c   :  { %10343 = vmatpush3.msra.mxu0 %v8853_v50 }
0x2d7d   :  { %10344 = vmatprep.subr.mxu0 %v8852_v51 }
0x2d7e   :  { %10345 = vmatpush3.msra.mxu0 %v8852_v51 }
0x2d7f   :  { %10346 = vmatprep.subr.mxu0 %v8851_v52 }
0x2d80   :  { %10347 = vmatpush3.msra.mxu0 %v8851_v52 }
0x2d81   :  { %10348 = vmatprep.subr.mxu0 %v8850_v53 }
0x2d82   :  { %10349 = vmatpush3.msra.mxu0 %v8850_v53 }
0x2d83   :  { %10350 = vmatprep.subr.mxu0 %v8849_v54 }
0x2d84   :  { %10351 = vmatpush3.msra.mxu0 %v8849_v54 }
0x2d85   :  { %10352 = vmatprep.subr.mxu0 %v8848_v55 }
0x2d86   :  { %10353 = vmatpush3.msra.mxu0 %v8848_v55 }
0x2d87   :  { %10354 = vmatprep.subr.mxu0 %v8847_v56 }
0x2d88   :  { %10355 = vmatpush3.msra.mxu0 %v8847_v56 }
0x2d89   :  { %10356 = vmatprep.subr.mxu0 %v8846_v57 }
0x2d8a   :  { %10357 = vmatpush3.msra.mxu0 %v8846_v57 }
0x2e25   :  { %v10270_v58 = vpop.f32.mrf.mxu1 }
0x2e27   :  { %v8020_v59 = vpop.f32.mrf.mxu1 }
0x2e29   :  { %v10273_v61 = vpop.f32.mrf.mxu1 }
0x2e2b   :  { %v8030_v62 = vpop.f32.mrf.mxu1 }
0x2e2d   :  { %v10322_v3 = vpop.f32.mrf.mxu1 }
0x2e2f   :  { %v8207_v4 = vpop.f32.mrf.mxu1 }
0x2e30   :  { %10358 = vmatprep.mubr.f32.mxu0 %v8207_v4 }
0x2e31   :  { %v10325_v5 = vpop.f32.mrf.mxu1  ;;  %10359 = vmatmul.mubr.f32.vlgmr.msra.gmra.mxu0 %v10322_v3 }
0x2e33   :  { %v8217_v6 = vpop.f32.mrf.mxu1 }
0x2e34   :  { %10361 = vmatprep.mubr.f32.mxu0 %v8217_v6 }
0x2e35   :  { %10362 = vmatmul.mubr.f32.gmra.mxu0 %v10325_v5 }
0x2e36   :  { %10723 = shalt.err (!%p10720_p3)
}
0x2e37   :  { %8392 = dma.vmem_to_hbm [thread:$0]  %s8390_s26, 32, %s11205_s27, [#allocation22]  }
0x2e38   :  { %s10732_s9 = scalar_lea.vmem %s8380_s17, 32  ;;  %p10737_p5 = scmp.lt.s32.totalorder %s8380_s17, %s8380_s17 }
0x2e39   :  { %p10733_p4 = scmp.ne.s32.totalorder %s8380_s17, %s10732_s9  ;;  %p10738_p6 = scmp.lt.s32.totalorder %s10732_s9, %s10732_s9 }
0x2e3b   :  { %p10739_p7 = por %p10738_p6, %p10737_p5 }
0x2e3d   :  { %p10740_p8 = pnand %p10739_p7, %p10733_p4 }
0x2e3f   :  { %10743 = shalt.err (!%p10740_p8)
}
0x2e40   :  { %8382 = dma.vmem_to_hbm [thread:$0]  %s8380_s17, 32, %s11200_s8, [#allocation4]  }
0x2e41   :  { %s10871_s6 = smov [#allocation23]  }
0x2e42   :  { %s8399_s12 = sshll.u32 %s10871_s6, 4  ;;  %s8400_s12 = int_to_ptr.vmem [resolvable:$true] %s8399_s12 }
0x2e43   :  { %s10752_s20 = scalar_lea.vmem %s8400_s12, 32  ;;  %p10757_p10 = scmp.lt.s32.totalorder %s8400_s12, %s8400_s12 }
0x2e44   :  { %p10753_p9 = scmp.ne.s32.totalorder %s8400_s12, %s10752_s20  ;;  %p10758_p11 = scmp.lt.s32.totalorder %s10752_s20, %s10752_s20 }
0x2e46   :  { %p10759_p12 = por %p10758_p11, %p10757_p10 }
0x2e48   :  { %p10760_p13 = pnand %p10759_p12, %p10753_p9 }
0x2e4a   :  { %10763 = shalt.err (!%p10760_p13)
}
0x2e4b   :  { %8402 = dma.vmem_to_hbm [thread:$0]  %s8400_s12, 32, %s11210_s19, [#allocation22]   ;;  %v10308_v7 = vpop.f32.mrf.mxu0  ;;  %v8862_v0 = vld [vmem:[#allocation19] ss:$0 sm:$0xff] }
0x2e4c   :  { %v8111_v9 = vadd.f32 %v10308_v7, %v10270_v58 }
0x2e4d   :  { %v8105_v36 = vpop.f32.mrf.mxu0 }
0x2e4e   :  { %v8106_v11 = vadd.f32 %v8105_v36, %v8020_v59 }
0x2e4f   :  { %v10311_v37 = vpop.f32.mrf.mxu0 }
0x2e50   :  { %v8121_v14 = vadd.f32 %v10311_v37, %v10273_v61 }
0x2e51   :  { %v8115_v8 = vpop.f32.mrf.mxu0 }
0x2e52   :  { %v8116_v63 = vadd.f32 %v8115_v8, %v8030_v62 }
0x2ef1   :  { %v10360_v10 = vpop.f32.mrf.mxu0 }
0x2ef2   :  { %v8329_v12 = vadd.f32 %v10360_v10, %v8111_v9 }
0x2ef3   :  { %v8309_v1 = vpop.f32.mrf.mxu0 }
0x2ef4   :  { %v8340_v60 = vadd.f32 %v8862_v0, %v8329_v12  ;;  %v8328_v15 = vadd.f32 %v8309_v1, %v8106_v11 }
0x2ef5   :  { %v10363_v19 = vpop.f32.mrf.mxu0 }
0x2ef6   :  { %v8864_v20 = vmul.f32 -1.442695, %v8340_v60  ;;  %v8339_v21 = vadd.f32 %v8862_v0, %v8328_v15  ;;  %v8331_v22 = vadd.f32 %v10363_v19, %v8121_v14 }
0x2ef7   :  { %v8319_v23 = vpop.f32.mrf.mxu0 }
0x2ef8   :  { %10476 = vpow2.f32 %v8864_v20  ;;  %v8863_v24 = vmul.f32 -1.442695, %v8339_v21  ;;  %v8342_v25 = vadd.f32 %v8862_v0, %v8331_v22  ;;  %v8330_v26 = vadd.f32 %v8319_v23, %v8116_v63 }
0x2efa   :  { %10478 = vpow2.f32 %v8863_v24  ;;  %v8866_v27 = vmul.f32 -1.442695, %v8342_v25  ;;  %v8341_v28 = vadd.f32 %v8862_v0, %v8330_v26 }
0x2efc   :  { %10480 = vpow2.f32 %v8866_v27  ;;  %v8865_v29 = vmul.f32 -1.442695, %v8341_v28 }
0x2efe   :  { %10482 = vpow2.f32 %v8865_v29 }
0x2f05   :  { %v10477_v30 = vpop.eup %10476 }
0x2f06   :  { %v8356_v2 = vadd.f32 1.0, %v10477_v30 }
0x2f07   :  { %v10479_v31 = vpop.eup %10478 }
0x2f08   :  { %10484 = vrcp.f32 %v8356_v2  ;;  %v8355_v32 = vadd.f32 1.0, %v10479_v31 }
0x2f09   :  { %v10481_v33 = vpop.eup %10480 }
0x2f0a   :  { %10486 = vrcp.f32 %v8355_v32  ;;  %v8358_v35 = vadd.f32 1.0, %v10481_v33 }
0x2f0b   :  { %v10483_v38 = vpop.eup %10482 }
0x2f0c   :  { %10488 = vrcp.f32 %v8358_v35  ;;  %v8357_v39 = vadd.f32 1.0, %v10483_v38 }
0x2f0e   :  { %10490 = vrcp.f32 %v8357_v39 }
0x2f15   :  { %v10485_v40 = vpop.eup %10484 }
0x2f16   :  { %8368 = vst.msk [vmem:[%s11195_s21 + $0x8] sm:$0xff] %vm579_vm1, %v10485_v40 }
0x2f17   :  { %v10487_v41 = vpop.eup %10486 }
0x2f18   :  { %8367 = vst.msk [vmem:[%s11195_s21] sm:$0xff] %vm579_vm1, %v10487_v41 }
0x2f19   :  { %v10489_v42 = vpop.eup %10488 }
0x2f1a   :  { %8370 = vst.msk [vmem:[%s11195_s21 + $0x18] sm:$0xff] %vm579_vm1, %v10489_v42 }
0x2f1b   :  { %v10491_v34 = vpop.eup %10490 }
0x2f1c   :  { %8369 = vst.msk [vmem:[%s11195_s21 + $0x10] sm:$0xff] %vm579_vm1, %v10491_v34 }
0x2f1d   :  { %10784 = dma.done.wait [#allocation4], 32  }
0x2f1e   :  { %10785 = vsyncadd [#allocation4], 4294967264 }
0x2f1f   :  { %10786 = dma.done.wait [#allocation22], 64  }
0x2f20   :  { %10787 = vsyncadd [#allocation22], 4294967232 }
0x2f21   :  { %8414 = vsyncpa [#allocation3], 1 }
0x2f22   :  { %8415 = vsyncpa [#allocation6], 1 }
0x2f23   :  { %8416 = vsyncpa [#allocation9], 1 }
0x2f24   :  { %8417 = vsyncpa [#allocation12], 1 }
0x2f25   :  { %8418 = vsyncpa [#allocation15], 1 }
0x2f26   :  { %8419 = vsyncpa [#allocation18], 1 }
0x2f27   :  { %8420 = vsyncpa [#allocation4], 1 }
0x2f28   :  { %8421 = vsyncpa [#allocation22], 1 }

</bundles_post_ra>
